<compile_context>
chip_gen: v7x
topology: tpu7x:2x2x1
jax: 0.10.0
libtpu: 0.0.40
codegen_flags: <defaults>
</compile_context>

<pallas_src>
import functools

import jax
import jax.numpy as jnp
from jax import lax
from jax.experimental import pallas as pl
from jax.experimental.pallas import tpu as pltpu

_VMEM = pl.BlockSpec(memory_space=pltpu.MemorySpace.VMEM)
_NEG = 1e30


def _round_up(v, m):
    return (v + m - 1) // m * m


def _vmem_limit_bytes():
    """Generation-aware scoped-VMEM limit (leave ~25% headroom for temporaries)."""
    cap = 64 * 1024 * 1024                       # conservative default (v7x VMEM)
    try:
        cap = int(getattr(pltpu.get_tpu_info(), "vmem_capacity_bytes", cap)) or cap
    except Exception:
        pass
    return int(cap * 3 // 4)


# ----------------------------------------------------------------------------
# Call 1: layer-1 projection (row-tiled, parallel)
# ----------------------------------------------------------------------------
def _proj_kernel(x_ref, w1_ref, c1srcT_ref, xp1_ref, alsrcT_ref):
    # xp1   = x_tile @ W1                     -> [TM, hd1p]  (bf16)
    # alsrc = (a_src . W1^T) @ x_tile^T       -> [hp, TM]    (f32, lane = node)
    xp1 = jnp.dot(x_ref[...], w1_ref[...], preferred_element_type=jnp.float32)
    xp1_ref[...] = xp1.astype(xp1_ref.dtype)
    alsrcT_ref[...] = lax.dot_general(
        c1srcT_ref[...], x_ref[...],
        dimension_numbers=(((1,), (1,)), ((), ())),
        preferred_element_type=jnp.float32)


# ----------------------------------------------------------------------------
# Call 2: layer-1 attention + bias + ReLU + layer-2 projection (row-tiled)
# ----------------------------------------------------------------------------
def _layer1_kernel(adj_ref, xp1_ref, alsrcT_ref, a1dst_ref, b1_ref, w2_ref,
                   xp2_ref, *, heads, hidden, hd1p, tile_m):
    f32 = jnp.float32
    adjf = adj_ref[...].astype(f32)                       # [TM, N] 0/1 (int8 in HBM)
    neg_bias = (adjf - 1.0) * _NEG                        # 0 on edges, -1e30 elsewhere
    r0 = pl.multiple_of(pl.program_id(0) * tile_m, tile_m)
    xp1_t = xp1_ref[pl.ds(r0, tile_m), :]                 # [TM, hd1p] (dest rows)
    # Destination attention logits for every head with one MXU call: [TM, hp].
    ald = jnp.dot(xp1_t, a1dst_ref[...], preferred_element_type=f32)

    h1_parts = []
    for h in range(heads):                                # static & small
        lo = h * hidden
        logit = ald[:, h:h + 1] + alsrcT_ref[h:h + 1, :]  # [TM, N]
        e = jnp.maximum(logit, 0.0) + 0.2 * jnp.minimum(logit, 0.0)   # LeakyReLU(0.2)
        e = e + neg_bias
        e = e - jnp.max(e, axis=1, keepdims=True)
        p = jnp.exp(e) * adjf
        attn = p * pl.reciprocal(jnp.sum(p, axis=1, keepdims=True), approx=True)
        agg = jnp.dot(attn.astype(xp1_ref.dtype), xp1_ref[:, lo:lo + hidden],
                      preferred_element_type=f32)         # [TM, hidden]
        h1_parts.append(jnp.maximum(agg + b1_ref[0:1, lo:lo + hidden], 0.0))
    pad = hd1p - heads * hidden
    if pad:
        h1_parts.append(jnp.zeros((tile_m, pad), f32))
    h1 = jnp.concatenate(h1_parts, axis=1).astype(w2_ref.dtype)       # [TM, hd1p]
    # TODO(synk): F.dropout(training=True) is not modeled (eval-mode identity).
    # Single K=hd1p layer-2 projection (hoisted out of the per-head loop).
    xp2_ref[...] = jnp.dot(h1, w2_ref[...],
                           preferred_element_type=f32).astype(xp2_ref.dtype)


# ----------------------------------------------------------------------------
# Call 3: layer-2 attention + bias + both column-split softmaxes (row-tiled)
# ----------------------------------------------------------------------------
def _layer2_kernel(adj_ref, xp2_ref, a2srcT_ref, a2dst_ref, b2_ref, o_ref,
                   *, classes, sf_num, tile_m):
    f32 = jnp.float32
    cp = o_ref.shape[1]
    adjf = adj_ref[...].astype(f32)
    neg_bias = (adjf - 1.0) * _NEG
    r0 = pl.multiple_of(pl.program_id(0) * tile_m, tile_m)
    xp2_t = xp2_ref[pl.ds(r0, tile_m), :]                 # [TM, cp]
    al2d = jnp.dot(xp2_t, a2dst_ref[...], preferred_element_type=f32)     # [TM, 1]
    al2s = lax.dot_general(a2srcT_ref[...], xp2_ref[...],
                           dimension_numbers=(((1,), (1,)), ((), ())),
                           preferred_element_type=f32)                    # [1, N]
    logit = al2d + al2s
    e = jnp.maximum(logit, 0.0) + 0.2 * jnp.minimum(logit, 0.0)
    e = e + neg_bias
    e = e - jnp.max(e, axis=1, keepdims=True)
    p = jnp.exp(e) * adjf
    attn = p * pl.reciprocal(jnp.sum(p, axis=1, keepdims=True), approx=True)
    h2 = jnp.dot(attn.astype(xp2_ref.dtype), xp2_ref[...],
                 preferred_element_type=f32) + b2_ref[...]                # [TM, cp]

    col = lax.broadcasted_iota(jnp.int32, (tile_m, cp), 1)

    def seg_softmax(seg_mask):
        z = jnp.where(seg_mask, h2, -_NEG)
        z = z - jnp.max(z, axis=1, keepdims=True)
        pz = jnp.exp(z) * seg_mask.astype(f32)
        # max() guards the empty-segment case (sf_num == 0 or == classes).
        den = jnp.maximum(jnp.sum(pz, axis=1, keepdims=True), 1e-30)
        return pz * pl.reciprocal(den, approx=True)

    o_ref[...] = seg_softmax(col < sf_num) + seg_softmax(
        jnp.logical_and(col >= sf_num, col < classes))    # lane-dense [TM, cp] store


# ----------------------------------------------------------------------------
# Wrapper: packing / padding (layout plumbing) + three pallas_calls
# ----------------------------------------------------------------------------
@functools.partial(jax.jit, static_argnames=("heads", "hidden", "classes",
                                             "edge_SF_num", "tile_m"))
def gat_forward(x, edge_index, params, *, heads, hidden, classes, edge_SF_num,
                tile_m=128):
    """Full GAT.forward (eval mode) as three row-parallel Pallas TPU calls."""
    n, f = x.shape
    hd1 = heads * hidden
    tm = tile_m                      # NOTE: sweep to 256 on v5e/v6e (128 MiB VMEM).
    np_ = _round_up(n, tm)
    fp = _round_up(f, 128)
    cp = _round_up(classes, 128)
    hp = _round_up(heads, 8)
    hd1p = _round_up(hd1, 128)
    bf16, f32 = jnp.bfloat16, jnp.float32
    grid = (np_ // tm,)
    cparams = pltpu.CompilerParams(dimension_semantics=("parallel",),
                                   vmem_limit_bytes=_vmem_limit_bytes())

    # Node features (zero-padded, bf16 MXU operand), streamed row-tiled in call 1.
    x_pad = jnp.zeros((np_, fp), f32).at[:n, :f].set(x).astype(bf16)

    # Dense adjacency mask, int8 (1 byte/elem): adj[i, j] = 1 iff edge j -> i, plus
    # self-loops on every (incl. padded) row so each softmax row is non-empty.
    # TODO(synk): bit-pack 32 edges/uint32 + flash-style column tiling for very
    # large N to cut the O(N^2) HBM stream further.
    src, dst = edge_index[0], edge_index[1]
    adj = jnp.zeros((np_, np_), jnp.int8).at[dst, src].set(1)
    diag = jnp.arange(np_)
    adj = adj.at[diag, diag].set(1)

    # ---- Layer-1 weights (padded, bf16 MXU operands) ------------------------
    w1 = params["w1"]
    w1_pad = jnp.zeros((fp, hd1p), f32).at[:f, :hd1].set(w1).astype(bf16)
    # Fold per-head *source* attention vectors into the projection:
    #   c1srcT[h, :] = W1[:, h*hid:(h+1)*hid] @ a_src[h]        (shape [heads, F])
    c1 = jnp.einsum("fhk,hk->hf", w1.reshape(f, heads, hidden), params["asrc1"])
    c1srcT = jnp.zeros((hp, fp), f32).at[:heads, :f].set(c1).astype(bf16)
    # Per-head *destination* attention vectors as one [hd1p, hp] matrix.
    a1dst = jnp.zeros((hd1p, hp), f32)
    for h in range(heads):
        a1dst = a1dst.at[h * hidden:(h + 1) * hidden, h].set(params["adst1"][h])
    a1dst = a1dst.astype(bf16)
    b1 = jnp.zeros((1, hd1p), f32).at[0, :hd1].set(params["b1"][0])

    # ---- Layer-2 weights (classes padded to a 128-lane-dense width) ---------
    w2_pad = jnp.zeros((hd1p, cp), f32).at[:hd1, :classes].set(params["w2"]).astype(bf16)
    a2srcT = jnp.zeros((1, cp), f32).at[0, :classes].set(params["asrc2"][0]).astype(bf16)
    a2dst = jnp.zeros((cp, 1), f32).at[:classes, 0].set(params["adst2"][0]).astype(bf16)
    b2 = jnp.zeros((1, cp), f32).at[0, :classes].set(params["b2"][0])

    # ---- Call 1: projection --------------------------------------------------
    xp1, alsrcT = pl.pallas_call(
        _proj_kernel,
        out_shape=(jax.ShapeDtypeStruct((np_, hd1p), bf16),
                   jax.ShapeDtypeStruct((hp, np_), f32)),
        grid=grid,
        in_specs=[pl.BlockSpec((tm, fp), lambda i: (i, 0)),   # x row tile
                  _VMEM, _VMEM],                              # w1, c1srcT
        out_specs=(pl.BlockSpec((tm, hd1p), lambda i: (i, 0)),
                   pl.BlockSpec((hp, tm), lambda i: (0, i))),
        compiler_params=cparams,
    )(x_pad, w1_pad, c1srcT)

    # ---- Call 2: layer-1 attention + ReLU + layer-2 projection --------------
    xp2 = pl.pallas_call(
        functools.partial(_layer1_kernel, heads=heads, hidden=hidden,
                          hd1p=hd1p, tile_m=tm),
        out_shape=jax.ShapeDtypeStruct((np_, cp), bf16),
        grid=grid,
        in_specs=[pl.BlockSpec((tm, np_), lambda i: (i, 0)),  # adj row tile (int8)
                  _VMEM, _VMEM, _VMEM, _VMEM, _VMEM],         # xp1 alsrcT a1dst b1 w2
        out_specs=pl.BlockSpec((tm, cp), lambda i: (i, 0)),
        compiler_params=cparams,
    )(adj, xp1, alsrcT, a1dst, b1, w2_pad)

    # ---- Call 3: layer-2 attention + bias + split softmaxes -----------------
    out = pl.pallas_call(
        functools.partial(_layer2_kernel, classes=classes, sf_num=edge_SF_num,
                          tile_m=tm),
        out_shape=jax.ShapeDtypeStruct((np_, cp), f32),
        grid=grid,
        in_specs=[pl.BlockSpec((tm, np_), lambda i: (i, 0)),  # adj row tile (int8)
                  _VMEM, _VMEM, _VMEM, _VMEM],                # xp2 a2srcT a2dst b2
        out_specs=pl.BlockSpec((tm, cp), lambda i: (i, 0)),
        compiler_params=cparams,
    )(adj, xp2, a2srcT, a2dst, b2)

    return out[:n, :edge_SF_num], out[:n, edge_SF_num:classes]


# ----------------------------------------------------------------------------
# Pure-JAX reference (f32), same dense-adjacency semantics
# ----------------------------------------------------------------------------
def gat_reference(x, edge_index, params, *, heads, hidden, classes, edge_SF_num):
    n = x.shape[0]
    src, dst = edge_index[0], edge_index[1]
    adj = jnp.zeros((n, n), jnp.float32).at[dst, src].set(1.0)
    adj = adj.at[jnp.arange(n), jnp.arange(n)].set(1.0)

    def layer(h, w, asrc, adst, b, n_heads, out_dim, relu):
        xp = h @ w
        outs = []
        for hh in range(n_heads):
            xh = xp[:, hh * out_dim:(hh + 1) * out_dim]
            a_s = jnp.sum(xh * asrc[hh], axis=1)
            a_d = jnp.sum(xh * adst[hh], axis=1)
            e = a_d[:, None] + a_s[None, :]
            e = jnp.where(e > 0, e, 0.2 * e)
            e = jnp.where(adj > 0, e, -1e30)
            e = e - e.max(axis=1, keepdims=True)
            p = jnp.exp(e)
            attn = p / p.sum(axis=1, keepdims=True)
            outs.append(attn @ xh + b[0, hh * out_dim:(hh + 1) * out_dim])
        out = jnp.concatenate(outs, axis=1)
        return jnp.maximum(out, 0.0) if relu else out

    h1 = layer(x, params["w1"], params["asrc1"], params["adst1"], params["b1"],
               heads, hidden, True)
    h2 = layer(h1, params["w2"], params["asrc2"], params["adst2"], params["b2"],
               1, classes, False)
    return (jax.nn.softmax(h2[:, :edge_SF_num], axis=1),
            jax.nn.softmax(h2[:, edge_SF_num:], axis=1))


# ----------------------------------------------------------------------------
# Deterministic parameter init (synthetic; shapes follow GATConv)
# ----------------------------------------------------------------------------
def init_params(key, *, features, hidden, classes, heads):
    ks = jax.random.split(key, 8)
    scale = 0.2
    return {
        "w1":    scale * jax.random.normal(ks[0], (features, heads * hidden), jnp.float32),
        "asrc1": scale * jax.random.normal(ks[1], (heads, hidden), jnp.float32),
        "adst1": scale * jax.random.normal(ks[2], (heads, hidden), jnp.float32),
        "b1":    scale * jax.random.normal(ks[3], (1, heads * hidden), jnp.float32),
        "w2":    scale * jax.random.normal(ks[4], (heads * hidden, classes), jnp.float32),
        "asrc2": scale * jax.random.normal(ks[5], (1, classes), jnp.float32),
        "adst2": scale * jax.random.normal(ks[6], (1, classes), jnp.float32),
        "b2":    scale * jax.random.normal(ks[7], (1, classes), jnp.float32),
    }


if __name__ == "__main__":
    # Small synthetic graph.
    N_NODES, FEATURES, HIDDEN, CLASSES, HEADS = 16, 8, 8, 6, 2
    EDGE_SF_NUM = 3
    N_EDGES = 40

    root = jax.random.PRNGKey(0)
    k_x, k_src, k_dst, k_par = jax.random.split(root, 4)

    x = jax.random.normal(k_x, (N_NODES, FEATURES), jnp.float32)
    edge_index = jnp.stack([
        jax.random.randint(k_src, (N_EDGES,), 0, N_NODES, dtype=jnp.int32),
        jax.random.randint(k_dst, (N_EDGES,), 0, N_NODES, dtype=jnp.int32),
    ], axis=0)                                               # [2, E]

    params = init_params(k_par, features=FEATURES, hidden=HIDDEN,
                         classes=CLASSES, heads=HEADS)

    x_sf, x_ptx = gat_forward(x, edge_index, params, heads=HEADS, hidden=HIDDEN,
                              classes=CLASSES, edge_SF_num=EDGE_SF_NUM)
    jax.block_until_ready((x_sf, x_ptx))

    ref_sf, ref_ptx = gat_reference(x, edge_index, params, heads=HEADS,
                                    hidden=HIDDEN, classes=CLASSES,
                                    edge_SF_num=EDGE_SF_NUM)

    # Sanity: shapes, finiteness, softmax rows sum to one, matches f32 reference.
    assert x_sf.shape == (N_NODES, EDGE_SF_NUM)
    assert x_ptx.shape == (N_NODES, CLASSES - EDGE_SF_NUM)
    assert bool(jnp.all(jnp.isfinite(x_sf))) and bool(jnp.all(jnp.isfinite(x_ptx)))
    assert bool(jnp.allclose(jnp.sum(x_sf, axis=1), 1.0, atol=5e-3))
    assert bool(jnp.allclose(jnp.sum(x_ptx, axis=1), 1.0, atol=5e-3))
    assert bool(jnp.allclose(x_sf, ref_sf, atol=3e-2))
    assert bool(jnp.allclose(x_ptx, ref_ptx, atol=3e-2))

    print("KERNEL_OK")
</pallas_src>

<mosaic_0001>
module attributes {stable_mosaic.version = 11 : i64} {
  func.func @_proj_kernel(%arg0: i32, %arg1: memref<128x128xbf16, #tpu.memory_space<vmem>>, %arg2: memref<128x128xbf16, #tpu.memory_space<vmem>>, %arg3: memref<8x128xbf16, #tpu.memory_space<vmem>>, %arg4: memref<128x128xbf16, #tpu.memory_space<vmem>>, %arg5: memref<8x128xf32, #tpu.memory_space<vmem>>) attributes {dimension_semantics = [#tpu.dimension_semantics<parallel>], iteration_bounds = array<i64: 1>, scalar_prefetch = 0 : i64, scratch_operands = 0 : i64, tpu.core_type = #tpu.core_type<tc>, window_params = [{transform_indices = @transform_0, window_bounds = array<i64: 128, 128>}, {pipeline_mode = #tpu.pipeline_mode<synchronous>, transform_indices = @transform_1, window_bounds = array<i64: 128, 128>}, {pipeline_mode = #tpu.pipeline_mode<synchronous>, transform_indices = @transform_2, window_bounds = array<i64: 8, 128>}, {transform_indices = @transform_3, window_bounds = array<i64: 128, 128>}, {transform_indices = @transform_4, window_bounds = array<i64: 8, 128>}]} {
    %c0 = arith.constant 0 : index
    %c0_0 = arith.constant 0 : index
    %0 = vector.load %arg1[%c0, %c0_0] : memref<128x128xbf16, #tpu.memory_space<vmem>>, vector<128x128xbf16>
    %c0_1 = arith.constant 0 : index
    %c0_2 = arith.constant 0 : index
    %1 = vector.load %arg2[%c0_1, %c0_2] : memref<128x128xbf16, #tpu.memory_space<vmem>>, vector<128x128xbf16>
    %cst = arith.constant dense<0.000000e+00> : vector<128x128xf32>
    %2 = tpu.matmul %0, %1, %cst {dimension_numbers = #tpu.dot_dimension_numbers<[1], [0], [0], [1], [0, 0, 1, 1], [], []>} : vector<128x128xbf16>, vector<128x128xbf16>, vector<128x128xf32> -> vector<128x128xf32>
    %3 = arith.truncf %2 : vector<128x128xf32> to vector<128x128xbf16>
    %c0_3 = arith.constant 0 : index
    %c0_4 = arith.constant 0 : index
    %4 = vector.load %arg4[%c0_3, %c0_4] : memref<128x128xbf16, #tpu.memory_space<vmem>>, vector<128x128xbf16>
    tpu.vector_store %arg4[%c0_3, %c0_4], %3 {strides = array<i32>} : memref<128x128xbf16, #tpu.memory_space<vmem>>, vector<128x128xbf16>,
    %c0_5 = arith.constant 0 : index
    %c0_6 = arith.constant 0 : index
    %5 = vector.load %arg3[%c0_5, %c0_6] : memref<8x128xbf16, #tpu.memory_space<vmem>>, vector<8x128xbf16>
    %c0_7 = arith.constant 0 : index
    %c0_8 = arith.constant 0 : index
    %6 = vector.load %arg1[%c0_7, %c0_8] : memref<128x128xbf16, #tpu.memory_space<vmem>>, vector<128x128xbf16>
    %cst_9 = arith.constant dense<0.000000e+00> : vector<8x128xf32>
    %7 = tpu.matmul %5, %6, %cst_9 {dimension_numbers = #tpu.dot_dimension_numbers<[1], [1], [0], [0], [0, 0, 1, 0], [], []>} : vector<8x128xbf16>, vector<128x128xbf16>, vector<8x128xf32> -> vector<8x128xf32>
    %c0_10 = arith.constant 0 : index
    %c0_11 = arith.constant 0 : index
    %8 = vector.load %arg5[%c0_10, %c0_11] : memref<8x128xf32, #tpu.memory_space<vmem>>, vector<8x128xf32>
    tpu.vector_store %arg5[%c0_10, %c0_11], %7 {strides = array<i32>} : memref<8x128xf32, #tpu.memory_space<vmem>>, vector<8x128xf32>,
    return
  }
  func.func @transform_0(%arg0: i32) -> (i32, i32) {
    %c0_i32 = arith.constant 0 : i32
    %c0_i32_0 = arith.constant 0 : i32
    return %arg0, %c0_i32 : i32, i32
  }
  func.func @transform_1(%arg0: i32) -> (i32, i32) {
    %c0_i32 = arith.constant 0 : i32
    %c0_i32_0 = arith.constant 0 : i32
    %c0_i32_1 = arith.constant 0 : i32
    return %c0_i32, %c0_i32_0 : i32, i32
  }
  func.func @transform_2(%arg0: i32) -> (i32, i32) {
    %c0_i32 = arith.constant 0 : i32
    %c0_i32_0 = arith.constant 0 : i32
    %c0_i32_1 = arith.constant 0 : i32
    return %c0_i32, %c0_i32_0 : i32, i32
  }
  func.func @transform_3(%arg0: i32) -> (i32, i32) {
    %c0_i32 = arith.constant 0 : i32
    %c0_i32_0 = arith.constant 0 : i32
    return %arg0, %c0_i32 : i32, i32
  }
  func.func @transform_4(%arg0: i32) -> (i32, i32) {
    %c0_i32 = arith.constant 0 : i32
    %c0_i32_0 = arith.constant 0 : i32
    return %c0_i32, %arg0 : i32, i32
  }
}

module attributes {stable_mosaic.version = 11 : i64} {
  func.func @_layer1_kernel(%arg0: i32, %arg1: memref<128x128xi8, #tpu.memory_space<vmem>>, %arg2: memref<128x128xbf16, #tpu.memory_space<vmem>>, %arg3: memref<8x128xf32, #tpu.memory_space<vmem>>, %arg4: memref<128x8xbf16, #tpu.memory_space<vmem>>, %arg5: memref<1x128xf32, #tpu.memory_space<vmem>>, %arg6: memref<128x128xbf16, #tpu.memory_space<vmem>>, %arg7: memref<128x128xbf16, #tpu.memory_space<vmem>>) attributes {dimension_semantics = [#tpu.dimension_semantics<parallel>], iteration_bounds = array<i64: 1>, scalar_prefetch = 0 : i64, scratch_operands = 0 : i64, tpu.core_type = #tpu.core_type<tc>, window_params = [{transform_indices = @transform_0, window_bounds = array<i64: 128, 128>}, {pipeline_mode = #tpu.pipeline_mode<synchronous>, transform_indices = @transform_1, window_bounds = array<i64: 128, 128>}, {pipeline_mode = #tpu.pipeline_mode<synchronous>, transform_indices = @transform_2, window_bounds = array<i64: 8, 128>}, {pipeline_mode = #tpu.pipeline_mode<synchronous>, transform_indices = @transform_3, window_bounds = array<i64: 128, 8>}, {pipeline_mode = #tpu.pipeline_mode<synchronous>, transform_indices = @transform_4, window_bounds = array<i64: 1, 128>}, {pipeline_mode = #tpu.pipeline_mode<synchronous>, transform_indices = @transform_5, window_bounds = array<i64: 128, 128>}, {transform_indices = @transform_6, window_bounds = array<i64: 128, 128>}]} {
    %c0 = arith.constant 0 : index
    %c0_0 = arith.constant 0 : index
    %0 = vector.load %arg1[%c0, %c0_0] : memref<128x128xi8, #tpu.memory_space<vmem>>, vector<128x128xi8>
    %1 = arith.sitofp %0 : vector<128x128xi8> to vector<128x128xf32>
    %cst = arith.constant 1.000000e+00 : f32
    %2 = vector.broadcast %cst : f32 to vector<128x128xf32>
    %3 = arith.subf %1, %2 : vector<128x128xf32>
    %cst_1 = arith.constant 1.000000e+30 : f32
    %4 = vector.broadcast %cst_1 : f32 to vector<128x128xf32>
    %5 = arith.mulf %3, %4 : vector<128x128xf32>
    %c128_i32 = arith.constant 128 : i32
    %6 = arith.muli %arg0, %c128_i32 : i32
    %7 = tpu.assume_multiple %6, 128 : i32
    %8 = arith.index_cast %7 : i32 to index
    %c0_2 = arith.constant 0 : index
    %9 = vector.load %arg2[%8, %c0_2] : memref<128x128xbf16, #tpu.memory_space<vmem>>, vector<128x128xbf16>
    %c0_3 = arith.constant 0 : index
    %c0_4 = arith.constant 0 : index
    %10 = vector.load %arg4[%c0_3, %c0_4] : memref<128x8xbf16, #tpu.memory_space<vmem>>, vector<128x8xbf16>
    %cst_5 = arith.constant dense<0.000000e+00> : vector<128x8xf32>
    %11 = tpu.matmul %9, %10, %cst_5 {dimension_numbers = #tpu.dot_dimension_numbers<[1], [0], [0], [1], [0, 0, 1, 1], [], []>} : vector<128x128xbf16>, vector<128x8xbf16>, vector<128x8xf32> -> vector<128x8xf32>
    %12 = vector.extract_strided_slice %11 {offsets = [0, 0], sizes = [128, 1], strides = [1, 1]} : vector<128x8xf32> to vector<128x1xf32>
    %c0_6 = arith.constant 0 : index
    %c0_7 = arith.constant 0 : index
    %13 = vector.load %arg3[%c0_6, %c0_7] : memref<8x128xf32, #tpu.memory_space<vmem>>, vector<1x128xf32>
    %14 = vector.broadcast %12 : vector<128x1xf32> to vector<128x128xf32>
    %15 = vector.broadcast %13 : vector<1x128xf32> to vector<128x128xf32>
    %16 = arith.addf %14, %15 : vector<128x128xf32>
    %cst_8 = arith.constant 0.000000e+00 : f32
    %17 = vector.broadcast %cst_8 : f32 to vector<128x128xf32>
    %18 = arith.maximumf %16, %17 : vector<128x128xf32>
    %cst_9 = arith.constant 0.000000e+00 : f32
    %19 = vector.broadcast %cst_9 : f32 to vector<128x128xf32>
    %20 = arith.minimumf %16, %19 : vector<128x128xf32>
    %cst_10 = arith.constant 2.000000e-01 : f32
    %21 = vector.broadcast %cst_10 : f32 to vector<128x128xf32>
    %22 = arith.mulf %21, %20 : vector<128x128xf32>
    %23 = arith.addf %18, %22 : vector<128x128xf32>
    %24 = arith.addf %23, %5 : vector<128x128xf32>
    %cst_11 = arith.constant dense<0xFF800000> : vector<128xf32>
    %25 = vector.multi_reduction <maximumf>, %24, %cst_11 [1] : vector<128x128xf32> to vector<128xf32>
    %26 = vector.shape_cast %25 : vector<128xf32> to vector<128x1xf32>
    %27 = vector.broadcast %26 : vector<128x1xf32> to vector<128x128xf32>
    %28 = arith.subf %24, %27 : vector<128x128xf32>
    %29 = math.exp %28 : vector<128x128xf32>
    %30 = arith.mulf %29, %1 : vector<128x128xf32>
    %cst_12 = arith.constant dense<0.000000e+00> : vector<128xf32>
    %31 = vector.multi_reduction <add>, %30, %cst_12 [1] : vector<128x128xf32> to vector<128xf32>
    %32 = vector.shape_cast %31 : vector<128xf32> to vector<128x1xf32>
    %33 = tpu.reciprocal %32 {approx = true} : vector<128x1xf32> -> vector<128x1xf32>
    %34 = vector.broadcast %33 : vector<128x1xf32> to vector<128x128xf32>
    %35 = arith.mulf %30, %34 : vector<128x128xf32>
    %36 = arith.truncf %35 : vector<128x128xf32> to vector<128x128xbf16>
    %c0_13 = arith.constant 0 : index
    %c0_14 = arith.constant 0 : index
    %37 = vector.load %arg2[%c0_13, %c0_14] : memref<128x128xbf16, #tpu.memory_space<vmem>>, vector<128x8xbf16>
    %cst_15 = arith.constant dense<0.000000e+00> : vector<128x8xf32>
    %38 = tpu.matmul %36, %37, %cst_15 {dimension_numbers = #tpu.dot_dimension_numbers<[1], [0], [0], [1], [0, 0, 1, 1], [], []>} : vector<128x128xbf16>, vector<128x8xbf16>, vector<128x8xf32> -> vector<128x8xf32>
    %c0_16 = arith.constant 0 : index
    %c0_17 = arith.constant 0 : index
    %39 = vector.load %arg5[%c0_16, %c0_17] : memref<1x128xf32, #tpu.memory_space<vmem>>, vector<1x8xf32>
    %40 = vector.broadcast %39 : vector<1x8xf32> to vector<128x8xf32>
    %41 = arith.addf %38, %40 : vector<128x8xf32>
    %cst_18 = arith.constant 0.000000e+00 : f32
    %42 = vector.broadcast %cst_18 : f32 to vector<128x8xf32>
    %43 = arith.maximumf %41, %42 : vector<128x8xf32>
    %44 = vector.extract_strided_slice %11 {offsets = [0, 1], sizes = [128, 1], strides = [1, 1]} : vector<128x8xf32> to vector<128x1xf32>
    %c1 = arith.constant 1 : index
    %c0_19 = arith.constant 0 : index
    %45 = vector.load %arg3[%c1, %c0_19] : memref<8x128xf32, #tpu.memory_space<vmem>>, vector<1x128xf32>
    %46 = vector.broadcast %44 : vector<128x1xf32> to vector<128x128xf32>
    %47 = vector.broadcast %45 : vector<1x128xf32> to vector<128x128xf32>
    %48 = arith.addf %46, %47 : vector<128x128xf32>
    %cst_20 = arith.constant 0.000000e+00 : f32
    %49 = vector.broadcast %cst_20 : f32 to vector<128x128xf32>
    %50 = arith.maximumf %48, %49 : vector<128x128xf32>
    %cst_21 = arith.constant 0.000000e+00 : f32
    %51 = vector.broadcast %cst_21 : f32 to vector<128x128xf32>
    %52 = arith.minimumf %48, %51 : vector<128x128xf32>
    %cst_22 = arith.constant 2.000000e-01 : f32
    %53 = vector.broadcast %cst_22 : f32 to vector<128x128xf32>
    %54 = arith.mulf %53, %52 : vector<128x128xf32>
    %55 = arith.addf %50, %54 : vector<128x128xf32>
    %56 = arith.addf %55, %5 : vector<128x128xf32>
    %cst_23 = arith.constant dense<0xFF800000> : vector<128xf32>
    %57 = vector.multi_reduction <maximumf>, %56, %cst_23 [1] : vector<128x128xf32> to vector<128xf32>
    %58 = vector.shape_cast %57 : vector<128xf32> to vector<128x1xf32>
    %59 = vector.broadcast %58 : vector<128x1xf32> to vector<128x128xf32>
    %60 = arith.subf %56, %59 : vector<128x128xf32>
    %61 = math.exp %60 : vector<128x128xf32>
    %62 = arith.mulf %61, %1 : vector<128x128xf32>
    %cst_24 = arith.constant dense<0.000000e+00> : vector<128xf32>
    %63 = vector.multi_reduction <add>, %62, %cst_24 [1] : vector<128x128xf32> to vector<128xf32>
    %64 = vector.shape_cast %63 : vector<128xf32> to vector<128x1xf32>
    %65 = tpu.reciprocal %64 {approx = true} : vector<128x1xf32> -> vector<128x1xf32>
    %66 = vector.broadcast %65 : vector<128x1xf32> to vector<128x128xf32>
    %67 = arith.mulf %62, %66 : vector<128x128xf32>
    %68 = arith.truncf %67 : vector<128x128xf32> to vector<128x128xbf16>
    %c0_25 = arith.constant 0 : index
    %c8 = arith.constant 8 : index
    %69 = vector.load %arg2[%c0_25, %c8] : memref<128x128xbf16, #tpu.memory_space<vmem>>, vector<128x8xbf16>
    %cst_26 = arith.constant dense<0.000000e+00> : vector<128x8xf32>
    %70 = tpu.matmul %68, %69, %cst_26 {dimension_numbers = #tpu.dot_dimension_numbers<[1], [0], [0], [1], [0, 0, 1, 1], [], []>} : vector<128x128xbf16>, vector<128x8xbf16>, vector<128x8xf32> -> vector<128x8xf32>
    %c0_27 = arith.constant 0 : index
    %c8_28 = arith.constant 8 : index
    %71 = vector.load %arg5[%c0_27, %c8_28] : memref<1x128xf32, #tpu.memory_space<vmem>>, vector<1x8xf32>
    %72 = vector.broadcast %71 : vector<1x8xf32> to vector<128x8xf32>
    %73 = arith.addf %70, %72 : vector<128x8xf32>
    %cst_29 = arith.constant 0.000000e+00 : f32
    %74 = vector.broadcast %cst_29 : f32 to vector<128x8xf32>
    %75 = arith.maximumf %73, %74 : vector<128x8xf32>
    %cst_30 = arith.constant 0.000000e+00 : f32
    %76 = vector.broadcast %cst_30 : f32 to vector<128x112xf32>
    %77 = tpu.concatenate %43, %75, %76 in 1 : vector<128x8xf32>, vector<128x8xf32>, vector<128x112xf32> -> vector<128x128xf32>
    %78 = arith.truncf %77 : vector<128x128xf32> to vector<128x128xbf16>
    %c0_31 = arith.constant 0 : index
    %c0_32 = arith.constant 0 : index
    %79 = vector.load %arg6[%c0_31, %c0_32] : memref<128x128xbf16, #tpu.memory_space<vmem>>, vector<128x128xbf16>
    %cst_33 = arith.constant dense<0.000000e+00> : vector<128x128xf32>
    %80 = tpu.matmul %78, %79, %cst_33 {dimension_numbers = #tpu.dot_dimension_numbers<[1], [0], [0], [1], [0, 0, 1, 1], [], []>} : vector<128x128xbf16>, vector<128x128xbf16>, vector<128x128xf32> -> vector<128x128xf32>
    %81 = arith.truncf %80 : vector<128x128xf32> to vector<128x128xbf16>
    %c0_34 = arith.constant 0 : index
    %c0_35 = arith.constant 0 : index
    %82 = vector.load %arg7[%c0_34, %c0_35] : memref<128x128xbf16, #tpu.memory_space<vmem>>, vector<128x128xbf16>
    tpu.vector_store %arg7[%c0_34, %c0_35], %81 {strides = array<i32>} : memref<128x128xbf16, #tpu.memory_space<vmem>>, vector<128x128xbf16>,
    return
  }
  func.func @transform_0(%arg0: i32) -> (i32, i32) {
    %c0_i32 = arith.constant 0 : i32
    %c0_i32_0 = arith.constant 0 : i32
    return %arg0, %c0_i32 : i32, i32
  }
  func.func @transform_1(%arg0: i32) -> (i32, i32) {
    %c0_i32 = arith.constant 0 : i32
    %c0_i32_0 = arith.constant 0 : i32
    %c0_i32_1 = arith.constant 0 : i32
    return %c0_i32, %c0_i32_0 : i32, i32
  }
  func.func @transform_2(%arg0: i32) -> (i32, i32) {
    %c0_i32 = arith.constant 0 : i32
    %c0_i32_0 = arith.constant 0 : i32
    %c0_i32_1 = arith.constant 0 : i32
    return %c0_i32, %c0_i32_0 : i32, i32
  }
  func.func @transform_3(%arg0: i32) -> (i32, i32) {
    %c0_i32 = arith.constant 0 : i32
    %c0_i32_0 = arith.constant 0 : i32
    %c0_i32_1 = arith.constant 0 : i32
    return %c0_i32, %c0_i32_0 : i32, i32
  }
  func.func @transform_4(%arg0: i32) -> (i32, i32) {
    %c0_i32 = arith.constant 0 : i32
    %c0_i32_0 = arith.constant 0 : i32
    %c0_i32_1 = arith.constant 0 : i32
    return %c0_i32, %c0_i32_0 : i32, i32
  }
  func.func @transform_5(%arg0: i32) -> (i32, i32) {
    %c0_i32 = arith.constant 0 : i32
    %c0_i32_0 = arith.constant 0 : i32
    %c0_i32_1 = arith.constant 0 : i32
    return %c0_i32, %c0_i32_0 : i32, i32
  }
  func.func @transform_6(%arg0: i32) -> (i32, i32) {
    %c0_i32 = arith.constant 0 : i32
    %c0_i32_0 = arith.constant 0 : i32
    return %arg0, %c0_i32 : i32, i32
  }
}

module attributes {stable_mosaic.version = 11 : i64} {
  func.func @_layer2_kernel(%arg0: i32, %arg1: memref<128x128xi8, #tpu.memory_space<vmem>>, %arg2: memref<128x128xbf16, #tpu.memory_space<vmem>>, %arg3: memref<1x128xbf16, #tpu.memory_space<vmem>>, %arg4: memref<128x1xbf16, #tpu.memory_space<vmem>>, %arg5: memref<1x128xf32, #tpu.memory_space<vmem>>, %arg6: memref<128x128xf32, #tpu.memory_space<vmem>>) attributes {dimension_semantics = [#tpu.dimension_semantics<parallel>], iteration_bounds = array<i64: 1>, scalar_prefetch = 0 : i64, scratch_operands = 0 : i64, tpu.core_type = #tpu.core_type<tc>, window_params = [{transform_indices = @transform_0, window_bounds = array<i64: 128, 128>}, {pipeline_mode = #tpu.pipeline_mode<synchronous>, transform_indices = @transform_1, window_bounds = array<i64: 128, 128>}, {pipeline_mode = #tpu.pipeline_mode<synchronous>, transform_indices = @transform_2, window_bounds = array<i64: 1, 128>}, {pipeline_mode = #tpu.pipeline_mode<synchronous>, transform_indices = @transform_3, window_bounds = array<i64: 128, 1>}, {pipeline_mode = #tpu.pipeline_mode<synchronous>, transform_indices = @transform_4, window_bounds = array<i64: 1, 128>}, {transform_indices = @transform_5, window_bounds = array<i64: 128, 128>}]} {
    %c0 = arith.constant 0 : index
    %c0_0 = arith.constant 0 : index
    %0 = vector.load %arg1[%c0, %c0_0] : memref<128x128xi8, #tpu.memory_space<vmem>>, vector<128x128xi8>
    %1 = arith.sitofp %0 : vector<128x128xi8> to vector<128x128xf32>
    %cst = arith.constant 1.000000e+00 : f32
    %2 = vector.broadcast %cst : f32 to vector<128x128xf32>
    %3 = arith.subf %1, %2 : vector<128x128xf32>
    %cst_1 = arith.constant 1.000000e+30 : f32
    %4 = vector.broadcast %cst_1 : f32 to vector<128x128xf32>
    %5 = arith.mulf %3, %4 : vector<128x128xf32>
    %c128_i32 = arith.constant 128 : i32
    %6 = arith.muli %arg0, %c128_i32 : i32
    %7 = tpu.assume_multiple %6, 128 : i32
    %8 = arith.index_cast %7 : i32 to index
    %c0_2 = arith.constant 0 : index
    %9 = vector.load %arg2[%8, %c0_2] : memref<128x128xbf16, #tpu.memory_space<vmem>>, vector<128x128xbf16>
    %c0_3 = arith.constant 0 : index
    %c0_4 = arith.constant 0 : index
    %10 = vector.load %arg4[%c0_3, %c0_4] : memref<128x1xbf16, #tpu.memory_space<vmem>>, vector<128x1xbf16>
    %cst_5 = arith.constant dense<0.000000e+00> : vector<128x1xf32>
    %11 = tpu.matmul %9, %10, %cst_5 {dimension_numbers = #tpu.dot_dimension_numbers<[1], [0], [0], [1], [0, 0, 1, 1], [], []>} : vector<128x128xbf16>, vector<128x1xbf16>, vector<128x1xf32> -> vector<128x1xf32>
    %c0_6 = arith.constant 0 : index
    %c0_7 = arith.constant 0 : index
    %12 = vector.load %arg3[%c0_6, %c0_7] : memref<1x128xbf16, #tpu.memory_space<vmem>>, vector<1x128xbf16>
    %c0_8 = arith.constant 0 : index
    %c0_9 = arith.constant 0 : index
    %13 = vector.load %arg2[%c0_8, %c0_9] : memref<128x128xbf16, #tpu.memory_space<vmem>>, vector<128x128xbf16>
    %cst_10 = arith.constant dense<0.000000e+00> : vector<1x128xf32>
    %14 = tpu.matmul %12, %13, %cst_10 {dimension_numbers = #tpu.dot_dimension_numbers<[1], [1], [0], [0], [0, 0, 1, 0], [], []>} : vector<1x128xbf16>, vector<128x128xbf16>, vector<1x128xf32> -> vector<1x128xf32>
    %15 = vector.broadcast %11 : vector<128x1xf32> to vector<128x128xf32>
    %16 = vector.broadcast %14 : vector<1x128xf32> to vector<128x128xf32>
    %17 = arith.addf %15, %16 : vector<128x128xf32>
    %cst_11 = arith.constant 0.000000e+00 : f32
    %18 = vector.broadcast %cst_11 : f32 to vector<128x128xf32>
    %19 = arith.maximumf %17, %18 : vector<128x128xf32>
    %cst_12 = arith.constant 0.000000e+00 : f32
    %20 = vector.broadcast %cst_12 : f32 to vector<128x128xf32>
    %21 = arith.minimumf %17, %20 : vector<128x128xf32>
    %cst_13 = arith.constant 2.000000e-01 : f32
    %22 = vector.broadcast %cst_13 : f32 to vector<128x128xf32>
    %23 = arith.mulf %22, %21 : vector<128x128xf32>
    %24 = arith.addf %19, %23 : vector<128x128xf32>
    %25 = arith.addf %24, %5 : vector<128x128xf32>
    %cst_14 = arith.constant dense<0xFF800000> : vector<128xf32>
    %26 = vector.multi_reduction <maximumf>, %25, %cst_14 [1] : vector<128x128xf32> to vector<128xf32>
    %27 = vector.shape_cast %26 : vector<128xf32> to vector<128x1xf32>
    %28 = vector.broadcast %27 : vector<128x1xf32> to vector<128x128xf32>
    %29 = arith.subf %25, %28 : vector<128x128xf32>
    %30 = math.exp %29 : vector<128x128xf32>
    %31 = arith.mulf %30, %1 : vector<128x128xf32>
    %cst_15 = arith.constant dense<0.000000e+00> : vector<128xf32>
    %32 = vector.multi_reduction <add>, %31, %cst_15 [1] : vector<128x128xf32> to vector<128xf32>
    %33 = vector.shape_cast %32 : vector<128xf32> to vector<128x1xf32>
    %34 = tpu.reciprocal %33 {approx = true} : vector<128x1xf32> -> vector<128x1xf32>
    %35 = vector.broadcast %34 : vector<128x1xf32> to vector<128x128xf32>
    %36 = arith.mulf %31, %35 : vector<128x128xf32>
    %37 = arith.truncf %36 : vector<128x128xf32> to vector<128x128xbf16>
    %c0_16 = arith.constant 0 : index
    %c0_17 = arith.constant 0 : index
    %38 = vector.load %arg2[%c0_16, %c0_17] : memref<128x128xbf16, #tpu.memory_space<vmem>>, vector<128x128xbf16>
    %cst_18 = arith.constant dense<0.000000e+00> : vector<128x128xf32>
    %39 = tpu.matmul %37, %38, %cst_18 {dimension_numbers = #tpu.dot_dimension_numbers<[1], [0], [0], [1], [0, 0, 1, 1], [], []>} : vector<128x128xbf16>, vector<128x128xbf16>, vector<128x128xf32> -> vector<128x128xf32>
    %c0_19 = arith.constant 0 : index
    %c0_20 = arith.constant 0 : index
    %40 = vector.load %arg5[%c0_19, %c0_20] : memref<1x128xf32, #tpu.memory_space<vmem>>, vector<1x128xf32>
    %41 = vector.broadcast %40 : vector<1x128xf32> to vector<128x128xf32>
    %42 = arith.addf %39, %41 : vector<128x128xf32>
    %43 = tpu.iota {dimensions = array<i32: 1>} : vector<128x128xi32>
    %c3_i32 = arith.constant 3 : i32
    %44 = vector.broadcast %c3_i32 : i32 to vector<128x128xi32>
    %45 = arith.cmpi slt, %43, %44 : vector<128x128xi32>
    %cst_21 = arith.constant -1.000000e+30 : f32
    %46 = vector.broadcast %cst_21 : f32 to vector<128x128xf32>
    %47 = arith.select %45, %42, %46 : vector<128x128xi1>, vector<128x128xf32>
    %cst_22 = arith.constant dense<0xFF800000> : vector<128xf32>
    %48 = vector.multi_reduction <maximumf>, %47, %cst_22 [1] : vector<128x128xf32> to vector<128xf32>
    %49 = vector.shape_cast %48 : vector<128xf32> to vector<128x1xf32>
    %50 = vector.broadcast %49 : vector<128x1xf32> to vector<128x128xf32>
    %51 = arith.subf %47, %50 : vector<128x128xf32>
    %52 = math.exp %51 : vector<128x128xf32>
    %53 = arith.extui %45 : vector<128x128xi1> to vector<128x128xi32>
    %54 = arith.sitofp %53 : vector<128x128xi32> to vector<128x128xf32>
    %55 = arith.mulf %52, %54 : vector<128x128xf32>
    %cst_23 = arith.constant dense<0.000000e+00> : vector<128xf32>
    %56 = vector.multi_reduction <add>, %55, %cst_23 [1] : vector<128x128xf32> to vector<128xf32>
    %57 = vector.shape_cast %56 : vector<128xf32> to vector<128x1xf32>
    %cst_24 = arith.constant 1.000000e-30 : f32
    %58 = vector.broadcast %cst_24 : f32 to vector<128x1xf32>
    %59 = arith.maximumf %57, %58 : vector<128x1xf32>
    %60 = tpu.reciprocal %59 {approx = true} : vector<128x1xf32> -> vector<128x1xf32>
    %61 = vector.broadcast %60 : vector<128x1xf32> to vector<128x128xf32>
    %62 = arith.mulf %55, %61 : vector<128x128xf32>
    %c3_i32_25 = arith.constant 3 : i32
    %63 = vector.broadcast %c3_i32_25 : i32 to vector<128x128xi32>
    %64 = arith.cmpi sge, %43, %63 : vector<128x128xi32>
    %c6_i32 = arith.constant 6 : i32
    %65 = vector.broadcast %c6_i32 : i32 to vector<128x128xi32>
    %66 = arith.cmpi slt, %43, %65 : vector<128x128xi32>
    %67 = arith.andi %64, %66 : vector<128x128xi1>
    %cst_26 = arith.constant -1.000000e+30 : f32
    %68 = vector.broadcast %cst_26 : f32 to vector<128x128xf32>
    %69 = arith.select %67, %42, %68 : vector<128x128xi1>, vector<128x128xf32>
    %cst_27 = arith.constant dense<0xFF800000> : vector<128xf32>
    %70 = vector.multi_reduction <maximumf>, %69, %cst_27 [1] : vector<128x128xf32> to vector<128xf32>
    %71 = vector.shape_cast %70 : vector<128xf32> to vector<128x1xf32>
    %72 = vector.broadcast %71 : vector<128x1xf32> to vector<128x128xf32>
    %73 = arith.subf %69, %72 : vector<128x128xf32>
    %74 = math.exp %73 : vector<128x128xf32>
    %75 = arith.extui %67 : vector<128x128xi1> to vector<128x128xi32>
    %76 = arith.sitofp %75 : vector<128x128xi32> to vector<128x128xf32>
    %77 = arith.mulf %74, %76 : vector<128x128xf32>
    %cst_28 = arith.constant dense<0.000000e+00> : vector<128xf32>
    %78 = vector.multi_reduction <add>, %77, %cst_28 [1] : vector<128x128xf32> to vector<128xf32>
    %79 = vector.shape_cast %78 : vector<128xf32> to vector<128x1xf32>
    %cst_29 = arith.constant 1.000000e-30 : f32
    %80 = vector.broadcast %cst_29 : f32 to vector<128x1xf32>
    %81 = arith.maximumf %79, %80 : vector<128x1xf32>
    %82 = tpu.reciprocal %81 {approx = true} : vector<128x1xf32> -> vector<128x1xf32>
    %83 = vector.broadcast %82 : vector<128x1xf32> to vector<128x128xf32>
    %84 = arith.mulf %77, %83 : vector<128x128xf32>
    %85 = arith.addf %62, %84 : vector<128x128xf32>
    %c0_30 = arith.constant 0 : index
    %c0_31 = arith.constant 0 : index
    %86 = vector.load %arg6[%c0_30, %c0_31] : memref<128x128xf32, #tpu.memory_space<vmem>>, vector<128x128xf32>
    tpu.vector_store %arg6[%c0_30, %c0_31], %85 {strides = array<i32>} : memref<128x128xf32, #tpu.memory_space<vmem>>, vector<128x128xf32>,
    return
  }
  func.func @transform_0(%arg0: i32) -> (i32, i32) {
    %c0_i32 = arith.constant 0 : i32
    %c0_i32_0 = arith.constant 0 : i32
    return %arg0, %c0_i32 : i32, i32
  }
  func.func @transform_1(%arg0: i32) -> (i32, i32) {
    %c0_i32 = arith.constant 0 : i32
    %c0_i32_0 = arith.constant 0 : i32
    %c0_i32_1 = arith.constant 0 : i32
    return %c0_i32, %c0_i32_0 : i32, i32
  }
  func.func @transform_2(%arg0: i32) -> (i32, i32) {
    %c0_i32 = arith.constant 0 : i32
    %c0_i32_0 = arith.constant 0 : i32
    %c0_i32_1 = arith.constant 0 : i32
    return %c0_i32, %c0_i32_0 : i32, i32
  }
  func.func @transform_3(%arg0: i32) -> (i32, i32) {
    %c0_i32 = arith.constant 0 : i32
    %c0_i32_0 = arith.constant 0 : i32
    %c0_i32_1 = arith.constant 0 : i32
    return %c0_i32, %c0_i32_0 : i32, i32
  }
  func.func @transform_4(%arg0: i32) -> (i32, i32) {
    %c0_i32 = arith.constant 0 : i32
    %c0_i32_0 = arith.constant 0 : i32
    %c0_i32_1 = arith.constant 0 : i32
    return %c0_i32, %c0_i32_0 : i32, i32
  }
  func.func @transform_5(%arg0: i32) -> (i32, i32) {
    %c0_i32 = arith.constant 0 : i32
    %c0_i32_0 = arith.constant 0 : i32
    return %arg0, %c0_i32 : i32, i32
  }
}

</mosaic_0001>

<bundles_post_ra>
// kernel: gat_forward.3
= control target key start
LH: loop header
LB: loop body
LE: loop exit
PB: predicated region body
PF: predicated region fallthrough
CT: control target
= control target key end

     0   :  { %v642_v0 = vmov 0.0   ;;  %vm643_vm0 = vmmov 0   ;;  %s771_s0 = inlined_call_operand.vmem [shape: bf16[128,128], index: 0, kind: input, shape index: {}]   ;;  %s772_s1 = inlined_call_operand.vmem [shape: bf16[128,128], index: 1, kind: input, shape index: {}]   ;;  %s773_s2 = inlined_call_operand.vmem [shape: bf16[8,128], index: 2, kind: input, shape index: {}]   ;;  %s774_s3 = inlined_call_operand.vmem [shape: bf16[128,128], index: 3, kind: output, shape index: {0}]   ;;  %s775_s4 = inlined_call_operand.vmem [shape: f32[8,128], index: 4, kind: output, shape index: {1}]  }
   0x1   :  { %596 = vmatprep.subr.bf16.mxu1 %v642_v0  ;;  %v618_v1 = vld [vmem:[%s771_s0] sm:$0xff]   ;;  %612 = vmatprep.mubr.msk.bf16.mxu1 %vm643_vm0, %v642_v0  ;;  %v620_v3 = vld [vmem:[%s772_s1 + $0x8] sm:$0xff]   ;;  %v622_v4 = vld [vmem:[%s772_s1 + $0x10] sm:$0xff]  }
   0x2   :  { %v619_v2 = vld [vmem:[%s772_s1] sm:$0xff]   ;;  %597 = vmatpush3.bf16.xpose.msra.mxu1 %v618_v1  ;;  %v621_v5 = vld [vmem:[%s771_s0 + $0x8] sm:$0xff]   ;;  %v623_v6 = vld [vmem:[%s772_s1 + $0x18] sm:$0xff]  }
   0x3   :  { %564 = vmatprep.subr.bf16.mxu0 %v619_v2  ;;  %598 = vmatprep.subr.bf16.mxu1 %v642_v0  ;;  %v630_v7 = vld [vmem:[%s771_s0] sm:$0xff]   ;;  %v624_v9 = vld [vmem:[%s771_s0 + $0x10] sm:$0xff]   ;;  %v626_v10 = vld [vmem:[%s772_s1 + $0x28] sm:$0xff]  }
   0x4   :  { %565 = vmatpush3.bf16.msra.mxu0 %v619_v2  ;;  %v625_v8 = vld [vmem:[%s772_s1 + $0x20] sm:$0xff]   ;;  %580 = vmatprep.mubr.bf16.mxu0 %v630_v7  ;;  %v628_v11 = vld [vmem:[%s772_s1 + $0x30] sm:$0xff]   ;;  %v627_v12 = vld [vmem:[%s771_s0 + $0x18] sm:$0xff]  }
   0x5   :  { %566 = vmatprep.subr.bf16.mxu0 %v620_v3  ;;  %v629_v13 = vld [vmem:[%s772_s1 + $0x38] sm:$0xff]   ;;  %v631_v14 = vld [vmem:[%s771_s0 + $0x20] sm:$0xff]   ;;  %v632_v15 = vld [vmem:[%s771_s0 + $0x8] sm:$0xff]  }
   0x6   :  { %v633_v16 = vld [vmem:[%s771_s0 + $0x10] sm:$0xff]   ;;  %v634_v17 = vld [vmem:[%s771_s0 + $0x28] sm:$0xff]   ;;  %v635_v18 = vld [vmem:[%s771_s0 + $0x18] sm:$0xff]  }
   0x7   :  { %v636_v19 = vld [vmem:[%s771_s0 + $0x20] sm:$0xff]   ;;  %v637_v20 = vld [vmem:[%s771_s0 + $0x30] sm:$0xff]   ;;  %v638_v21 = vld [vmem:[%s771_s0 + $0x28] sm:$0xff]  }
   0x8   :  { %567 = vmatpush3.bf16.msra.mxu0 %v620_v3  ;;  %v639_v22 = vld [vmem:[%s771_s0 + $0x30] sm:$0xff]   ;;  %v640_v23 = vld [vmem:[%s771_s0 + $0x38] sm:$0xff]   ;;  %v322_v25 = vld [vmem:[%s773_s2] sm:$0xf] }
   0x9   :  { %568 = vmatprep.subr.bf16.mxu0 %v622_v4  ;;  %v641_v24 = vld [vmem:[%s771_s0 + $0x38] sm:$0xff]  }
   0xa   :  { %599 = vmatpush3.bf16.xpose.msra.mxu1 %v621_v5 }
   0xb   :  { %600 = vmatprep.subr.bf16.mxu1 %v642_v0 }
   0xc   :  { %569 = vmatpush3.bf16.msra.mxu0 %v622_v4 }
   0xd   :  { %570 = vmatprep.subr.bf16.mxu0 %v623_v6 }
  0x10   :  { %571 = vmatpush3.bf16.msra.mxu0 %v623_v6 }
  0x11   :  { %572 = vmatprep.subr.bf16.mxu0 %v625_v8 }
  0x12   :  { %601 = vmatpush3.bf16.xpose.msra.mxu1 %v624_v9 }
  0x13   :  { %602 = vmatprep.subr.bf16.mxu1 %v642_v0 }
  0x14   :  { %573 = vmatpush3.bf16.msra.mxu0 %v625_v8 }
  0x15   :  { %574 = vmatprep.subr.bf16.mxu0 %v626_v10 }
  0x18   :  { %575 = vmatpush3.bf16.msra.mxu0 %v626_v10 }
  0x19   :  { %576 = vmatprep.subr.bf16.mxu0 %v628_v11 }
  0x1a   :  { %603 = vmatpush3.bf16.xpose.msra.mxu1 %v627_v12 }
  0x1b   :  { %604 = vmatprep.subr.bf16.mxu1 %v642_v0 }
  0x1c   :  { %577 = vmatpush3.bf16.msra.mxu0 %v628_v11 }
  0x1d   :  { %578 = vmatprep.subr.bf16.mxu0 %v629_v13 }
  0x20   :  { %579 = vmatpush3.bf16.msra.mxu0 %v629_v13 }
  0x22   :  { %605 = vmatpush3.bf16.xpose.msra.mxu1 %v631_v14 }
  0x23   :  { %581 = vmatmul.mubr.bf16.vlgmr.msra.gmra.mrb[0].mxu0 %v632_v15  ;;  %606 = vmatprep.subr.bf16.mxu1 %v642_v0 }
  0x24   :  { %584 = vmatprep.mubr.bf16.mxu0 %v633_v16 }
  0x2a   :  { %607 = vmatpush3.bf16.xpose.msra.mxu1 %v634_v17 }
  0x2b   :  { %585 = vmatmul.mubr.bf16.gmra.mrb[4].mxu0 %v635_v18  ;;  %608 = vmatprep.subr.bf16.mxu1 %v642_v0 }
  0x2c   :  { %588 = vmatprep.mubr.bf16.mxu0 %v636_v19 }
  0x32   :  { %609 = vmatpush3.bf16.xpose.msra.mxu1 %v637_v20 }
  0x33   :  { %589 = vmatmul.mubr.bf16.gmra.mrb[8].mxu0 %v638_v21  ;;  %610 = vmatprep.subr.bf16.mxu1 %v642_v0 }
  0x34   :  { %592 = vmatprep.mubr.bf16.mxu0 %v639_v22 }
  0x3a   :  { %611 = vmatpush3.bf16.xpose.msra.mxu1 %v640_v23 }
  0x3b   :  { %593 = vmatmul.mubr.bf16.gmra.mrb[12].mxu0 %v641_v24 }
  0x41   :  { %613 = vmatmul.mubr.bf16.vlgmr.msra.gmra.mrb[0].mxu1 %v322_v25 }
  0xf6   :  { %v582_v26 = vpop.f32.mrb[0].mxu0 }
  0xf7   :  { %v179_v27 = vpop.f32.mrb[1].mxu0 }
  0xf8   :  { %v583_v28 = vpop.f32.mrb[2].mxu0 }
  0xf9   :  { %v500_v29 = vpack.c.bf16 %v583_v28, %v582_v26  ;;  %v182_v30 = vpop.f32.mrb[3].mxu0 }
  0xfa   :  { %v495_v31 = vpack.c.bf16 %v182_v30, %v179_v27 }
  0xfb   :  { %532 = vst [vmem:[%s774_s3 + $0x8] sm:$0xff] %v500_v29  }
  0xfc   :  { %496 = vst [vmem:[%s774_s3] sm:$0xff] %v495_v31  }
  0xfe   :  { %v586_v32 = vpop.f32.mrb[4].mxu0 }
  0xff   :  { %v195_v33 = vpop.f32.mrb[5].mxu0 }
 0x100   :  { %v587_v34 = vpop.f32.mrb[6].mxu0 }
 0x101   :  { %v510_v35 = vpack.c.bf16 %v587_v34, %v586_v32  ;;  %v198_v36 = vpop.f32.mrb[7].mxu0 }
 0x102   :  { %v505_v37 = vpack.c.bf16 %v198_v36, %v195_v33 }
 0x103   :  { %534 = vst [vmem:[%s774_s3 + $0x18] sm:$0xff] %v510_v35  }
 0x104   :  { %533 = vst [vmem:[%s774_s3 + $0x10] sm:$0xff] %v505_v37  }
 0x106   :  { %v590_v38 = vpop.f32.mrb[8].mxu0 }
 0x107   :  { %v211_v39 = vpop.f32.mrb[9].mxu0 }
 0x108   :  { %v591_v40 = vpop.f32.mrb[10].mxu0 }
 0x109   :  { %v520_v41 = vpack.c.bf16 %v591_v40, %v590_v38  ;;  %v214_v42 = vpop.f32.mrb[11].mxu0 }
 0x10a   :  { %v515_v43 = vpack.c.bf16 %v214_v42, %v211_v39 }
 0x10b   :  { %536 = vst [vmem:[%s774_s3 + $0x28] sm:$0xff] %v520_v41  }
 0x10c   :  { %535 = vst [vmem:[%s774_s3 + $0x20] sm:$0xff] %v515_v43  }
 0x10e   :  { %v594_v44 = vpop.f32.mrb[12].mxu0 }
 0x10f   :  { %v227_v45 = vpop.f32.mrb[13].mxu0 }
 0x110   :  { %v595_v46 = vpop.f32.mrb[14].mxu0 }
 0x111   :  { %v530_v47 = vpack.c.bf16 %v595_v46, %v594_v44  ;;  %v230_v48 = vpop.f32.mrb[15].mxu0 }
 0x112   :  { %v525_v49 = vpack.c.bf16 %v230_v48, %v227_v45 }
 0x113   :  { %538 = vst [vmem:[%s774_s3 + $0x38] sm:$0xff] %v530_v47  }
 0x114   :  { %537 = vst [vmem:[%s774_s3 + $0x30] sm:$0xff] %v525_v49   ;;  %v421_v50 = vpop.f32.mrb[0].mxu1 }
 0x115   :  { %427 = vst [vmem:[%s775_s4] sm:$0xff] %v421_v50  ;;  %v614_v51 = vpop.f32.mrb[1].mxu1 }
 0x116   :  { %v424_v52 = vpop.f32.mrb[2].mxu1 }
 0x117   :  { %v615_v53 = vpop.f32.mrb[3].mxu1 }

// kernel: gat_forward.4
= control target key start
LH: loop header
LB: loop body
LE: loop exit
PB: predicated region body
PF: predicated region fallthrough
CT: control target
= control target key end

     0   :  { %v2301_v1 = vmov 1   ;;  %s2302_s17 = smov 120   ;;  %v2303_v27 = vmov 0   ;;  %s2304_s23 = smov 8   ;;  %vm1404_vm0 = vcmask 64512   ;;  %vm1421_vm1 = vcmask 130048   ;;  %s3028_s3 = inlined_call_operand.vmem [shape: bf16[128,8], index: 3, kind: input, shape index: {}]   ;;  %s3029_s1 = inlined_call_operand.vmem [shape: bf16[128,128], index: 1, kind: input, shape index: {}]   ;;  %s3030_s0 = inlined_call_operand.vmem [shape: s8[128,128], index: 0, kind: input, shape index: {}]   ;;  %s3031_s2 = inlined_call_operand.vmem [shape: f32[8,128], index: 2, kind: input, shape index: {}]   ;;  %s3032_s4 = inlined_call_operand.vmem [shape: f32[1,128], index: 4, kind: input, shape index: {}]   ;;  %s3033_s5 = inlined_call_operand.vmem [shape: bf16[128,128], index: 5, kind: input, shape index: {}]   ;;  %s3034_s6 = inlined_call_operand.vmem [shape: bf16[128,128], index: 6, kind: output, shape index: {}]  }
   0x1   :  { %v2141_v0 = vld [vmem:[%s3028_s3] sm:$0xff]   ;;  %2082 = vset.pattern.permute.xlu1 %v2301_v1  ;;  %2084 = vset.pattern.permute.xlu0 %v2301_v1  ;;  %v2142_v2 = vld [vmem:[%s3028_s3 + $0x8] sm:$0xff]   ;;  %v2143_v3 = vld [vmem:[%s3028_s3 + $0x10] sm:$0xff]  }
   0x2   :  { %1943 = vmatprep.subr.bf16.mxu0 %v2141_v0  ;;  %v2144_v4 = vld [vmem:[%s3028_s3 + $0x18] sm:$0xff]   ;;  %v2149_v5 = vld [vmem:[%s3029_s1] sm:$0xff]   ;;  %v2146_v7 = vld [vmem:[%s3028_s3 + $0x28] sm:$0xff]  }
   0x3   :  { %1944 = vmatpush3.bf16.msra.mxu0 %v2141_v0  ;;  %1959 = vmatprep.mubr.bf16.mxu0 %v2149_v5  ;;  %v2145_v6 = vld [vmem:[%s3028_s3 + $0x20] sm:$0xff]   ;;  %v2158_v9 = vld [vmem:[%s3029_s1 + $0x8] sm:$0xff]   ;;  %v2147_v10 = vld [vmem:[%s3028_s3 + $0x30] sm:$0xff]  }
   0x4   :  { %1945 = vmatprep.subr.bf16.mxu0 %v2142_v2  ;;  %v2157_v8 = vld [vmem:[%s3029_s1] sm:$0xff]   ;;  %v2159_v11 = vld [vmem:[%s3029_s1 + $0x10] sm:$0xff]   ;;  %1202 = vrot.lane.b32.xlu1 %v2158_v9, %s2302_s17  ;;  %v2148_v12 = vld [vmem:[%s3028_s3 + $0x38] sm:$0xff]  }
   0x5   :  { %1200 = vrot.lane.b32.xlu0 %v2157_v8, %s2302_s17  ;;  %1975 = vmatprep.subr.bf16.mxu1 %v2157_v8  ;;  %v2150_v13 = vld [vmem:[%s3029_s1 + $0x8] sm:$0xff]   ;;  %v2151_v14 = vld [vmem:[%s3029_s1 + $0x10] sm:$0xff]   ;;  %v2152_v15 = vld [vmem:[%s3029_s1 + $0x18] sm:$0xff]  }
   0x6   :  { %1976 = vmatpush3.bf16.msra.mxu1 %v2157_v8  ;;  %v2153_v16 = vld [vmem:[%s3029_s1 + $0x20] sm:$0xff]   ;;  %v2154_v17 = vld [vmem:[%s3029_s1 + $0x28] sm:$0xff]   ;;  %v2155_v18 = vld [vmem:[%s3029_s1 + $0x30] sm:$0xff]  }
   0x7   :  { %1946 = vmatpush3.bf16.msra.mxu0 %v2142_v2  ;;  %1977 = vmatprep.subr.bf16.mxu1 %v2158_v9  ;;  %v2156_v19 = vld [vmem:[%s3029_s1 + $0x38] sm:$0xff]   ;;  %v2418_v41 = vld [vmem:[%s3029_s1 + $0x20] sm:$0xff]   ;;  %v2458_v58 = vld [vmem:[%s3029_s1 + $0x28] sm:$0xff]  }
   0x8   :  { %1947 = vmatprep.subr.bf16.mxu0 %v2143_v3  ;;  %v2413_v40 = vld [vmem:[%s3029_s1 + $0x18] sm:$0xff]   ;;  %v2427_v42 = vld [vmem:[%s3030_s0 + $0x4] sm:$0xff]   ;;  %v2443_v48 = vld [vmem:[%s3031_s2 + $0x1] ss:$0 sm:$0xff] }
   0x9   :  { %1204 = vrot.lane.b32.xlu0 %v2159_v11, %s2302_s17  ;;  %v2432_v43 = vld [vmem:[%s3030_s0] ss:$28 sps:$4 sm:$0xff]   ;;  %v1853_v44 = vunpack.c.0.s8 %v2427_v42  ;;  %v1854_v55 = vunpack.c.1.s8 %v2427_v42  ;;  %vm2960_vm2 = vmpackc.low %vm1421_vm1, %vm1421_vm1 }
   0xa   :  { %1978 = vmatpush3.bf16.msra.mxu1 %v2158_v9  ;;  %v1849_v45 = vunpack.c.0.s8 %v2432_v43  ;;  %v2453_v57 = vld [vmem:[%s3031_s2] ss:$0 sm:$0xff] }
   0xb   :  { %1948 = vmatpush3.bf16.msra.mxu0 %v2143_v3  ;;  %1979 = vmatprep.subr.bf16.mxu1 %v2159_v11  ;;  %v2436_v46 = vcvt.s32.f32 %v1853_v44  ;;  %v2462_v5 = vcvt.s32.f32 %v1854_v55 }
   0xc   :  { %1949 = vmatprep.subr.bf16.mxu0 %v2144_v4  ;;  %v2438_v47 = vcvt.s32.f32 %v1849_v45 }
   0xd   :  { %v1695_v50 = vadd.f32 -1.0, %v2436_v46 }
   0xe   :  { %1980 = vmatpush3.bf16.msra.mxu1 %v2159_v11  ;;  %v1693_v53 = vadd.f32 -1.0, %v2438_v47 }
   0xf   :  { %1950 = vmatpush3.bf16.msra.mxu0 %v2144_v4  ;;  %1981 = vmatprep.subr.bf16.mxu1 %v2413_v40  ;;  %v90_v60 = vmul.f32 1e+30, %v1695_v50 }
  0x10   :  { %1951 = vmatprep.subr.bf16.mxu0 %v2145_v6  ;;  %v88_v0 = vmul.f32 1e+30, %v1693_v53 }
  0x12   :  { %1982 = vmatpush3.bf16.msra.mxu1 %v2413_v40 }
  0x13   :  { %1952 = vmatpush3.bf16.msra.mxu0 %v2145_v6  ;;  %1983 = vmatprep.subr.bf16.mxu1 %v2418_v41 }
  0x14   :  { %1953 = vmatprep.subr.bf16.mxu0 %v2146_v7 }
  0x16   :  { %1984 = vmatpush3.bf16.msra.mxu1 %v2418_v41 }
  0x17   :  { %1954 = vmatpush3.bf16.msra.mxu0 %v2146_v7  ;;  %1985 = vmatprep.subr.bf16.mxu1 %v2458_v58 }
  0x18   :  { %1955 = vmatprep.subr.bf16.mxu0 %v2147_v10 }
  0x1a   :  { %1986 = vmatpush3.bf16.msra.mxu1 %v2458_v58 }
  0x1b   :  { %1956 = vmatpush3.bf16.msra.mxu0 %v2147_v10 }
  0x1c   :  { %1957 = vmatprep.subr.bf16.mxu0 %v2148_v12 }
  0x1f   :  { %1958 = vmatpush3.bf16.msra.mxu0 %v2148_v12  ;;  %v1850_v12 = vunpack.c.1.s8 %v2432_v43 }
  0x22   :  { %1960 = vmatmul.mubr.bf16.vlgmr.msra.gmra.mrb[0].mxu0 %v2150_v13 }
  0x23   :  { %1963 = vmatprep.mubr.bf16.mxu0 %v2151_v14 }
  0x2a   :  { %1964 = vmatmul.mubr.bf16.gmra.mrb[4].mxu0 %v2152_v15 }
  0x2b   :  { %1967 = vmatprep.mubr.bf16.mxu0 %v2153_v16 }
  0x32   :  { %1968 = vmatmul.mubr.bf16.gmra.mrb[8].mxu0 %v2154_v17 }
  0x33   :  { %1971 = vmatprep.mubr.bf16.mxu0 %v2155_v18  ;;  %v1696_v18 = vadd.f32 -1.0, %v2462_v5 }
  0x3a   :  { %1972 = vmatmul.mubr.bf16.gmra.mrb[12].mxu0 %v2156_v19  ;;  %v2475_v19 = vld [vmem:[%s3030_s0 + $0xc] sm:$0xff]  }
  0x76   :  { %v1203_v21 = vpop.permute.xlu1 %1202 }
  0x77   :  { %v1201_v20 = vpop.permute.xlu0 %1200 }
  0x78   :  { %2007 = vmatprep.subr.bf16.mxu0 %v1201_v20 }
  0x79   :  { %2008 = vmatpush3.bf16.msra.mxu0 %v1201_v20 }
  0x7a   :  { %2009 = vmatprep.subr.bf16.mxu0 %v1203_v21 }
  0x7b   :  { %v1205_v22 = vpop.permute.xlu0 %1204 }
  0x7d   :  { %2010 = vmatpush3.bf16.msra.mxu0 %v1203_v21 }
  0x7e   :  { %2011 = vmatprep.subr.bf16.mxu0 %v1205_v22 }
  0x81   :  { %2012 = vmatpush3.bf16.msra.mxu0 %v1205_v22 }
  0xf5   :  { %v1961_v23 = vpop.f32.mrb[0].mxu0 }
  0xf6   :  { %877 = vperm.xlu1 %2082, %v1961_v23   ;;  %v271_v24 = vpop.f32.mrb[1].mxu0 }
  0xf7   :  { %869 = vperm.xlu0 %2084, %v271_v24   ;;  %v1962_v25 = vpop.f32.mrb[2].mxu0 }
  0xf8   :  { %v274_v26 = vpop.f32.mrb[3].mxu0 }
  0xfa   :  { %2083 = vset.pattern.permute.xlu1 %v2303_v27 }
  0xfb   :  { %347 = vperm.xlu1 %2083, %v1961_v23   ;;  %2085 = vset.pattern.permute.xlu0 %v2303_v27 }
  0xfc   :  { %337 = vperm.xlu0 %2085, %v271_v24  }
  0xfd   :  { %v1965_v28 = vpop.f32.mrb[4].mxu0 }
  0xfe   :  { %v287_v29 = vpop.f32.mrb[5].mxu0 }
  0xff   :  { %2086 = vset.pattern.permute.xlu1 %v2301_v1  ;;  %v1966_v30 = vpop.f32.mrb[6].mxu0 }
 0x100   :  { %352 = vperm.xlu0 %2085, %v1962_v25   ;;  %881 = vperm.xlu1 %2086, %v1962_v25   ;;  %v290_v31 = vpop.f32.mrb[7].mxu0 }
 0x104   :  { %2087 = vset.pattern.permute.xlu0 %v2301_v1  ;;  %2088 = vset.pattern.permute.xlu1 %v2303_v27 }
 0x105   :  { %342 = vperm.xlu1 %2088, %v274_v26   ;;  %873 = vperm.xlu0 %2087, %v274_v26   ;;  %v1969_v32 = vpop.f32.mrb[8].mxu0 }
 0x106   :  { %v303_v33 = vpop.f32.mrb[9].mxu0 }
 0x107   :  { %v1970_v34 = vpop.f32.mrb[10].mxu0 }
 0x108   :  { %v306_v35 = vpop.f32.mrb[11].mxu0 }
 0x109   :  { %367 = vperm.xlu1 %2088, %v1965_v28   ;;  %893 = vperm.xlu0 %2087, %v1965_v28   ;;  %v1861_v28 = vunpack.c.0.s8 %v2475_v19 }
 0x10b   :  { %v2491_v50 = vcvt.s32.f32 %v1861_v28 }
 0x10d   :  { %357 = vperm.xlu1 %2088, %v287_v29   ;;  %885 = vperm.xlu0 %2087, %v287_v29   ;;  %v1973_v36 = vpop.f32.mrb[12].mxu0 }
 0x10e   :  { %v319_v37 = vpop.f32.mrb[13].mxu0 }
 0x10f   :  { %v1974_v38 = vpop.f32.mrb[14].mxu0 }
 0x110   :  { %v322_v39 = vpop.f32.mrb[15].mxu0 }
 0x111   :  { %2089 = vset.pattern.permute.xlu1 %v2301_v1  ;;  %2090 = vset.pattern.permute.xlu0 %v2303_v27 }
 0x112   :  { %372 = vperm.xlu0 %2090, %v1966_v30   ;;  %897 = vperm.xlu1 %2089, %v1966_v30  }
 0x116   :  { %362 = vperm.xlu0 %2090, %v290_v31   ;;  %889 = vperm.xlu1 %2089, %v290_v31   ;;  %v91_v31 = vmul.f32 1e+30, %v1696_v18 }
 0x11a   :  { %2091 = vset.pattern.permute.xlu0 %v2301_v1  ;;  %2092 = vset.pattern.permute.xlu1 %v2303_v27 }
 0x11b   :  { %387 = vperm.xlu1 %2092, %v1969_v32   ;;  %909 = vperm.xlu0 %2091, %v1969_v32   ;;  %v1857_v32 = vunpack.c.2.s8 %v2427_v42 }
 0x11f   :  { %377 = vperm.xlu1 %2092, %v303_v33   ;;  %901 = vperm.xlu0 %2091, %v303_v33  }
 0x123   :  { %2093 = vset.pattern.permute.xlu1 %v2301_v1  ;;  %2094 = vset.pattern.permute.xlu0 %v2303_v27 }
 0x124   :  { %392 = vperm.xlu0 %2094, %v1970_v34   ;;  %913 = vperm.xlu1 %2093, %v1970_v34  }
 0x128   :  { %382 = vperm.xlu0 %2094, %v306_v35   ;;  %905 = vperm.xlu1 %2093, %v306_v35  }
 0x12c   :  { %2095 = vset.pattern.permute.xlu0 %v2301_v1  ;;  %2096 = vset.pattern.permute.xlu1 %v2303_v27 }
 0x12d   :  { %925 = vperm.xlu0 %2095, %v1973_v36   ;;  %407 = vperm.xlu1 %2096, %v1973_v36  }
 0x131   :  { %917 = vperm.xlu0 %2095, %v319_v37   ;;  %2098 = vset.pattern.permute.xlu1 %v2301_v1 }
 0x132   :  { %929 = vperm.xlu1 %2098, %v1974_v38  }
 0x135   :  { %2097 = vset.pattern.permute.xlu0 %v2303_v27 }
 0x136   :  { %921 = vperm.xlu1 %2098, %v322_v39   ;;  %397 = vperm.xlu0 %2097, %v319_v37  }
 0x13a   :  { %2099 = vset.pattern.permute.xlu1 %v2303_v27  ;;  %412 = vperm.xlu0 %2097, %v1974_v38   ;;  %v2481_v27 = vcvt.s32.f32 %v1850_v12 }
 0x13b   :  { %402 = vperm.xlu1 %2099, %v322_v39  }
 0x13e   :  { %2140 = vset.pattern.permute.xlu0 %v2301_v1 }
 0x175   :  { %v878_v49 = vpop.permute.xlu1 %877 }
 0x176   :  { %v938_v51 = vadd.f32 %v2443_v48, %v878_v49  ;;  %v870_v52 = vpop.permute.xlu0 %869  ;;  %v1694_v49 = vadd.f32 -1.0, %v2481_v27 }
 0x177   :  { %v936_v54 = vadd.f32 %v2443_v48, %v870_v52 }
 0x178   :  { %v970_v56 = vmin.f32 %v938_v51, 0.0  ;;  %v954_v61 = vmax.f32 %v938_v51, 0.0 }
 0x179   :  { %v968_v59 = vmin.f32 %v936_v54, 0.0  ;;  %v952_v1 = vmax.f32 %v936_v54, 0.0  ;;  %v2495_v54 = vcvt.s32.f32 %v1857_v32 }
 0x17a   :  { %v986_v62 = vmul.f32 0.2, %v970_v56  ;;  %v348_v63 = vpop.permute.xlu1 %347 }
 0x17b   :  { %v984_v2 = vmul.f32 0.2, %v968_v59  ;;  %v421_v3 = vadd.f32 %v2453_v57, %v348_v63  ;;  %v338_v4 = vpop.permute.xlu0 %337 }
 0x17c   :  { %v419_v6 = vadd.f32 %v2453_v57, %v338_v4  ;;  %v1002_v7 = vadd.f32 %v986_v62, %v954_v61  ;;  %v1699_v4 = vadd.f32 -1.0, %v2491_v50 }
 0x17d   :  { %v453_v8 = vmin.f32 %v421_v3, 0.0  ;;  %v1000_v9 = vadd.f32 %v984_v2, %v952_v1  ;;  %v437_v13 = vmax.f32 %v421_v3, 0.0 }
 0x17e   :  { %v451_v10 = vmin.f32 %v419_v6, 0.0  ;;  %v2466_v11 = vadd.f32 %v1002_v7, %v90_v60  ;;  %v435_v23 = vmax.f32 %v419_v6, 0.0 }
 0x17f   :  { %v469_v14 = vmul.f32 0.2, %v453_v8  ;;  %v353_v15 = vpop.permute.xlu0 %352  ;;  %v882_v16 = vpop.permute.xlu1 %881  ;;  %v2469_v17 = vadd.f32 %v1000_v9, %v88_v0  ;;  %v1697_v8 = vadd.f32 -1.0, %v2495_v54  ;;  %v1862_v9 = vunpack.c.1.s8 %v2475_v19 }
 0x180   :  { %v467_v20 = vmul.f32 0.2, %v451_v10  ;;  %v422_v21 = vadd.f32 %v2453_v57, %v353_v15  ;;  %v939_v22 = vadd.f32 %v2443_v48, %v882_v16  ;;  %1036 = vmax.xlane.f32.xlu0 %v2466_v11  ;;  %v1858_v16 = vunpack.c.3.s8 %v2427_v42 }
 0x181   :  { %1032 = vmax.xlane.f32.xlu1 %v2469_v17  ;;  %v485_v24 = vadd.f32 %v469_v14, %v437_v13 }
 0x182   :  { %v454_v25 = vmin.f32 %v422_v21, 0.0  ;;  %v971_v26 = vmin.f32 %v939_v22, 0.0  ;;  %v483_v30 = vadd.f32 %v467_v20, %v435_v23  ;;  %v955_v34 = vmax.f32 %v939_v22, 0.0 }
 0x183   :  { %v2484_v29 = vadd.f32 %v485_v24, %v90_v60  ;;  %v438_v44 = vmax.f32 %v422_v21, 0.0 }
 0x184   :  { %v470_v33 = vmul.f32 0.2, %v454_v25  ;;  %v987_v35 = vmul.f32 0.2, %v971_v26  ;;  %v343_v36 = vpop.permute.xlu1 %342  ;;  %v874_v37 = vpop.permute.xlu0 %873  ;;  %v2493_v53 = vadd.f32 %v483_v30, %v88_v0  ;;  %v89_v0 = vmul.f32 1e+30, %v1694_v49 }
 0x185   :  { %v420_v38 = vadd.f32 %v2453_v57, %v343_v36  ;;  %v937_v39 = vadd.f32 %v2443_v48, %v874_v37  ;;  %519 = vmax.xlane.f32.xlu0 %v2484_v29  ;;  %v94_v25 = vmul.f32 1e+30, %v1699_v4 }
 0x186   :  { %v1003_v45 = vadd.f32 %v987_v35, %v955_v34  ;;  %v486_v60 = vadd.f32 %v470_v33, %v438_v44  ;;  %v92_v33 = vmul.f32 1e+30, %v1697_v8  ;;  %v2519_v34 = vcvt.s32.f32 %v1858_v16 }
 0x187   :  { %v452_v51 = vmin.f32 %v420_v38, 0.0  ;;  %v969_v52 = vmin.f32 %v937_v39, 0.0  ;;  %v436_v2 = vmax.f32 %v420_v38, 0.0  ;;  %v953_v3 = vmax.f32 %v937_v39, 0.0 }
 0x188   :  { %v368_v55 = vpop.permute.xlu1 %367  ;;  %v894_v56 = vpop.permute.xlu0 %893  ;;  %v2497_v59 = vadd.f32 %v1003_v45, %v91_v31  ;;  %v2506_v13 = vadd.f32 %v486_v60, %v91_v31  ;;  %v2514_v31 = vcvt.s32.f32 %v1862_v9  ;;  %v2524_v45 = vld [vmem:[%s3030_s0 + $0x14] sm:$0xff]  }
 0x189   :  { %v468_v61 = vmul.f32 0.2, %v452_v51  ;;  %v985_v62 = vmul.f32 0.2, %v969_v52  ;;  %v425_v63 = vadd.f32 %v2453_v57, %v368_v55  ;;  %v942_v1 = vadd.f32 %v2443_v48, %v894_v56  ;;  %515 = vmax.xlane.f32.xlu0 %v2493_v53  ;;  %v2534_v55 = vld [vmem:[%s3029_s1 + $0x30] sm:$0xff]  }
 0x18a   :  { %1038 = vmax.xlane.f32.xlu1 %v2497_v59  ;;  %1987 = vmatprep.subr.bf16.mxu1 %v2534_v55 }
 0x18b   :  { %v457_v6 = vmin.f32 %v425_v63, 0.0  ;;  %v974_v7 = vmin.f32 %v942_v1, 0.0  ;;  %v1001_v14 = vadd.f32 %v985_v62, %v953_v3  ;;  %v484_v15 = vadd.f32 %v468_v61, %v436_v2  ;;  %1988 = vmatpush3.bf16.msra.mxu1 %v2534_v55 }
 0x18c   :  { %v358_v10 = vpop.permute.xlu1 %357  ;;  %v886_v12 = vpop.permute.xlu0 %885  ;;  %v958_v23 = vmax.f32 %v942_v1, 0.0  ;;  %v441_v26 = vmax.f32 %v425_v63, 0.0  ;;  %v1700_v61 = vadd.f32 -1.0, %v2514_v31  ;;  %v1869_v1 = vunpack.c.0.s8 %v2524_v45 }
 0x18d   :  { %v473_v18 = vmul.f32 0.2, %v457_v6  ;;  %v990_v20 = vmul.f32 0.2, %v974_v7  ;;  %v423_v21 = vadd.f32 %v2453_v57, %v358_v10  ;;  %v940_v22 = vadd.f32 %v2443_v48, %v886_v12 }
 0x18e   :  { %521 = vmax.xlane.f32.xlu1 %v2506_v13  ;;  %v2512_v24 = vadd.f32 %v1001_v14, %v89_v0  ;;  %v2517_v42 = vadd.f32 %v484_v15, %v89_v0  ;;  %v1698_v7 = vadd.f32 -1.0, %v2519_v34  ;;  %v95_v15 = vmul.f32 1e+30, %v1700_v61 }
 0x18f   :  { %v455_v28 = vmin.f32 %v423_v21, 0.0  ;;  %v972_v30 = vmin.f32 %v940_v22, 0.0  ;;  %v1006_v32 = vadd.f32 %v990_v20, %v958_v23  ;;  %v956_v36 = vmax.f32 %v940_v22, 0.0 }
 0x190   :  { %1034 = vmax.xlane.f32.xlu0 %v2512_v24  ;;  %v489_v44 = vadd.f32 %v473_v18, %v441_v26  ;;  %v439_v56 = vmax.f32 %v423_v21, 0.0  ;;  %v2550_v21 = vcvt.s32.f32 %v1869_v1  ;;  %v1865_v26 = vunpack.c.2.s8 %v2475_v19 }
 0x191   :  { %v471_v35 = vmul.f32 0.2, %v455_v28  ;;  %v988_v37 = vmul.f32 0.2, %v972_v30  ;;  %v373_v38 = vpop.permute.xlu0 %372  ;;  %v898_v39 = vpop.permute.xlu1 %897  ;;  %v2529_v52 = vadd.f32 %v1006_v32, %v94_v25  ;;  %v1870_v61 = vunpack.c.1.s8 %v2524_v45 }
 0x192   :  { %v426_v49 = vadd.f32 %v2453_v57, %v373_v38  ;;  %v943_v51 = vadd.f32 %v2443_v48, %v898_v39  ;;  %517 = vmax.xlane.f32.xlu1 %v2517_v42  ;;  %v2542_v4 = vadd.f32 %v489_v44, %v94_v25  ;;  %v93_v25 = vmul.f32 1e+30, %v1698_v7 }
 0x193   :  { %v1004_v60 = vadd.f32 %v988_v37, %v956_v36  ;;  %v487_v6 = vadd.f32 %v471_v35, %v439_v56 }
 0x194   :  { %v458_v62 = vmin.f32 %v426_v49, 0.0  ;;  %v975_v63 = vmin.f32 %v943_v51, 0.0  ;;  %1044 = vmax.xlane.f32.xlu0 %v2529_v52  ;;  %3043 = vst [vmem:[#allocation2_spill] sm:$0xff] %v2542_v4  ;;  %v959_v14 = vmax.f32 %v943_v51, 0.0  ;;  %v442_v16 = vmax.f32 %v426_v49, 0.0 }
 0x195   :  { %v363_v2 = vpop.permute.xlu0 %362  ;;  %v890_v3 = vpop.permute.xlu1 %889  ;;  %v2540_v0 = vadd.f32 %v1004_v60, %v92_v33  ;;  %v2552_v22 = vadd.f32 %v487_v6, %v92_v33  ;;  %v1703_v51 = vadd.f32 -1.0, %v2550_v21  ;;  %v2567_v6 = vcvt.s32.f32 %v1865_v26 }
 0x196   :  { %v474_v8 = vmul.f32 0.2, %v458_v62  ;;  %v991_v9 = vmul.f32 0.2, %v975_v63  ;;  %v424_v10 = vadd.f32 %v2453_v57, %v363_v2  ;;  %v941_v12 = vadd.f32 %v2443_v48, %v890_v3 }
 0x197   :  { %1040 = vmax.xlane.f32.xlu1 %v2540_v0  ;;  %v1701_v26 = vadd.f32 -1.0, %v2567_v6 }
 0x198   :  { %v456_v18 = vmin.f32 %v424_v10, 0.0  ;;  %v973_v20 = vmin.f32 %v941_v12, 0.0  ;;  %527 = vmax.xlane.f32.xlu0 %v2542_v4  ;;  %v1007_v23 = vadd.f32 %v991_v9, %v959_v14  ;;  %v957_v30 = vmax.f32 %v941_v12, 0.0 }
 0x199   :  { %v490_v37 = vadd.f32 %v474_v8, %v442_v16  ;;  %v440_v49 = vmax.f32 %v424_v10, 0.0  ;;  %v98_v14 = vmul.f32 1e+30, %v1703_v51 }
 0x19a   :  { %v472_v28 = vmul.f32 0.2, %v456_v18  ;;  %v989_v32 = vmul.f32 0.2, %v973_v20  ;;  %v388_v35 = vpop.permute.xlu1 %387  ;;  %v910_v36 = vpop.permute.xlu0 %909  ;;  %v2557_v44 = vadd.f32 %v1007_v23, %v95_v15  ;;  %v1866_v20 = vunpack.c.3.s8 %v2475_v19 }
 0x19b   :  { %v429_v38 = vadd.f32 %v2453_v57, %v388_v35  ;;  %v946_v39 = vadd.f32 %v2443_v48, %v910_v36  ;;  %v2563_v1 = vadd.f32 %v490_v37, %v95_v15  ;;  %v2573_v15 = vcvt.s32.f32 %v1870_v61 }
 0x19c   :  { %523 = vmax.xlane.f32.xlu0 %v2552_v22  ;;  %v1005_v33 = vadd.f32 %v989_v32, %v957_v30  ;;  %1046 = vmax.xlane.f32.xlu1 %v2557_v44  ;;  %v488_v3 = vadd.f32 %v472_v28, %v440_v49  ;;  %v1877_v28 = vunpack.c.2.s8 %v2432_v43 }
 0x19d   :  { %v461_v56 = vmin.f32 %v429_v38, 0.0  ;;  %v978_v60 = vmin.f32 %v946_v39, 0.0  ;;  %3044 = vst [vmem:[#allocation3_spill] sm:$0xff] %v2563_v1  ;;  %v962_v12 = vmax.f32 %v946_v39, 0.0  ;;  %v445_v16 = vmax.f32 %v429_v38, 0.0 }
 0x19e   :  { %v378_v62 = vpop.permute.xlu1 %377  ;;  %v902_v63 = vpop.permute.xlu0 %901  ;;  %v2565_v2 = vadd.f32 %v1005_v33, %v93_v25  ;;  %v2578_v37 = vadd.f32 %v488_v3, %v93_v25  ;;  %v1704_v19 = vadd.f32 -1.0, %v2573_v15  ;;  %v96_v25 = vmul.f32 1e+30, %v1701_v26 }
 0x19f   :  { %v477_v7 = vmul.f32 0.2, %v461_v56  ;;  %v994_v8 = vmul.f32 0.2, %v978_v60  ;;  %v427_v9 = vadd.f32 %v2453_v57, %v378_v62  ;;  %v944_v10 = vadd.f32 %v2443_v48, %v902_v63 }
 0x1a0   :  { %1042 = vmax.xlane.f32.xlu0 %v2565_v2  ;;  %529 = vmax.xlane.f32.xlu1 %v2563_v1  ;;  %3045 = vst [vmem:[#allocation4_spill] sm:$0xff] %v2578_v37  ;;  %v2586_v56 = vcvt.s32.f32 %v1866_v20 }
 0x1a1   :  { %v976_v18 = vmin.f32 %v944_v10, 0.0  ;;  %v1010_v23 = vadd.f32 %v994_v8, %v962_v12  ;;  %v459_v30 = vmin.f32 %v427_v9, 0.0  ;;  %v493_v39 = vadd.f32 %v477_v7, %v445_v16 }
 0x1a2   :  { %v960_v51 = vmax.f32 %v944_v10, 0.0  ;;  %v2591_v12 = vcvt.s32.f32 %v1877_v28  ;;  %v443_v1 = vmax.f32 %v427_v9, 0.0 }
 0x1a3   :  { %v992_v32 = vmul.f32 0.2, %v976_v18  ;;  %v393_v35 = vpop.permute.xlu0 %392  ;;  %v914_v36 = vpop.permute.xlu1 %913  ;;  %v2582_v33 = vadd.f32 %v1010_v23, %v98_v14  ;;  %v475_v62 = vmul.f32 0.2, %v459_v30  ;;  %v2589_v7 = vadd.f32 %v493_v39, %v98_v14 }
 0x1a4   :  { %v430_v38 = vadd.f32 %v2453_v57, %v393_v35  ;;  %v947_v49 = vadd.f32 %v2443_v48, %v914_v36  ;;  %525 = vmax.xlane.f32.xlu1 %v2578_v37  ;;  %v99_v35 = vmul.f32 1e+30, %v1704_v19  ;;  %v1702_v36 = vadd.f32 -1.0, %v2586_v56 }
 0x1a5   :  { %1052 = vmax.xlane.f32.xlu0 %v2582_v33  ;;  %3046 = vst [vmem:[#allocation5_spill] sm:$0xff] %v2589_v7  ;;  %v1008_v8 = vadd.f32 %v992_v32, %v960_v51  ;;  %v1873_v14 = vunpack.c.2.s8 %v2524_v45  ;;  %v1707_v28 = vadd.f32 -1.0, %v2591_v12 }
 0x1a6   :  { %v462_v60 = vmin.f32 %v430_v38, 0.0  ;;  %v979_v61 = vmin.f32 %v947_v49, 0.0  ;;  %v963_v23 = vmax.f32 %v947_v49, 0.0  ;;  %v446_v26 = vmax.f32 %v430_v38, 0.0 }
 0x1a7   :  { %v383_v63 = vpop.permute.xlu0 %382  ;;  %v906_v3 = vpop.permute.xlu1 %905 }
 0x1a8   :  { %v478_v10 = vmul.f32 0.2, %v462_v60  ;;  %v995_v16 = vmul.f32 0.2, %v979_v61  ;;  %v428_v18 = vadd.f32 %v2453_v57, %v383_v63  ;;  %v945_v20 = vadd.f32 %v2443_v48, %v906_v3 }
 0x1a9   :  { %535 = vmax.xlane.f32.xlu0 %v2589_v7  ;;  %v2599_v60 = vadd.f32 %v1008_v8, %v96_v25  ;;  %v491_v63 = vadd.f32 %v475_v62, %v443_v1 }
 0x1aa   :  { %v977_v30 = vmin.f32 %v945_v20, 0.0  ;;  %v1011_v32 = vadd.f32 %v995_v16, %v963_v23  ;;  %v460_v39 = vmin.f32 %v428_v18, 0.0  ;;  %v494_v49 = vadd.f32 %v478_v10, %v446_v26 }
 0x1ab   :  { %v961_v7 = vmax.f32 %v945_v20, 0.0  ;;  %v97_v16 = vmul.f32 1e+30, %v1702_v36  ;;  %v2606_v23 = vcvt.s32.f32 %v1873_v14  ;;  %v2609_v10 = vadd.f32 %v491_v63, %v96_v25 }
 0x1ac   :  { %v926_v51 = vpop.permute.xlu0 %925  ;;  %v408_v61 = vpop.permute.xlu1 %407  ;;  %v993_v19 = vmul.f32 0.2, %v977_v30  ;;  %v2602_v9 = vadd.f32 %v1011_v32, %v99_v35  ;;  %v476_v62 = vmul.f32 0.2, %v460_v39  ;;  %v2611_v26 = vadd.f32 %v494_v49, %v99_v35 }
 0x1ad   :  { %v950_v3 = vadd.f32 %v2443_v48, %v926_v51  ;;  %v433_v38 = vadd.f32 %v2453_v57, %v408_v61  ;;  %1048 = vmax.xlane.f32.xlu0 %v2599_v60  ;;  %3047 = vst [vmem:[#allocation6_spill] sm:$0xff] %v2609_v10  ;;  %v102_v32 = vmul.f32 1e+30, %v1707_v28  ;;  %v444_v14 = vmax.f32 %v428_v18, 0.0 }
 0x1ae   :  { %1054 = vmax.xlane.f32.xlu1 %v2602_v9  ;;  %3048 = vst [vmem:[#allocation7_spill] sm:$0xff] %v2611_v26  ;;  %v1009_v36 = vadd.f32 %v993_v19, %v961_v7 }
 0x1af   :  { %v966_v4 = vmax.f32 %v950_v3, 0.0  ;;  %v982_v37 = vmin.f32 %v950_v3, 0.0  ;;  %v449_v8 = vmax.f32 %v433_v38, 0.0  ;;  %v465_v1 = vmin.f32 %v433_v38, 0.0 }
 0x1b0   :  { %v918_v30 = vpop.permute.xlu0 %917  ;;  %v1705_v3 = vadd.f32 -1.0, %v2606_v23  ;;  %v2617_v49 = vadd.f32 %v1009_v36, %v97_v16 }
 0x1b1   :  { %v998_v51 = vmul.f32 0.2, %v982_v37  ;;  %v481_v20 = vmul.f32 0.2, %v465_v1  ;;  %v948_v61 = vadd.f32 %v2443_v48, %v918_v30  ;;  %531 = vmax.xlane.f32.xlu0 %v2609_v10  ;;  %v492_v37 = vadd.f32 %v476_v62, %v444_v14  ;;  %v930_v62 = vpop.permute.xlu1 %929 }
 0x1b2   :  { %537 = vmax.xlane.f32.xlu1 %v2611_v26  ;;  %v100_v18 = vmul.f32 1e+30, %v1705_v3  ;;  %v1878_v30 = vunpack.c.3.s8 %v2432_v43  ;;  %v1874_v3 = vunpack.c.3.s8 %v2524_v45 }
 0x1b3   :  { %v964_v38 = vmax.f32 %v948_v61, 0.0  ;;  %v980_v39 = vmin.f32 %v948_v61, 0.0  ;;  %v1014_v25 = vadd.f32 %v998_v51, %v966_v4  ;;  %v497_v63 = vadd.f32 %v481_v20, %v449_v8 }
 0x1b4   :  { %v2625_v1 = vadd.f32 %v492_v37, %v97_v16  ;;  %v951_v16 = vadd.f32 %v2443_v48, %v930_v62  ;;  %v2644_v20 = vcvt.s32.f32 %v1878_v30  ;;  %v2652_v62 = vcvt.s32.f32 %v1874_v3 }
 0x1b5   :  { %v996_v35 = vmul.f32 0.2, %v980_v39  ;;  %v2619_v28 = vadd.f32 %v1014_v25, %v102_v32  ;;  %v2623_v7 = vadd.f32 %v497_v63, %v102_v32  ;;  %v398_v8 = vpop.permute.xlu0 %397  ;;  %v2641_v32 = vld [vmem:[%s3029_s1 + $0x38] sm:$0xff]   ;;  %v922_v43 = vpop.permute.xlu1 %921 }
 0x1b6   :  { %1050 = vmax.xlane.f32.xlu1 %v2617_v49  ;;  %3049 = vst [vmem:[#allocation8_spill] sm:$0xff] %v2625_v1  ;;  %1989 = vmatprep.subr.bf16.mxu1 %v2641_v32  ;;  %v949_v36 = vadd.f32 %v2443_v48, %v922_v43  ;;  %v1708_v14 = vadd.f32 -1.0, %v2644_v20  ;;  %v1706_v48 = vadd.f32 -1.0, %v2652_v62 }
 0x1b7   :  { %1060 = vmax.xlane.f32.xlu0 %v2619_v28  ;;  %v1012_v19 = vadd.f32 %v996_v35, %v964_v38  ;;  %1990 = vmatpush3.bf16.msra.mxu1 %v2641_v32  ;;  %v967_v38 = vmax.f32 %v951_v16, 0.0 }
 0x1b8   :  { %v981_v37 = vmin.f32 %v949_v36, 0.0 }
 0x1b9   :  { %v2629_v4 = vadd.f32 %v1012_v19, %v100_v18  ;;  %v413_v51 = vpop.permute.xlu0 %412  ;;  %v103_v19 = vmul.f32 1e+30, %v1708_v14  ;;  %v101_v14 = vmul.f32 1e+30, %v1706_v48 }
 0x1ba   :  { %533 = vmax.xlane.f32.xlu1 %v2625_v1  ;;  %v434_v61 = vadd.f32 %v2453_v57, %v413_v51  ;;  %v965_v1 = vmax.f32 %v949_v36, 0.0  ;;  %v997_v43 = vmul.f32 0.2, %v981_v37  ;;  %v403_v36 = vpop.permute.xlu1 %402 }
 0x1bb   :  { %543 = vmax.xlane.f32.xlu0 %v2623_v7 }
 0x1bc   :  { %v466_v63 = vmin.f32 %v434_v61, 0.0  ;;  %v1013_v3 = vadd.f32 %v997_v43, %v965_v1 }
 0x1be   :  { %v482_v26 = vmul.f32 0.2, %v466_v63  ;;  %v432_v63 = vadd.f32 %v2453_v57, %v403_v36 }
 0x1bf   :  { %1056 = vmax.xlane.f32.xlu0 %v2629_v4 }
 0x1cb   :  { %1208 = vrot.lane.b32.xlu1 %v2418_v41, %s2302_s17  ;;  %v983_v41 = vmin.f32 %v951_v16, 0.0 }
 0x1cd   :  { %v999_v39 = vmul.f32 0.2, %v983_v41 }
 0x1cf   :  { %v1015_v51 = vadd.f32 %v999_v39, %v967_v38 }
 0x1d1   :  { %v2655_v10 = vadd.f32 %v1015_v51, %v103_v19 }
 0x1d5   :  { %1206 = vrot.lane.b32.xlu0 %v2413_v40, %s2302_s17  ;;  %v431_v40 = vadd.f32 %v2453_v57, %v398_v8  ;;  %v450_v8 = vmax.f32 %v434_v61, 0.0  ;;  %v2664_v61 = vadd.f32 %v1013_v3, %v101_v14 }
 0x1d7   :  { %v463_v25 = vmin.f32 %v431_v40, 0.0  ;;  %v447_v35 = vmax.f32 %v431_v40, 0.0  ;;  %v498_v45 = vadd.f32 %v482_v26, %v450_v8 }
 0x1d9   :  { %v479_v30 = vmul.f32 0.2, %v463_v25  ;;  %v2658_v41 = vadd.f32 %v498_v45, %v103_v19  ;;  %v448_v45 = vmax.f32 %v432_v63, 0.0 }
 0x1db   :  { %v495_v16 = vadd.f32 %v479_v30, %v447_v35  ;;  %v464_v30 = vmin.f32 %v432_v63, 0.0 }
 0x1dd   :  { %v2660_v40 = vadd.f32 %v495_v16, %v100_v18 }
 0x1ef   :  { %1062 = vmax.xlane.f32.xlu1 %v2655_v10 }
 0x1f3   :  { %545 = vmax.xlane.f32.xlu1 %v2658_v41 }
 0x1f4   :  { %539 = vmax.xlane.f32.xlu0 %v2660_v40 }
 0x1f7   :  { %1058 = vmax.xlane.f32.xlu1 %v2664_v61 }
 0x208   :  { %1210 = vrot.lane.b32.xlu1 %v2458_v58, %s2302_s17 }
 0x20a   :  { %1212 = vrot.lane.b32.xlu0 %v2534_v55, %s2302_s17 }
 0x20d   :  { %v1037_v26 = vpop.xlane.xlu0 %1036 }
 0x20e   :  { %v1033_v18 = vpop.xlane.xlu1 %1032  ;;  %v1066_v25 = vsub.f32 %v2466_v11, %v1037_v26  ;;  %v480_v11 = vmul.f32 0.2, %v464_v30 }
 0x20f   :  { %v1064_v37 = vsub.f32 %v2469_v17, %v1033_v18 }
 0x210   :  { %v1084_v19 = vmul.f32 1.442695, %v1066_v25  ;;  %v496_v25 = vadd.f32 %v480_v11, %v448_v45 }
 0x211   :  { %v1080_v8 = vmul.f32 1.442695, %v1064_v37 }
 0x212   :  { %v2671_v38 = vpop.xlane.xlu0 %519  ;;  %2173 = vpow2.f32 %v1084_v19  ;;  %v2691_v63 = vadd.f32 %v496_v25, %v101_v14 }
 0x213   :  { %2175 = vpow2.f32 %v1080_v8 }
 0x216   :  { %v2673_v39 = vpop.xlane.xlu0 %515 }
 0x217   :  { %v1039_v1 = vpop.xlane.xlu1 %1038 }
 0x218   :  { %v1067_v48 = vsub.f32 %v2497_v59, %v1039_v1 }
 0x21a   :  { %v1086_v26 = vmul.f32 1.442695, %v1067_v48 }
 0x21b   :  { %v2677_v35 = vpop.xlane.xlu1 %521 }
 0x21c   :  { %v2174_v19 = vpop.eup %2173 }
 0x21d   :  { %v1035_v58 = vpop.xlane.xlu0 %1034  ;;  %v2696_v8 = vmul.f32 %v2174_v19, %v2436_v46 }
 0x21e   :  { %v1065_v36 = vsub.f32 %v2512_v24, %v1035_v58  ;;  %v2176_v58 = vpop.eup %2175 }
 0x21f   :  { %v2680_v55 = vpop.xlane.xlu1 %517 }
 0x220   :  { %v1082_v59 = vmul.f32 1.442695, %v1065_v36 }
 0x221   :  { %v1045_v51 = vpop.xlane.xlu0 %1044 }
 0x222   :  { %v1070_v43 = vsub.f32 %v2529_v52, %v1045_v51 }
 0x224   :  { %v1092_v16 = vmul.f32 1.442695, %v1070_v43  ;;  %v1041_v57 = vpop.xlane.xlu1 %1040 }
 0x225   :  { %v1068_v3 = vsub.f32 %v2540_v0, %v1041_v57  ;;  %v2685_v17 = vpop.xlane.xlu0 %527 }
 0x226   :  { %2177 = vpow2.f32 %v1092_v16 }
 0x227   :  { %v1088_v18 = vmul.f32 1.442695, %v1068_v3 }
 0x229   :  { %2179 = vpow2.f32 %v1088_v18  ;;  %v2688_v37 = vpop.xlane.xlu0 %523  ;;  %v1047_v52 = vpop.xlane.xlu1 %1046 }
 0x22a   :  { %2181 = vpow2.f32 %v1086_v26  ;;  %v1071_v1 = vsub.f32 %v2557_v44, %v1047_v52 }
 0x22b   :  { %2183 = vpow2.f32 %v1082_v59 }
 0x22c   :  { %v1094_v0 = vmul.f32 1.442695, %v1071_v1  ;;  %541 = vmax.xlane.f32.xlu1 %v2691_v63 }
 0x22d   :  { %v1043_v30 = vpop.xlane.xlu0 %1042  ;;  %v2702_v14 = vpop.xlane.xlu1 %529 }
 0x22e   :  { %v1069_v24 = vsub.f32 %v2565_v2, %v1043_v30  ;;  %2185 = vpow2.f32 %v1094_v0  ;;  %v2706_v2 = vmul.f32 %v2176_v58, %v2438_v47 }
 0x230   :  { %v2178_v51 = vpop.eup %2177  ;;  %v1090_v48 = vmul.f32 1.442695, %v1069_v24  ;;  %1132 = vadd.xlane.f32.xlu1 %v2696_v8 }
 0x231   :  { %v2700_v44 = vmul.f32 %v2178_v51, %v2491_v50  ;;  %v2719_v25 = vpop.xlane.xlu1 %525 }
 0x232   :  { %2187 = vpow2.f32 %v1090_v48  ;;  %v1053_v45 = vpop.xlane.xlu0 %1052 }
 0x233   :  { %v2180_v43 = vpop.eup %2179  ;;  %1140 = vadd.xlane.f32.xlu0 %v2700_v44  ;;  %v1074_v16 = vsub.f32 %v2582_v33, %v1053_v45 }
 0x234   :  { %v2182_v11 = vpop.eup %2181  ;;  %v2710_v57 = vmul.f32 %v2180_v43, %v2495_v54  ;;  %1128 = vadd.xlane.f32.xlu1 %v2706_v2 }
 0x235   :  { %v1100_v3 = vmul.f32 1.442695, %v1074_v16  ;;  %v2717_v36 = vmul.f32 %v2182_v11, %v2462_v5  ;;  %v2184_v18 = vpop.eup %2183 }
 0x236   :  { %v2714_v26 = vpop.xlane.xlu0 %535  ;;  %v2726_v1 = vmul.f32 %v2184_v18, %v2481_v27 }
 0x237   :  { %1136 = vadd.xlane.f32.xlu0 %v2710_v57  ;;  %2189 = vpow2.f32 %v1100_v3 }
 0x238   :  { %v2186_v59 = vpop.eup %2185  ;;  %1134 = vadd.xlane.f32.xlu1 %v2717_v36 }
 0x239   :  { %v2723_v33 = vmul.f32 %v2186_v59, %v2514_v31 }
 0x23a   :  { %v1049_v52 = vpop.xlane.xlu0 %1048 }
 0x23b   :  { %v1072_v0 = vsub.f32 %v2599_v60, %v1049_v52  ;;  %v1055_v30 = vpop.xlane.xlu1 %1054  ;;  %1142 = vadd.xlane.f32.xlu0 %v2723_v33 }
 0x23c   :  { %v2188_v19 = vpop.eup %2187  ;;  %v1075_v24 = vsub.f32 %v2602_v9, %v1055_v30  ;;  %1130 = vadd.xlane.f32.xlu1 %v2726_v1 }
 0x23d   :  { %v2733_v58 = vmul.f32 %v2188_v19, %v2519_v34  ;;  %v1096_v51 = vmul.f32 1.442695, %v1072_v0 }
 0x23e   :  { %v1102_v48 = vmul.f32 1.442695, %v1075_v24  ;;  %v2735_v43 = vpop.xlane.xlu0 %531 }
 0x23f   :  { %2191 = vpow2.f32 %v1096_v51  ;;  %v2737_v45 = vpop.xlane.xlu1 %537 }
 0x240   :  { %1138 = vadd.xlane.f32.xlu1 %v2733_v58  ;;  %2193 = vpow2.f32 %v1102_v48 }
 0x241   :  { %v2190_v60 = vpop.eup %2189 }
 0x242   :  { %v2741_v11 = vmul.f32 %v2190_v60, %v2550_v21 }
 0x243   :  { %v1051_v9 = vpop.xlane.xlu1 %1050 }
 0x244   :  { %v1061_v16 = vpop.xlane.xlu0 %1060  ;;  %v1073_v3 = vsub.f32 %v2617_v49, %v1051_v9  ;;  %1148 = vadd.xlane.f32.xlu0 %v2741_v11 }
 0x245   :  { %v1078_v18 = vsub.f32 %v2619_v28, %v1061_v16 }
 0x246   :  { %v1098_v59 = vmul.f32 1.442695, %v1073_v3 }
 0x247   :  { %v1108_v52 = vmul.f32 1.442695, %v1078_v18  ;;  %v2749_v51 = vpop.xlane.xlu1 %533 }
 0x248   :  { %v544_v19 = vpop.xlane.xlu0 %543  ;;  %2195 = vpow2.f32 %v1098_v59 }
 0x249   :  { %v2192_v0 = vpop.eup %2191  ;;  %2197 = vpow2.f32 %v1108_v52 }
 0x24a   :  { %v2747_v30 = vmul.f32 %v2192_v0, %v2567_v6  ;;  %v2194_v24 = vpop.eup %2193 }
 0x24b   :  { %v2754_v28 = vmul.f32 %v2194_v24, %v2573_v15  ;;  %v1209_v16 = vpop.permute.xlu1 %1208  ;;  %v551_v24 = vsub.f32 %v2552_v22, %v2688_v37 }
 0x24c   :  { %v1057_v48 = vpop.xlane.xlu0 %1056  ;;  %1144 = vadd.xlane.f32.xlu0 %v2747_v30 }
 0x24d   :  { %v1076_v49 = vsub.f32 %v2629_v4, %v1057_v48 }
 0x24f   :  { %v1104_v60 = vmul.f32 1.442695, %v1076_v49  ;;  %v571_v49 = vmul.f32 1.442695, %v551_v24 }
 0x250   :  { %v1207_v9 = vpop.permute.xlu0 %1206  ;;  %1150 = vadd.xlane.f32.xlu0 %v2754_v28 }
 0x251   :  { %2199 = vpow2.f32 %v1104_v60  ;;  %2013 = vmatprep.subr.bf16.mxu0 %v1207_v9  ;;  %v561_v60 = vsub.f32 %v2623_v7, %v544_v19 }
 0x252   :  { %2014 = vmatpush3.bf16.msra.mxu0 %v1207_v9  ;;  %v2196_v3 = vpop.eup %2195  ;;  %2201 = vpow2.f32 %v571_v49 }
 0x253   :  { %2015 = vmatprep.subr.bf16.mxu0 %v1209_v16  ;;  %v2758_v18 = vmul.f32 %v2196_v3, %v2586_v56  ;;  %v2198_v59 = vpop.eup %2197 }
 0x254   :  { %v2762_v4 = vmul.f32 %v2198_v59, %v2591_v12 }
 0x255   :  { %1146 = vadd.xlane.f32.xlu1 %v2758_v18 }
 0x256   :  { %2016 = vmatpush3.bf16.msra.mxu0 %v1209_v16  ;;  %3050 = vst [vmem:[#allocation9_spill] sm:$0xff] %v2762_v4  ;;  %v591_v16 = vmul.f32 1.442695, %v561_v60 }
 0x258   :  { %2203 = vpow2.f32 %v591_v16 }
 0x259   :  { %1156 = vadd.xlane.f32.xlu1 %v2762_v4 }
 0x25b   :  { %v2200_v52 = vpop.eup %2199 }
 0x25c   :  { %v2766_v0 = vmul.f32 %v2200_v52, %v2606_v23 }
 0x25e   :  { %1152 = vadd.xlane.f32.xlu1 %v2766_v0 }
 0x26f   :  { %1214 = vrot.lane.b32.xlu1 %v2641_v32, %s2302_s17  ;;  %v547_v32 = vsub.f32 %v2493_v53, %v2673_v39 }
 0x271   :  { %v563_v19 = vmul.f32 1.442695, %v547_v32 }
 0x27c   :  { %v1063_v48 = vpop.xlane.xlu1 %1062 }
 0x27d   :  { %v1079_v3 = vsub.f32 %v2655_v10, %v1063_v48  ;;  %v548_v10 = vsub.f32 %v2517_v42, %v2680_v55  ;;  %v549_v48 = vsub.f32 %v2484_v29, %v2671_v38  ;;  %v550_v42 = vsub.f32 %v2506_v13, %v2677_v35  ;;  %v3051_v38 = vld [vmem:[#allocation4_spill] sm:$0xff] }
 0x27f   :  { %v1110_v22 = vmul.f32 1.442695, %v1079_v3  ;;  %v565_v53 = vmul.f32 1.442695, %v548_v10  ;;  %v567_v16 = vmul.f32 1.442695, %v549_v48 }
 0x280   :  { %v2774_v9 = vpop.xlane.xlu1 %545 }
 0x281   :  { %v2778_v4 = vpop.xlane.xlu0 %539 }
 0x284   :  { %v1059_v59 = vpop.xlane.xlu1 %1058 }
 0x285   :  { %v1077_v52 = vsub.f32 %v2664_v61, %v1059_v59  ;;  %v1213_v7 = vpop.permute.xlu0 %1212  ;;  %v2202_v61 = vpop.eup %2201  ;;  %v552_v59 = vsub.f32 %v3051_v38, %v2719_v25  ;;  %v3053_v25 = vld [vmem:[#allocation3_spill] sm:$0xff] }
 0x286   :  { %v2787_v39 = vmul.f32 %v2202_v61, %v2495_v54  ;;  %v2204_v49 = vpop.eup %2203  ;;  %v569_v54 = vmul.f32 1.442695, %v550_v42  ;;  %v3054_v61 = vld [vmem:[#allocation6_spill] sm:$0xff]  ;;  %v3056_v42 = vld [vmem:[#allocation5_spill] sm:$0xff] }
 0x287   :  { %v1106_v37 = vmul.f32 1.442695, %v1077_v52  ;;  %v2796_v3 = vmul.f32 %v2204_v49, %v2591_v12  ;;  %v3052_v12 = vld [vmem:[#allocation2_spill] sm:$0xff]  ;;  %v573_v32 = vmul.f32 1.442695, %v552_v59  ;;  %v3055_v49 = vld [vmem:[#allocation8_spill] sm:$0xff] }
 0x288   :  { %v1211_v24 = vpop.permute.xlu1 %1210  ;;  %v553_v35 = vsub.f32 %v3052_v12, %v2685_v17 }
 0x289   :  { %2205 = vpow2.f32 %v1106_v37  ;;  %2017 = vmatprep.subr.bf16.mxu0 %v1211_v24 }
 0x28a   :  { %2018 = vmatpush3.bf16.msra.mxu0 %v1211_v24  ;;  %2207 = vpow2.f32 %v1110_v22  ;;  %v575_v24 = vmul.f32 1.442695, %v553_v35 }
 0x28b   :  { %2019 = vmatprep.subr.bf16.mxu0 %v1213_v7  ;;  %2209 = vpow2.f32 %v563_v19 }
 0x28c   :  { %2211 = vpow2.f32 %v565_v53 }
 0x28d   :  { %2213 = vpow2.f32 %v567_v16 }
 0x28e   :  { %2020 = vmatpush3.bf16.msra.mxu0 %v1213_v7  ;;  %2215 = vpow2.f32 %v569_v54  ;;  %v554_v7 = vsub.f32 %v3053_v25, %v2702_v14 }
 0x28f   :  { %2217 = vpow2.f32 %v573_v32 }
 0x290   :  { %2219 = vpow2.f32 %v575_v24  ;;  %v577_v17 = vmul.f32 1.442695, %v554_v7 }
 0x292   :  { %2221 = vpow2.f32 %v577_v17 }
 0x293   :  { %619 = vadd.xlane.f32.xlu1 %v2787_v39  ;;  %v2206_v60 = vpop.eup %2205 }
 0x294   :  { %v2793_v55 = vmul.f32 %v2206_v60, %v2652_v62  ;;  %v2208_v29 = vpop.eup %2207 }
 0x295   :  { %v2803_v52 = vmul.f32 %v2208_v29, %v2644_v20  ;;  %v2210_v13 = vpop.eup %2209 }
 0x296   :  { %1154 = vadd.xlane.f32.xlu0 %v2793_v55  ;;  %v2809_v22 = vmul.f32 %v2210_v13, %v2438_v47  ;;  %v2212_v37 = vpop.eup %2211  ;;  %v555_v47 = vsub.f32 %v3054_v61, %v2735_v43  ;;  %v557_v43 = vsub.f32 %v3056_v42, %v2714_v26 }
 0x297   :  { %639 = vadd.xlane.f32.xlu1 %v2796_v3  ;;  %v2815_v19 = vmul.f32 %v2212_v37, %v2481_v27  ;;  %v2214_v10 = vpop.eup %2213  ;;  %v556_v27 = vsub.f32 %v3055_v49, %v2749_v51  ;;  %v3057_v51 = vld [vmem:[#allocation7_spill] sm:$0xff] }
 0x298   :  { %v2821_v48 = vmul.f32 %v2214_v10, %v2436_v46  ;;  %v2216_v53 = vpop.eup %2215  ;;  %v579_v14 = vmul.f32 1.442695, %v555_v47  ;;  %v583_v38 = vmul.f32 1.442695, %v557_v43  ;;  %v558_v59 = vsub.f32 %v3057_v51, %v2737_v45 }
 0x299   :  { %v2827_v60 = vmul.f32 %v2216_v53, %v2462_v5  ;;  %v2218_v16 = vpop.eup %2217  ;;  %v581_v46 = vmul.f32 1.442695, %v556_v27 }
 0x29a   :  { %1158 = vadd.xlane.f32.xlu0 %v2803_v52  ;;  %2223 = vpow2.f32 %v579_v14  ;;  %v2833_v29 = vmul.f32 %v2218_v16, %v2519_v34  ;;  %v2220_v54 = vpop.eup %2219  ;;  %v585_v26 = vmul.f32 1.442695, %v558_v59  ;;  %v559_v34 = vsub.f32 %v2660_v40, %v2778_v4 }
 0x29b   :  { %2225 = vpow2.f32 %v581_v46  ;;  %v2839_v5 = vmul.f32 %v2220_v54, %v2491_v50  ;;  %v562_v40 = vsub.f32 %v2658_v41, %v2774_v9 }
 0x29c   :  { %v2222_v13 = vpop.eup %2221  ;;  %2227 = vpow2.f32 %v583_v38  ;;  %v587_v45 = vmul.f32 1.442695, %v559_v34 }
 0x29d   :  { %v2845_v12 = vmul.f32 %v2222_v13, %v2514_v31  ;;  %2229 = vpow2.f32 %v585_v26 }
 0x29e   :  { %611 = vadd.xlane.f32.xlu0 %v2809_v22  ;;  %2231 = vpow2.f32 %v587_v45 }
 0x2a2   :  { %613 = vadd.xlane.f32.xlu0 %v2815_v19 }
 0x2a4   :  { %v2224_v35 = vpop.eup %2223 }
 0x2a5   :  { %v2849_v32 = vmul.f32 %v2224_v35, %v2567_v6  ;;  %v2226_v50 = vpop.eup %2225  ;;  %v593_v6 = vmul.f32 1.442695, %v562_v40 }
 0x2a6   :  { %615 = vadd.xlane.f32.xlu0 %v2821_v48  ;;  %v2856_v4 = vmul.f32 %v2226_v50, %v2586_v56  ;;  %v2228_v25 = vpop.eup %2227 }
 0x2a7   :  { %v2860_v10 = vmul.f32 %v2228_v25, %v2550_v21 }
 0x2aa   :  { %617 = vadd.xlane.f32.xlu0 %v2827_v60 }
 0x2ae   :  { %621 = vadd.xlane.f32.xlu0 %v2833_v29 }
 0x2b2   :  { %623 = vadd.xlane.f32.xlu0 %v2839_v5 }
 0x2b6   :  { %625 = vadd.xlane.f32.xlu0 %v2845_v12 }
 0x2b9   :  { %v542_v37 = vpop.xlane.xlu1 %541 }
 0x2ba   :  { %v560_v24 = vsub.f32 %v2691_v63, %v542_v37  ;;  %627 = vadd.xlane.f32.xlu0 %v2849_v32  ;;  %v2230_v63 = vpop.eup %2229 }
 0x2bb   :  { %v2864_v41 = vmul.f32 %v2230_v63, %v2573_v15  ;;  %v2232_v9 = vpop.eup %2231 }
 0x2bc   :  { %v589_v31 = vmul.f32 1.442695, %v560_v24  ;;  %v2868_v61 = vmul.f32 %v2232_v9, %v2606_v23 }
 0x2bd   :  { %v1133_v7 = vpop.xlane.xlu1 %1132 }
 0x2be   :  { %629 = vadd.xlane.f32.xlu0 %v2856_v4  ;;  %2233 = vpow2.f32 %v589_v31 }
 0x2bf   :  { %2235 = vpow2.f32 %v593_v6 }
 0x2c0   :  { %v1141_v27 = vpop.xlane.xlu0 %1140 }
 0x2c1   :  { %v1129_v17 = vpop.xlane.xlu1 %1128 }
 0x2c2   :  { %631 = vadd.xlane.f32.xlu0 %v2860_v10  ;;  %2237 = vrcp.f32 %v1129_v17 }
 0x2c5   :  { %v1135_v56 = vpop.xlane.xlu1 %1134 }
 0x2c6   :  { %633 = vadd.xlane.f32.xlu0 %v2864_v41 }
 0x2c8   :  { %v2234_v47 = vpop.eup %2233 }
 0x2c9   :  { %v1131_v53 = vpop.xlane.xlu1 %1130  ;;  %v2872_v21 = vmul.f32 %v2234_v47, %v2652_v62  ;;  %v2236_v14 = vpop.eup %2235  ;;  %v2884_v62 = vld [vmem:[%s3032_s4] ss:$0 sm:$0xff] }
 0x2ca   :  { %2239 = vrcp.f32 %v1131_v53  ;;  %635 = vadd.xlane.f32.xlu0 %v2868_v61  ;;  %v2876_v15 = vmul.f32 %v2236_v14, %v2644_v20  ;;  %1224 = vrot.lane.b32.xlu1 %v2884_v62, %s2302_s17  ;;  %v1137_v20 = vpop.xlane.xlu0 %1136 }
 0x2cb   :  { %2241 = vrcp.f32 %v1135_v56 }
 0x2cc   :  { %v2238_v49 = vpop.eup %2237 }
 0x2cd   :  { %v1176_v16 = vmul.f32 %v2238_v49, %v2706_v2  ;;  %v1139_v46 = vpop.xlane.xlu1 %1138 }
 0x2ce   :  { %637 = vadd.xlane.f32.xlu0 %v2872_v21  ;;  %v1143_v54 = vpop.xlane.xlu0 %1142  ;;  %2243 = vrcp.f32 %v1139_v46 }
 0x2cf   :  { %2245 = vrcp.f32 %v1133_v7 }
 0x2d0   :  { %2247 = vrcp.f32 %v1137_v20 }
 0x2d1   :  { %2249 = vrcp.f32 %v1143_v54 }
 0x2d2   :  { %641 = vadd.xlane.f32.xlu0 %v2876_v15  ;;  %v1149_v2 = vpop.xlane.xlu0 %1148 }
 0x2d4   :  { %v2240_v23 = vpop.eup %2239 }
 0x2d5   :  { %v1177_v42 = vmul.f32 %v2240_v23, %v2726_v1  ;;  %v2242_v59 = vpop.eup %2241 }
 0x2d6   :  { %v1179_v45 = vmul.f32 %v2242_v59, %v2717_v36 }
 0x2d7   :  { %v1192_v43 = vpack.c.bf16 %v1177_v42, %v1176_v16 }
 0x2d8   :  { %v2244_v26 = vpop.eup %2243 }
 0x2d9   :  { %2023 = vmatprep.mubr.bf16.mxu0 %v1192_v43  ;;  %v1145_v51 = vpop.xlane.xlu0 %1144  ;;  %v2246_v34 = vpop.eup %2245  ;;  %v1181_v24 = vmul.f32 %v2244_v26, %v2733_v58 }
 0x2da   :  { %v2248_v35 = vpop.eup %2247  ;;  %v1178_v40 = vmul.f32 %v2246_v34, %v2696_v8 }
 0x2db   :  { %v1180_v31 = vmul.f32 %v2248_v35, %v2710_v57  ;;  %v2250_v7 = vpop.eup %2249 }
 0x2dc   :  { %v1193_v25 = vpack.c.bf16 %v1179_v45, %v1178_v40  ;;  %v1183_v9 = vmul.f32 %v2250_v7, %v2723_v33 }
 0x2dd   :  { %v1151_v50 = vpop.xlane.xlu0 %1150  ;;  %v1194_v6 = vpack.c.bf16 %v1181_v24, %v1180_v31 }
 0x2e2   :  { %v1147_v38 = vpop.xlane.xlu1 %1146 }
 0x2e3   :  { %2251 = vrcp.f32 %v1147_v38  ;;  %v3058_v38 = vld [vmem:[#allocation9_spill] sm:$0xff] }
 0x2e4   :  { %2253 = vrcp.f32 %v1141_v27 }
 0x2e5   :  { %2255 = vrcp.f32 %v1145_v51 }
 0x2e6   :  { %v1157_v1 = vpop.xlane.xlu1 %1156  ;;  %2257 = vrcp.f32 %v1151_v50 }
 0x2e7   :  { %2259 = vrcp.f32 %v1149_v2 }
 0x2eb   :  { %v1153_v13 = vpop.xlane.xlu1 %1152 }
 0x2ec   :  { %2261 = vrcp.f32 %v1153_v13 }
 0x2ed   :  { %v2252_v63 = vpop.eup %2251 }
 0x2ee   :  { %v2254_v17 = vpop.eup %2253  ;;  %v1185_v58 = vmul.f32 %v2252_v63, %v2758_v18 }
 0x2ef   :  { %v1215_v37 = vpop.permute.xlu1 %1214  ;;  %v2256_v36 = vpop.eup %2255  ;;  %v1182_v8 = vmul.f32 %v2254_v17, %v2700_v44 }
 0x2f0   :  { %2021 = vmatprep.subr.bf16.mxu0 %v1215_v37  ;;  %v1184_v56 = vmul.f32 %v2256_v36, %v2747_v30  ;;  %v2258_v53 = vpop.eup %2257 }
 0x2f1   :  { %2022 = vmatpush3.bf16.msra.mxu0 %v1215_v37  ;;  %v1195_v47 = vpack.c.bf16 %v1183_v9, %v1182_v8  ;;  %v2260_v14 = vpop.eup %2259  ;;  %v1187_v49 = vmul.f32 %v2258_v53, %v2754_v28 }
 0x2f2   :  { %v1196_v57 = vpack.c.bf16 %v1185_v58, %v1184_v56  ;;  %v1186_v27 = vmul.f32 %v2260_v14, %v2741_v11 }
 0x2f4   :  { %2024 = vmatmul.mubr.bf16.vlgmr.msra.gmra.mrb[16].mxu0 %v1193_v25  ;;  %v1197_v23 = vpack.c.bf16 %v1187_v49, %v1186_v27 }
 0x2f5   :  { %2027 = vmatprep.mubr.bf16.mxu0 %v1194_v6 }
 0x2f6   :  { %v2262_v30 = vpop.eup %2261 }
 0x2f7   :  { %v1188_v43 = vmul.f32 %v2262_v30, %v2766_v0 }
 0x2fc   :  { %2028 = vmatmul.mubr.bf16.gmra.mrb[20].mxu0 %v1195_v47 }
 0x2fd   :  { %2031 = vmatprep.mubr.bf16.mxu0 %v1196_v57 }
 0x304   :  { %2032 = vmatmul.mubr.bf16.gmra.mrb[24].mxu0 %v1197_v23 }
 0x320   :  { %v620_v59 = vpop.xlane.xlu1 %619 }
 0x323   :  { %v1155_v33 = vpop.xlane.xlu0 %1154 }
 0x324   :  { %2263 = vrcp.f32 %v1155_v33  ;;  %v640_v27 = vpop.xlane.xlu1 %639 }
 0x325   :  { %2265 = vrcp.f32 %v1157_v1 }
 0x327   :  { %v1159_v18 = vpop.xlane.xlu0 %1158 }
 0x328   :  { %2267 = vrcp.f32 %v1159_v18 }
 0x32b   :  { %v612_v44 = vpop.xlane.xlu0 %611 }
 0x32c   :  { %2269 = vrcp.f32 %v612_v44 }
 0x32e   :  { %v2264_v16 = vpop.eup %2263 }
 0x32f   :  { %v614_v42 = vpop.xlane.xlu0 %613  ;;  %v1189_v20 = vmul.f32 %v2264_v16, %v2793_v55  ;;  %v2266_v28 = vpop.eup %2265 }
 0x330   :  { %2271 = vrcp.f32 %v614_v42  ;;  %v1190_v2 = vmul.f32 %v2266_v28, %v3058_v38  ;;  %v2171_v38 = vld [vmem:[%s3033_s5 + $0x30] sm:$0xff]  }
 0x331   :  { %v1198_v11 = vpack.c.bf16 %v1189_v20, %v1188_v43 }
 0x332   :  { %v2268_v46 = vpop.eup %2267 }
 0x333   :  { %2035 = vmatprep.mubr.bf16.mxu0 %v1198_v11  ;;  %v616_v54 = vpop.xlane.xlu0 %615  ;;  %v1191_v1 = vmul.f32 %v2268_v46, %v2803_v52 }
 0x334   :  { %2273 = vrcp.f32 %v616_v54  ;;  %v2170_v54 = vld [vmem:[%s3033_s5 + $0x28] sm:$0xff]  }
 0x335   :  { %v1199_v51 = vpack.c.bf16 %v1191_v1, %v1190_v2  ;;  %v2172_v1 = vld [vmem:[%s3033_s5 + $0x38] sm:$0xff]  }
 0x336   :  { %v2270_v26 = vpop.eup %2269 }
 0x337   :  { %2036 = vmatmul.mubr.bf16.gmra.mrb[28].mxu0 %v1199_v51  ;;  %v618_v13 = vpop.xlane.xlu0 %617  ;;  %v659_v34 = vmul.f32 %v2270_v26, %v2809_v22 }
 0x338   :  { %2275 = vrcp.f32 %v618_v13 }
 0x339   :  { %2277 = vrcp.f32 %v620_v59 }
 0x33a   :  { %v2272_v0 = vpop.eup %2271 }
 0x33b   :  { %v622_v55 = vpop.xlane.xlu0 %621  ;;  %v660_v35 = vmul.f32 %v2272_v0, %v2815_v19 }
 0x33c   :  { %2279 = vrcp.f32 %v622_v55  ;;  %v1225_v2 = vpop.permute.xlu1 %1224 }
 0x33d   :  { %v675_v45 = vpack.c.bf16 %v660_v35, %v659_v34 }
 0x33e   :  { %v2274_v37 = vpop.eup %2273 }
 0x33f   :  { %1991 = vmatprep.mubr.bf16.mxu1 %v675_v45  ;;  %v624_v50 = vpop.xlane.xlu0 %623  ;;  %v661_v40 = vmul.f32 %v2274_v37, %v2821_v48 }
 0x340   :  { %2281 = vrcp.f32 %v624_v50 }
 0x342   :  { %v2276_v52 = vpop.eup %2275 }
 0x343   :  { %v626_v24 = vpop.xlane.xlu0 %625  ;;  %v662_v31 = vmul.f32 %v2276_v52, %v2827_v60  ;;  %v2278_v25 = vpop.eup %2277 }
 0x344   :  { %2283 = vrcp.f32 %v626_v24  ;;  %v663_v19 = vmul.f32 %v2278_v25, %v2787_v39 }
 0x345   :  { %v676_v7 = vpack.c.bf16 %v662_v31, %v661_v40 }
 0x346   :  { %v2280_v6 = vpop.eup %2279 }
 0x347   :  { %1992 = vmatmul.mubr.bf16.vlgmr.msra.gmra.mrb[0].mxu1 %v676_v7  ;;  %v628_v22 = vpop.xlane.xlu0 %627  ;;  %v664_v63 = vmul.f32 %v2280_v6, %v2833_v29 }
 0x348   :  { %2285 = vrcp.f32 %v628_v22 }
 0x349   :  { %v677_v17 = vpack.c.bf16 %v664_v63, %v663_v19 }
 0x34a   :  { %v2282_v9 = vpop.eup %2281 }
 0x34b   :  { %1995 = vmatprep.mubr.bf16.mxu1 %v677_v17  ;;  %v630_v36 = vpop.xlane.xlu0 %629  ;;  %v665_v60 = vmul.f32 %v2282_v9, %v2839_v5 }
 0x34c   :  { %2287 = vrcp.f32 %v630_v36 }
 0x34e   :  { %v2284_v58 = vpop.eup %2283 }
 0x34f   :  { %v632_v48 = vpop.xlane.xlu0 %631  ;;  %v666_v8 = vmul.f32 %v2284_v58, %v2845_v12 }
 0x350   :  { %2289 = vrcp.f32 %v632_v48 }
 0x351   :  { %v678_v56 = vpack.c.bf16 %v666_v8, %v665_v60 }
 0x352   :  { %v2286_v53 = vpop.eup %2285 }
 0x353   :  { %1996 = vmatmul.mubr.bf16.gmra.mrb[4].mxu1 %v678_v56  ;;  %v634_v47 = vpop.xlane.xlu0 %633  ;;  %v667_v57 = vmul.f32 %v2286_v53, %v2849_v32 }
 0x354   :  { %2291 = vrcp.f32 %v634_v47 }
 0x356   :  { %v2288_v39 = vpop.eup %2287 }
 0x357   :  { %v636_v29 = vpop.xlane.xlu0 %635  ;;  %v668_v14 = vmul.f32 %v2288_v39, %v2856_v4 }
 0x358   :  { %2293 = vrcp.f32 %v636_v29 }
 0x359   :  { %v679_v49 = vpack.c.bf16 %v668_v14, %v667_v57 }
 0x35a   :  { %v2290_v5 = vpop.eup %2289 }
 0x35b   :  { %1999 = vmatprep.mubr.bf16.mxu1 %v679_v49  ;;  %v638_v23 = vpop.xlane.xlu0 %637  ;;  %v669_v18 = vmul.f32 %v2290_v5, %v2860_v10 }
 0x35c   :  { %2295 = vrcp.f32 %v638_v23 }
 0x35d   :  { %2297 = vrcp.f32 %v640_v27 }
 0x35e   :  { %v2292_v12 = vpop.eup %2291 }
 0x35f   :  { %v642_v33 = vpop.xlane.xlu0 %641  ;;  %v670_v44 = vmul.f32 %v2292_v12, %v2864_v41  ;;  %v2165_v41 = vld [vmem:[%s3033_s5] sm:$0xff]  }
 0x360   :  { %2299 = vrcp.f32 %v642_v33  ;;  %2039 = vmatprep.subr.bf16.mxu1 %v2165_v41 }
 0x361   :  { %v680_v30 = vpack.c.bf16 %v670_v44, %v669_v18  ;;  %2040 = vmatpush3.bf16.msra.mxu1 %v2165_v41 }
 0x362   :  { %v2294_v32 = vpop.eup %2293 }
 0x363   :  { %2000 = vmatmul.mubr.bf16.gmra.mrb[8].mxu1 %v680_v30  ;;  %v671_v4 = vmul.f32 %v2294_v32, %v2868_v61  ;;  %v2166_v61 = vld [vmem:[%s3033_s5 + $0x8] sm:$0xff]  }
 0x364   :  { %2041 = vmatprep.subr.bf16.mxu1 %v2166_v61 }
 0x365   :  { %2042 = vmatpush3.bf16.msra.mxu1 %v2166_v61 }
 0x366   :  { %v2296_v16 = vpop.eup %2295 }
 0x367   :  { %v672_v42 = vmul.f32 %v2296_v16, %v2872_v21  ;;  %v2298_v43 = vpop.eup %2297  ;;  %v2167_v21 = vld [vmem:[%s3033_s5 + $0x10] sm:$0xff]  }
 0x368   :  { %v673_v11 = vmul.f32 %v2298_v43, %v2796_v3  ;;  %2043 = vmatprep.subr.bf16.mxu1 %v2167_v21  ;;  %v2168_v3 = vld [vmem:[%s3033_s5 + $0x18] sm:$0xff]  }
 0x369   :  { %v681_v20 = vpack.c.bf16 %v672_v42, %v671_v4  ;;  %2044 = vmatpush3.bf16.msra.mxu1 %v2167_v21 }
 0x36a   :  { %v2300_v28 = vpop.eup %2299  ;;  %2045 = vmatprep.subr.bf16.mxu1 %v2168_v3 }
 0x36b   :  { %2003 = vmatprep.mubr.bf16.mxu1 %v681_v20  ;;  %v674_v46 = vmul.f32 %v2300_v28, %v2876_v15  ;;  %v2169_v15 = vld [vmem:[%s3033_s5 + $0x20] sm:$0xff]  }
 0x36d   :  { %v682_v10 = vpack.c.bf16 %v674_v46, %v673_v11  ;;  %2046 = vmatpush3.bf16.msra.mxu1 %v2168_v3 }
 0x36e   :  { %2047 = vmatprep.subr.bf16.mxu1 %v2169_v15 }
 0x36f   :  { %2004 = vmatmul.mubr.bf16.gmra.mrb[12].mxu1 %v682_v10 }
 0x371   :  { %2048 = vmatpush3.bf16.msra.mxu1 %v2169_v15 }
 0x372   :  { %2049 = vmatprep.subr.bf16.mxu1 %v2170_v54 }
 0x375   :  { %2050 = vmatpush3.bf16.msra.mxu1 %v2170_v54 }
 0x376   :  { %2051 = vmatprep.subr.bf16.mxu1 %v2171_v38 }
 0x379   :  { %2052 = vmatpush3.bf16.msra.mxu1 %v2171_v38 }
 0x37a   :  { %2053 = vmatprep.subr.bf16.mxu1 %v2172_v1 }
 0x37d   :  { %2054 = vmatpush3.bf16.msra.mxu1 %v2172_v1 }
 0x3c7   :  { %v2025_v51 = vpop.f32.mrb[16].mxu0 }
 0x3c8   :  { %v1270_v59 = vadd.f32 %v2025_v51, %v1225_v2  ;;  %v1261_v13 = vpop.f32.mrb[17].mxu0 }
 0x3c9   :  { %v1262_v26 = vadd.f32 %v1261_v13, %v1225_v2  ;;  %v2026_v0 = vpop.f32.mrb[18].mxu0 }
 0x3ca   :  { %v1273_v55 = vadd.f32 %v2026_v0, %v1225_v2  ;;  %v1264_v34 = vpop.f32.mrb[19].mxu0  ;;  %v1326_v45 = vmax.f32 %v1270_v59, 0.0 }
 0x3cb   :  { %v1265_v35 = vadd.f32 %v1264_v34, %v1225_v2  ;;  %v1324_v37 = vmax.f32 %v1262_v26, 0.0 }
 0x3cc   :  { %v1327_v50 = vmax.f32 %v1273_v55, 0.0 }
 0x3cd   :  { %v1325_v52 = vmax.f32 %v1265_v35, 0.0 }
 0x3ce   :  { %v2105_v24 = vpack.i.bf16 %v1327_v50, %v1326_v45 }
 0x3cf   :  { %v2100_v40 = vpack.i.bf16 %v1325_v52, %v1324_v37  ;;  %v2029_v31 = vpop.f32.mrb[20].mxu0 }
 0x3d0   :  { %v1286_v25 = vadd.f32 %v2029_v31, %v1225_v2  ;;  %2106 = vrot.lane.b32.xlu1 %v2105_v24, %s2304_s23  ;;  %v1277_v7 = vpop.f32.mrb[21].mxu0 }
 0x3d1   :  { %v1278_v6 = vadd.f32 %v1277_v7, %v1225_v2  ;;  %2101 = vrot.lane.b32.xlu0 %v2100_v40, %s2304_s23  ;;  %v2030_v22 = vpop.f32.mrb[22].mxu0 }
 0x3d2   :  { %v1289_v19 = vadd.f32 %v2030_v22, %v1225_v2  ;;  %v1280_v63 = vpop.f32.mrb[23].mxu0  ;;  %v1330_v36 = vmax.f32 %v1286_v25, 0.0 }
 0x3d3   :  { %v1281_v17 = vadd.f32 %v1280_v63, %v1225_v2  ;;  %v1328_v58 = vmax.f32 %v1278_v6, 0.0 }
 0x3d4   :  { %v1331_v9 = vmax.f32 %v1289_v19, 0.0 }
 0x3d5   :  { %v1329_v48 = vmax.f32 %v1281_v17, 0.0 }
 0x3d6   :  { %v2115_v60 = vpack.i.bf16 %v1331_v9, %v1330_v36 }
 0x3d7   :  { %v2110_v8 = vpack.i.bf16 %v1329_v48, %v1328_v58  ;;  %v2033_v56 = vpop.f32.mrb[24].mxu0 }
 0x3d8   :  { %v1302_v47 = vadd.f32 %v2033_v56, %v1225_v2  ;;  %2116 = vrot.lane.b32.xlu0 %v2115_v60, %s2304_s23  ;;  %v1293_v53 = vpop.f32.mrb[25].mxu0 }
 0x3d9   :  { %v1294_v39 = vadd.f32 %v1293_v53, %v1225_v2  ;;  %2111 = vrot.lane.b32.xlu1 %v2110_v8, %s2304_s23  ;;  %v2034_v29 = vpop.f32.mrb[26].mxu0 }
 0x3da   :  { %v1305_v57 = vadd.f32 %v2034_v29, %v1225_v2  ;;  %v1296_v14 = vpop.f32.mrb[27].mxu0  ;;  %v1334_v27 = vmax.f32 %v1302_v47, 0.0 }
 0x3db   :  { %v1297_v49 = vadd.f32 %v1296_v14, %v1225_v2  ;;  %v1332_v5 = vmax.f32 %v1294_v39, 0.0 }
 0x3dc   :  { %v1335_v23 = vmax.f32 %v1305_v57, 0.0 }
 0x3dd   :  { %v1333_v12 = vmax.f32 %v1297_v49, 0.0 }
 0x3de   :  { %v2125_v33 = vpack.i.bf16 %v1335_v23, %v1334_v27 }
 0x3df   :  { %v2120_v18 = vpack.i.bf16 %v1333_v12, %v1332_v5 }
 0x3e0   :  { %2126 = vrot.lane.b32.xlu0 %v2125_v33, %s2304_s23 }
 0x3e1   :  { %2121 = vrot.lane.b32.xlu1 %v2120_v18, %s2304_s23 }
 0x40a   :  { %v2037_v44 = vpop.f32.mrb[28].mxu0 }
 0x40b   :  { %v1318_v30 = vadd.f32 %v2037_v44, %v1225_v2  ;;  %v1309_v32 = vpop.f32.mrb[29].mxu0 }
 0x40c   :  { %v1310_v16 = vadd.f32 %v1309_v32, %v1225_v2  ;;  %v2038_v4 = vpop.f32.mrb[30].mxu0 }
 0x40d   :  { %v1321_v42 = vadd.f32 %v2038_v4, %v1225_v2  ;;  %v1312_v43 = vpop.f32.mrb[31].mxu0  ;;  %v1338_v28 = vmax.f32 %v1318_v30, 0.0 }
 0x40e   :  { %v1313_v20 = vadd.f32 %v1312_v43, %v1225_v2  ;;  %v1336_v46 = vmax.f32 %v1310_v16, 0.0 }
 0x40f   :  { %v1339_v11 = vmax.f32 %v1321_v42, 0.0 }
 0x410   :  { %v1337_v10 = vmax.f32 %v1313_v20, 0.0 }
 0x411   :  { %v2135_v41 = vpack.i.bf16 %v1339_v11, %v1338_v28 }
 0x412   :  { %v2130_v61 = vpack.i.bf16 %v1337_v10, %v1336_v46 }
 0x413   :  { %2136 = vrot.lane.b32.xlu0 %v2135_v41, %s2304_s23 }
 0x414   :  { %2131 = vrot.lane.b32.xlu1 %v2130_v61, %s2304_s23 }
 0x41a   :  { %v1993_v21 = vpop.f32.mrb[0].mxu1 }
 0x41b   :  { %v788_v3 = vpop.f32.mrb[1].mxu1  ;;  %v797_v55 = vadd.f32 %v1993_v21, %v2884_v62 }
 0x41c   :  { %v1994_v15 = vpop.f32.mrb[2].mxu1  ;;  %v789_v35 = vadd.f32 %v2884_v62, %v788_v3 }
 0x41d   :  { %v791_v54 = vpop.f32.mrb[3].mxu1  ;;  %v800_v34 = vadd.f32 %v1994_v15, %v2884_v62  ;;  %v853_v37 = vmax.f32 %v797_v55, 0.0 }
 0x41e   :  { %v792_v45 = vadd.f32 %v2884_v62, %v791_v54  ;;  %v851_v7 = vmax.f32 %v789_v35, 0.0 }
 0x41f   :  { %v854_v52 = vmax.f32 %v800_v34, 0.0 }
 0x420   :  { %v852_v6 = vmax.f32 %v792_v45, 0.0 }
 0x426   :  { %v1997_v38 = vpop.f32.mrb[4].mxu1 }
 0x427   :  { %v804_v1 = vpop.f32.mrb[5].mxu1  ;;  %v813_v47 = vadd.f32 %v1997_v38, %v2884_v62 }
 0x428   :  { %v1998_v51 = vpop.f32.mrb[6].mxu1  ;;  %v805_v29 = vadd.f32 %v2884_v62, %v804_v1 }
 0x429   :  { %v807_v59 = vpop.f32.mrb[7].mxu1  ;;  %v816_v53 = vadd.f32 %v1998_v51, %v2884_v62  ;;  %v857_v49 = vmax.f32 %v813_v47, 0.0 }
 0x42a   :  { %v808_v57 = vadd.f32 %v2884_v62, %v807_v59  ;;  %v855_v33 = vmax.f32 %v805_v29, 0.0 }
 0x42b   :  { %v858_v27 = vmax.f32 %v816_v53, 0.0 }
 0x42c   :  { %v856_v18 = vmax.f32 %v808_v57, 0.0 }
 0x436   :  { %v2001_v13 = vpop.f32.mrb[8].mxu1 }
 0x437   :  { %v820_v2 = vpop.f32.mrb[9].mxu1  ;;  %v829_v20 = vadd.f32 %v2001_v13, %v2884_v62 }
 0x438   :  { %v2002_v26 = vpop.f32.mrb[10].mxu1  ;;  %v821_v46 = vadd.f32 %v2884_v62, %v820_v2 }
 0x439   :  { %v823_v0 = vpop.f32.mrb[11].mxu1  ;;  %v832_v28 = vadd.f32 %v2002_v26, %v2884_v62  ;;  %v861_v61 = vmax.f32 %v829_v20, 0.0 }
 0x43a   :  { %v824_v10 = vadd.f32 %v2884_v62, %v823_v0  ;;  %v859_v38 = vmax.f32 %v821_v46, 0.0 }
 0x43b   :  { %v862_v21 = vmax.f32 %v832_v28, 0.0 }
 0x43c   :  { %v860_v1 = vmax.f32 %v824_v10, 0.0 }
 0x442   :  { %v2107_v50 = vpop.permute.xlu1 %2106  ;;  %v2005_v31 = vpop.f32.mrb[12].mxu1 }
 0x443   :  { %v2109_v24 = vunpack.i.h.bf16 %v2107_v50  ;;  %v2108_v40 = vunpack.i.l.bf16 %v2107_v50  ;;  %v2102_v25 = vpop.permute.xlu0 %2101  ;;  %v836_v22 = vpop.f32.mrb[13].mxu1  ;;  %v845_v35 = vadd.f32 %v2005_v31, %v2884_v62 }
 0x444   :  { %v2104_v19 = vunpack.i.h.bf16 %v2102_v25  ;;  %v2103_v63 = vunpack.i.l.bf16 %v2102_v25  ;;  %v2006_v9 = vpop.f32.mrb[14].mxu1  ;;  %v837_v50 = vadd.f32 %v2884_v62, %v836_v22 }
 0x445   :  { %v1407_v17 = vsel %vm1404_vm0, %v853_v37, %v2108_v40  ;;  %v1408_v36 = vsel %vm1404_vm0, %v854_v52, %v2109_v24  ;;  %v839_v8 = vpop.f32.mrb[15].mxu1  ;;  %v848_v45 = vadd.f32 %v2006_v9, %v2884_v62  ;;  %v865_v24 = vmax.f32 %v845_v35, 0.0 }
 0x446   :  { %v1748_v58 = vpack.c.bf16 %v1408_v36, %v1407_v17  ;;  %v1406_v48 = vsel %vm1404_vm0, %v852_v6, %v2104_v19  ;;  %v1405_v60 = vsel %vm1404_vm0, %v851_v7, %v2103_v63  ;;  %v840_v37 = vadd.f32 %v2884_v62, %v839_v8 }
 0x447   :  { %v1745_v39 = vpack.c.bf16 %v1406_v48, %v1405_v60  ;;  %v866_v40 = vmax.f32 %v848_v45, 0.0  ;;  %v863_v19 = vmax.f32 %v837_v50, 0.0 }
 0x448   :  { %v864_v63 = vmax.f32 %v840_v37, 0.0 }
 0x449   :  { %2055 = vmatprep.mubr.msk.bf16.mxu1 %vm2960_vm2, %v1745_v39 }
 0x44a   :  { %v2117_v14 = vpop.permute.xlu0 %2116  ;;  %2056 = vmatmul.mubr.msk.bf16.vlgmr.msra.gmra.mrb[16].mxu1 %vm2960_vm2, %v1748_v58 }
 0x44b   :  { %v2119_v23 = vunpack.i.h.bf16 %v2117_v14  ;;  %v2118_v5 = vunpack.i.l.bf16 %v2117_v14  ;;  %v2112_v12 = vpop.permute.xlu1 %2111 }
 0x44c   :  { %v2114_v44 = vunpack.i.h.bf16 %v2112_v12  ;;  %v2113_v30 = vunpack.i.l.bf16 %v2112_v12 }
 0x44d   :  { %v1412_v32 = vsel %vm1404_vm0, %v858_v27, %v2119_v23  ;;  %v1411_v16 = vsel %vm1404_vm0, %v857_v49, %v2118_v5 }
 0x44e   :  { %v1754_v4 = vpack.c.bf16 %v1412_v32, %v1411_v16  ;;  %v1409_v42 = vsel %vm1404_vm0, %v855_v33, %v2113_v30  ;;  %v1410_v43 = vsel %vm1404_vm0, %v856_v18, %v2114_v44 }
 0x44f   :  { %v1751_v11 = vpack.c.bf16 %v1410_v43, %v1409_v42 }
 0x451   :  { %2059 = vmatprep.mubr.msk.bf16.mxu1 %vm2960_vm2, %v1751_v11 }
 0x452   :  { %v2127_v41 = vpop.permute.xlu0 %2126  ;;  %2060 = vmatmul.mubr.msk.bf16.gmra.mrb[20].mxu1 %vm2960_vm2, %v1754_v4 }
 0x453   :  { %v2129_v3 = vunpack.i.h.bf16 %v2127_v41  ;;  %v2128_v15 = vunpack.i.l.bf16 %v2127_v41  ;;  %v2122_v54 = vpop.permute.xlu1 %2121 }
 0x454   :  { %v2124_v51 = vunpack.i.h.bf16 %v2122_v54  ;;  %v2123_v59 = vunpack.i.l.bf16 %v2122_v54 }
 0x455   :  { %v1416_v13 = vsel %vm1404_vm0, %v862_v21, %v2129_v3  ;;  %v1415_v2 = vsel %vm1404_vm0, %v861_v61, %v2128_v15 }
 0x456   :  { %v1760_v26 = vpack.c.bf16 %v1416_v13, %v1415_v2  ;;  %v1413_v0 = vsel %vm1404_vm0, %v859_v38, %v2123_v59  ;;  %v1414_v55 = vsel %vm1404_vm0, %v860_v1, %v2124_v51 }
 0x457   :  { %v1757_v34 = vpack.c.bf16 %v1414_v55, %v1413_v0 }
 0x459   :  { %2063 = vmatprep.mubr.msk.bf16.mxu1 %vm2960_vm2, %v1757_v34 }
 0x45a   :  { %2064 = vmatmul.mubr.msk.bf16.gmra.mrb[24].mxu1 %vm2960_vm2, %v1760_v26 }
 0x485   :  { %v2137_v52 = vpop.permute.xlu0 %2136 }
 0x486   :  { %v2139_v25 = vunpack.i.h.bf16 %v2137_v52  ;;  %v2138_v7 = vunpack.i.l.bf16 %v2137_v52  ;;  %v2132_v6 = vpop.permute.xlu1 %2131 }
 0x487   :  { %v2134_v17 = vunpack.i.h.bf16 %v2132_v6  ;;  %v2133_v36 = vunpack.i.l.bf16 %v2132_v6 }
 0x488   :  { %v1420_v58 = vsel %vm1404_vm0, %v866_v40, %v2139_v25  ;;  %v1419_v31 = vsel %vm1404_vm0, %v865_v24, %v2138_v7 }
 0x489   :  { %v1766_v48 = vpack.c.bf16 %v1420_v58, %v1419_v31  ;;  %v1417_v9 = vsel %vm1404_vm0, %v863_v19, %v2133_v36  ;;  %v1418_v22 = vsel %vm1404_vm0, %v864_v63, %v2134_v17 }
 0x48a   :  { %v1763_v62 = vpack.c.bf16 %v1418_v22, %v1417_v9 }
 0x48c   :  { %2067 = vmatprep.mubr.msk.bf16.mxu1 %vm2960_vm2, %v1763_v62 }
 0x48d   :  { %2068 = vmatmul.mubr.msk.bf16.gmra.mrb[28].mxu1 %vm2960_vm2, %v1766_v48 }
 0x51d   :  { %v2057_v60 = vpop.f32.mrb[16].mxu1 }
 0x51e   :  { %v1544_v8 = vpop.f32.mrb[17].mxu1 }
 0x51f   :  { %v2058_v47 = vpop.f32.mrb[18].mxu1 }
 0x520   :  { %v1808_v53 = vpack.c.bf16 %v2058_v47, %v2057_v60  ;;  %v1547_v39 = vpop.f32.mrb[19].mxu1 }
 0x521   :  { %v1803_v29 = vpack.c.bf16 %v1547_v39, %v1544_v8 }
 0x522   :  { %1840 = vst [vmem:[%s3034_s6 + $0x8] sm:$0xff] %v1808_v53  }
 0x523   :  { %1804 = vst [vmem:[%s3034_s6] sm:$0xff] %v1803_v29  }
 0x525   :  { %v2061_v57 = vpop.f32.mrb[20].mxu1 }
 0x526   :  { %v1560_v14 = vpop.f32.mrb[21].mxu1 }
 0x527   :  { %v2062_v49 = vpop.f32.mrb[22].mxu1 }
 0x528   :  { %v1818_v27 = vpack.c.bf16 %v2062_v49, %v2061_v57  ;;  %v1563_v56 = vpop.f32.mrb[23].mxu1 }
 0x529   :  { %v1813_v23 = vpack.c.bf16 %v1563_v56, %v1560_v14 }
 0x52a   :  { %1842 = vst [vmem:[%s3034_s6 + $0x18] sm:$0xff] %v1818_v27  }
 0x52b   :  { %1841 = vst [vmem:[%s3034_s6 + $0x10] sm:$0xff] %v1813_v23  }
 0x52d   :  { %v2065_v5 = vpop.f32.mrb[24].mxu1 }
 0x52e   :  { %v1576_v12 = vpop.f32.mrb[25].mxu1 }
 0x52f   :  { %v2066_v33 = vpop.f32.mrb[26].mxu1 }
 0x530   :  { %v1828_v18 = vpack.c.bf16 %v2066_v33, %v2065_v5  ;;  %v1579_v44 = vpop.f32.mrb[27].mxu1 }
 0x531   :  { %v1823_v30 = vpack.c.bf16 %v1579_v44, %v1576_v12 }
 0x532   :  { %1844 = vst [vmem:[%s3034_s6 + $0x28] sm:$0xff] %v1828_v18  }
 0x533   :  { %1843 = vst [vmem:[%s3034_s6 + $0x20] sm:$0xff] %v1823_v30  }
 0x560   :  { %v2069_v32 = vpop.f32.mrb[28].mxu1 }
 0x561   :  { %v1592_v16 = vpop.f32.mrb[29].mxu1 }
 0x562   :  { %v2070_v4 = vpop.f32.mrb[30].mxu1 }
 0x563   :  { %v1838_v42 = vpack.c.bf16 %v2070_v4, %v2069_v32  ;;  %v1595_v43 = vpop.f32.mrb[31].mxu1 }
 0x564   :  { %v1833_v20 = vpack.c.bf16 %v1595_v43, %v1592_v16 }
 0x565   :  { %1846 = vst [vmem:[%s3034_s6 + $0x38] sm:$0xff] %v1838_v42  }
 0x566   :  { %1845 = vst [vmem:[%s3034_s6 + $0x30] sm:$0xff] %v1833_v20  }

// kernel: gat_forward.5
= control target key start
LH: loop header
LB: loop body
LE: loop exit
PB: predicated region body
PF: predicated region fallthrough
CT: control target
= control target key end

     0   :  { %v1748_v1 = vmov 0.0   ;;  %vm1749_vm0 = vmmov 0   ;;  %v1750_v3 = vmov 0   ;;  %v516_v47 = vlaneseq  ;;  %s2544_s3 = inlined_call_operand.vmem [shape: bf16[128,1], index: 3, kind: input, shape index: {}]   ;;  %s2545_s1 = inlined_call_operand.vmem [shape: bf16[128,128], index: 1, kind: input, shape index: {}]   ;;  %s2546_s2 = inlined_call_operand.vmem [shape: bf16[1,128], index: 2, kind: input, shape index: {}]   ;;  %s2547_s0 = inlined_call_operand.vmem [shape: s8[128,128], index: 0, kind: input, shape index: {}]   ;;  %s2548_s4 = inlined_call_operand.vmem [shape: f32[1,128], index: 4, kind: input, shape index: {}]   ;;  %s2549_s5 = inlined_call_operand.vmem [shape: f32[128,128], index: 5, kind: output, shape index: {}]  }
   0x1   :  { %v1532_v0 = vld [vmem:[%s2544_s3] sm:$0xff]   ;;  %1468 = vmatprep.subr.bf16.mxu1 %v1748_v1  ;;  %1484 = vmatprep.mubr.msk.bf16.mxu1 %vm1749_vm0, %v1748_v1  ;;  %v1533_v2 = vld [vmem:[%s2544_s3 + $0x8] sm:$0xff]   ;;  %v1534_v4 = vld [vmem:[%s2544_s3 + $0x10] sm:$0xff]  }
   0x2   :  { %1530 = vset.pattern.permute.xlu1 %v1750_v3  ;;  %1531 = vset.pattern.permute.xlu0 %v1750_v3  ;;  %v1535_v5 = vld [vmem:[%s2544_s3 + $0x18] sm:$0xff]   ;;  %v1540_v6 = vld [vmem:[%s2545_s1] sm:$0xff]   ;;  %v1537_v8 = vld [vmem:[%s2544_s3 + $0x28] sm:$0xff]   ;;  %v517_v49 = vshrl.u32 %v516_v47, 7 }
   0x3   :  { %1436 = vmatprep.subr.bf16.mxu0 %v1532_v0  ;;  %1452 = vmatprep.mubr.bf16.mxu0 %v1540_v6  ;;  %v1536_v7 = vld [vmem:[%s2544_s3 + $0x20] sm:$0xff]   ;;  %v1538_v10 = vld [vmem:[%s2544_s3 + $0x30] sm:$0xff]   ;;  %v1549_v11 = vld [vmem:[%s2545_s1 + $0x8] sm:$0xff]  }
   0x4   :  { %1437 = vmatpush3.bf16.msra.mxu0 %v1532_v0  ;;  %v1548_v9 = vld [vmem:[%s2545_s1] sm:$0xff]   ;;  %v1539_v12 = vld [vmem:[%s2544_s3 + $0x38] sm:$0xff]   ;;  %v1541_v13 = vld [vmem:[%s2545_s1 + $0x8] sm:$0xff]   ;;  %v518_v53 = vsub.s32 0, %v517_v49 }
   0x5   :  { %1438 = vmatprep.subr.bf16.mxu0 %v1533_v2  ;;  %1469 = vmatpush3.bf16.xpose.msra.mxu1 %v1548_v9  ;;  %v1550_v14 = vld [vmem:[%s2545_s1 + $0x10] sm:$0xff]   ;;  %v1543_v16 = vld [vmem:[%s2545_s1 + $0x18] sm:$0xff]   ;;  %v1544_v18 = vld [vmem:[%s2545_s1 + $0x20] sm:$0xff]  }
   0x6   :  { %1470 = vmatprep.subr.bf16.mxu1 %v1748_v1  ;;  %v1542_v15 = vld [vmem:[%s2545_s1 + $0x10] sm:$0xff]   ;;  %v1551_v17 = vld [vmem:[%s2545_s1 + $0x18] sm:$0xff]   ;;  %v1545_v19 = vld [vmem:[%s2545_s1 + $0x28] sm:$0xff]  }
   0x7   :  { %v1552_v20 = vld [vmem:[%s2545_s1 + $0x20] sm:$0xff]   ;;  %v1546_v21 = vld [vmem:[%s2545_s1 + $0x30] sm:$0xff]   ;;  %v1553_v22 = vld [vmem:[%s2545_s1 + $0x28] sm:$0xff]  }
   0x8   :  { %1439 = vmatpush3.bf16.msra.mxu0 %v1533_v2  ;;  %v1547_v23 = vld [vmem:[%s2545_s1 + $0x38] sm:$0xff]   ;;  %v1554_v24 = vld [vmem:[%s2545_s1 + $0x30] sm:$0xff]   ;;  %v331_v26 = vld [vmem:[%s2546_s2] sm:$0x1] }
   0x9   :  { %1440 = vmatprep.subr.bf16.mxu0 %v1534_v4  ;;  %v1555_v25 = vld [vmem:[%s2545_s1 + $0x38] sm:$0xff]   ;;  %v1364_v48 = vld [vmem:[%s2547_s0] sm:$0xff]   ;;  %v1521_v56 = vld [vmem:[%s2547_s0 + $0x8] sm:$0xff]  }
   0xa   :  { %v1365_v50 = vunpack.c.0.s8 %v1364_v48  ;;  %v1369_v51 = vunpack.c.2.s8 %v1364_v48  ;;  %v1366_v52 = vunpack.c.1.s8 %v1364_v48  ;;  %v1370_v58 = vunpack.c.3.s8 %v1364_v48  ;;  %v1889_v6 = vld [vmem:[%s2547_s0 + $0x10] sm:$0xff]  }
   0xb   :  { %v1377_v61 = vunpack.c.2.s8 %v1521_v56 }
   0xc   :  { %1441 = vmatpush3.bf16.msra.mxu0 %v1534_v4  ;;  %v1869_v54 = vcvt.s32.f32 %v1365_v50  ;;  %v1871_v55 = vcvt.s32.f32 %v1369_v51  ;;  %v1876_v57 = vcvt.s32.f32 %v1366_v52  ;;  %v1883_v2 = vcvt.s32.f32 %v1370_v58 }
   0xd   :  { %1442 = vmatprep.subr.bf16.mxu0 %v1535_v5  ;;  %1471 = vmatpush3.bf16.xpose.msra.mxu1 %v1549_v11 }
   0xe   :  { %1472 = vmatprep.subr.bf16.mxu1 %v1748_v1  ;;  %v1320_v60 = vadd.f32 -1.0, %v1869_v54  ;;  %v1322_v62 = vadd.f32 -1.0, %v1871_v55  ;;  %v1321_v0 = vadd.f32 -1.0, %v1876_v57 }
  0x10   :  { %1443 = vmatpush3.bf16.msra.mxu0 %v1535_v5  ;;  %v1374_v5 = vunpack.c.1.s8 %v1521_v56 }
  0x11   :  { %1444 = vmatprep.subr.bf16.mxu0 %v1536_v7 }
  0x14   :  { %1445 = vmatpush3.bf16.msra.mxu0 %v1536_v7 }
  0x15   :  { %1446 = vmatprep.subr.bf16.mxu0 %v1537_v8  ;;  %1473 = vmatpush3.bf16.xpose.msra.mxu1 %v1550_v14 }
  0x16   :  { %1474 = vmatprep.subr.bf16.mxu1 %v1748_v1 }
  0x18   :  { %1447 = vmatpush3.bf16.msra.mxu0 %v1537_v8  ;;  %v85_v8 = vmul.f32 1e+30, %v1320_v60 }
  0x19   :  { %1448 = vmatprep.subr.bf16.mxu0 %v1538_v10 }
  0x1c   :  { %1449 = vmatpush3.bf16.msra.mxu0 %v1538_v10 }
  0x1d   :  { %1450 = vmatprep.subr.bf16.mxu0 %v1539_v12  ;;  %1475 = vmatpush3.bf16.xpose.msra.mxu1 %v1551_v17 }
  0x1e   :  { %1476 = vmatprep.subr.bf16.mxu1 %v1748_v1 }
  0x20   :  { %1451 = vmatpush3.bf16.msra.mxu0 %v1539_v12  ;;  %v1373_v12 = vunpack.c.0.s8 %v1521_v56 }
  0x21   :  { %1488 = vmatprep.subr.bf16.mxu0 %v1548_v9 }
  0x23   :  { %1453 = vmatmul.mubr.bf16.vlgmr.msra.gmra.mrb[0].mxu0 %v1541_v13  ;;  %v1378_v13 = vunpack.c.3.s8 %v1521_v56 }
  0x24   :  { %1456 = vmatprep.mubr.bf16.mxu0 %v1542_v15  ;;  %1489 = vmatpush3.bf16.msra.mxu0 %v1548_v9  ;;  %v1892_v9 = vcvt.s32.f32 %v1377_v61 }
  0x25   :  { %1490 = vmatprep.subr.bf16.mxu0 %v1549_v11  ;;  %1477 = vmatpush3.bf16.xpose.msra.mxu1 %v1552_v20 }
  0x26   :  { %1478 = vmatprep.subr.bf16.mxu1 %v1748_v1 }
  0x28   :  { %1491 = vmatpush3.bf16.msra.mxu0 %v1549_v11  ;;  %v87_v11 = vmul.f32 1e+30, %v1322_v62 }
  0x29   :  { %1492 = vmatprep.subr.bf16.mxu0 %v1550_v14 }
  0x2b   :  { %1457 = vmatmul.mubr.bf16.gmra.mrb[4].mxu0 %v1543_v16  ;;  %v86_v16 = vmul.f32 1e+30, %v1321_v0 }
  0x2c   :  { %1460 = vmatprep.mubr.bf16.mxu0 %v1544_v18  ;;  %1493 = vmatpush3.bf16.msra.mxu0 %v1550_v14  ;;  %v1385_v18 = vunpack.c.2.s8 %v1889_v6 }
  0x2d   :  { %1494 = vmatprep.subr.bf16.mxu0 %v1551_v17  ;;  %1479 = vmatpush3.bf16.xpose.msra.mxu1 %v1553_v22 }
  0x2e   :  { %1480 = vmatprep.subr.bf16.mxu1 %v1748_v1 }
  0x30   :  { %1495 = vmatpush3.bf16.msra.mxu0 %v1551_v17  ;;  %v1323_v17 = vadd.f32 -1.0, %v1883_v2 }
  0x31   :  { %1496 = vmatprep.subr.bf16.mxu0 %v1552_v20 }
  0x33   :  { %1461 = vmatmul.mubr.bf16.gmra.mrb[8].mxu0 %v1545_v19 }
  0x34   :  { %1464 = vmatprep.mubr.bf16.mxu0 %v1546_v21  ;;  %1497 = vmatpush3.bf16.msra.mxu0 %v1552_v20 }
  0x35   :  { %1498 = vmatprep.subr.bf16.mxu0 %v1553_v22  ;;  %1481 = vmatpush3.bf16.xpose.msra.mxu1 %v1554_v24 }
  0x36   :  { %1482 = vmatprep.subr.bf16.mxu1 %v1748_v1 }
  0x38   :  { %1499 = vmatpush3.bf16.msra.mxu0 %v1553_v22  ;;  %v1897_v22 = vcvt.s32.f32 %v1374_v5 }
  0x39   :  { %1500 = vmatprep.subr.bf16.mxu0 %v1554_v24 }
  0x3a   :  { %v1325_v48 = vadd.f32 -1.0, %v1897_v22 }
  0x3b   :  { %1465 = vmatmul.mubr.bf16.gmra.mrb[12].mxu0 %v1547_v23  ;;  %v1382_v23 = vunpack.c.1.s8 %v1889_v6 }
  0x3c   :  { %1501 = vmatpush3.bf16.msra.mxu0 %v1554_v24 }
  0x3d   :  { %1502 = vmatprep.subr.bf16.mxu0 %v1555_v25  ;;  %1483 = vmatpush3.bf16.xpose.msra.mxu1 %v1555_v25 }
  0x40   :  { %1503 = vmatpush3.bf16.msra.mxu0 %v1555_v25 }
  0x44   :  { %1485 = vmatmul.mubr.bf16.vlgmr.msra.gmra.mrb[0].mxu1 %v331_v26 }
  0xf6   :  { %v1454_v27 = vpop.f32.mrb[0].mxu0 }
  0xf7   :  { %448 = vperm.xlu1 %1530, %v1454_v27   ;;  %v268_v28 = vpop.f32.mrb[1].mxu0  ;;  %v1326_v27 = vadd.f32 -1.0, %v1892_v9 }
  0xf8   :  { %438 = vperm.xlu0 %1531, %v268_v28   ;;  %v1455_v29 = vpop.f32.mrb[2].mxu0 }
  0xf9   :  { %v271_v30 = vpop.f32.mrb[3].mxu0  ;;  %v1916_v49 = vmul.f32 1e+30, %v1326_v27 }
  0xfb   :  { %453 = vperm.xlu1 %1530, %v1455_v29  }
  0xfc   :  { %443 = vperm.xlu0 %1531, %v271_v30   ;;  %v1902_v30 = vcvt.s32.f32 %v1373_v12  ;;  %v90_v12 = vmul.f32 1e+30, %v1325_v48 }
  0xfe   :  { %v1458_v31 = vpop.f32.mrb[4].mxu0 }
  0xff   :  { %v284_v32 = vpop.f32.mrb[5].mxu0 }
 0x100   :  { %468 = vperm.xlu0 %1531, %v1458_v31   ;;  %v1459_v33 = vpop.f32.mrb[6].mxu0  ;;  %v1904_v31 = vcvt.s32.f32 %v1378_v13 }
 0x101   :  { %v287_v34 = vpop.f32.mrb[7].mxu0 }
 0x102   :  { %463 = vperm.xlu1 %1530, %v287_v34   ;;  %v88_v34 = vmul.f32 1e+30, %v1323_v17  ;;  %v1327_v50 = vadd.f32 -1.0, %v1904_v31 }
 0x104   :  { %458 = vperm.xlu0 %1531, %v284_v32   ;;  %v92_v13 = vmul.f32 1e+30, %v1327_v50 }
 0x106   :  { %473 = vperm.xlu1 %1530, %v1459_v33   ;;  %v1462_v35 = vpop.f32.mrb[8].mxu0 }
 0x107   :  { %v300_v36 = vpop.f32.mrb[9].mxu0 }
 0x108   :  { %488 = vperm.xlu0 %1531, %v1462_v35   ;;  %v1463_v37 = vpop.f32.mrb[10].mxu0  ;;  %v1906_v35 = vcvt.s32.f32 %v1385_v18 }
 0x109   :  { %v303_v38 = vpop.f32.mrb[11].mxu0 }
 0x10a   :  { %483 = vperm.xlu1 %1530, %v303_v38   ;;  %v1330_v56 = vadd.f32 -1.0, %v1906_v35 }
 0x10c   :  { %478 = vperm.xlu0 %1531, %v300_v36   ;;  %v1933_v17 = vmul.f32 1e+30, %v1330_v56 }
 0x10e   :  { %493 = vperm.xlu1 %1530, %v1463_v37   ;;  %v1466_v39 = vpop.f32.mrb[12].mxu0 }
 0x10f   :  { %v316_v40 = vpop.f32.mrb[13].mxu0 }
 0x110   :  { %508 = vperm.xlu0 %1531, %v1466_v39   ;;  %v1467_v41 = vpop.f32.mrb[14].mxu0  ;;  %v1381_v39 = vunpack.c.0.s8 %v1889_v6 }
 0x111   :  { %v319_v42 = vpop.f32.mrb[15].mxu0 }
 0x112   :  { %503 = vperm.xlu1 %1530, %v319_v42   ;;  %v1924_v61 = vcvt.s32.f32 %v1381_v39 }
 0x114   :  { %498 = vperm.xlu0 %1531, %v316_v40   ;;  %v1909_v40 = vcvt.s32.f32 %v1382_v23 }
 0x116   :  { %513 = vperm.xlu1 %1530, %v1467_v41   ;;  %v1329_v62 = vadd.f32 -1.0, %v1909_v40 }
 0x117   :  { %v430_v43 = vpop.f32.mrb[0].mxu1 }
 0x118   :  { %v1486_v44 = vpop.f32.mrb[1].mxu1  ;;  %v1878_v59 = vrot.slane %v430_v43, %v518_v53 }
 0x119   :  { %v433_v45 = vpop.f32.mrb[2].mxu1 }
 0x11a   :  { %v1487_v46 = vpop.f32.mrb[3].mxu1 }
 0x11b   :  { %v1324_v46 = vadd.f32 -1.0, %v1902_v30 }
 0x176   :  { %v449_v63 = vpop.permute.xlu1 %448 }
 0x177   :  { %v522_v3 = vadd.f32 %v1878_v59, %v449_v63  ;;  %v439_v4 = vpop.permute.xlu0 %438  ;;  %v1386_v63 = vunpack.c.3.s8 %v1889_v6 }
 0x178   :  { %v520_v7 = vadd.f32 %v1878_v59, %v439_v4 }
 0x179   :  { %v554_v10 = vmin.f32 %v522_v3, 0.0  ;;  %v538_v28 = vmax.f32 %v522_v3, 0.0 }
 0x17a   :  { %v552_v14 = vmin.f32 %v520_v7, 0.0  ;;  %v454_v15 = vpop.permute.xlu1 %453  ;;  %v536_v24 = vmax.f32 %v520_v7, 0.0 }
 0x17b   :  { %v570_v19 = vmul.f32 0.2, %v554_v10  ;;  %v523_v20 = vadd.f32 %v1878_v59, %v454_v15  ;;  %v444_v21 = vpop.permute.xlu0 %443  ;;  %v89_v10 = vmul.f32 1e+30, %v1324_v46 }
 0x17c   :  { %v568_v25 = vmul.f32 0.2, %v552_v14  ;;  %v521_v26 = vadd.f32 %v1878_v59, %v444_v21 }
 0x17d   :  { %v555_v29 = vmin.f32 %v523_v20, 0.0  ;;  %v586_v38 = vadd.f32 %v570_v19, %v538_v28  ;;  %v539_v51 = vmax.f32 %v523_v20, 0.0  ;;  %v1328_v19 = vadd.f32 -1.0, %v1924_v61 }
 0x17e   :  { %v553_v32 = vmin.f32 %v521_v26, 0.0  ;;  %v584_v33 = vadd.f32 %v568_v25, %v536_v24  ;;  %v537_v36 = vmax.f32 %v521_v26, 0.0  ;;  %v1937_v20 = vmul.f32 1e+30, %v1329_v62  ;;  %v1525_v26 = vld [vmem:[%s2547_s0 + $0x18] sm:$0xff]  }
 0x17f   :  { %v469_v37 = vpop.permute.xlu0 %468  ;;  %v571_v41 = vmul.f32 0.2, %v555_v29  ;;  %v1922_v60 = vadd.f32 %v586_v38, %v87_v11  ;;  %v1389_v39 = vunpack.c.0.s8 %v1525_v26  ;;  %v1393_v46 = vunpack.c.2.s8 %v1525_v26 }
 0x180   :  { %v569_v42 = vmul.f32 0.2, %v553_v32  ;;  %v526_v43 = vadd.f32 %v1878_v59, %v469_v37  ;;  %v1912_v44 = vadd.f32 %v584_v33, %v85_v8  ;;  %v1390_v33 = vunpack.c.1.s8 %v1525_v26 }
 0x181   :  { %v464_v45 = vpop.permute.xlu1 %463  ;;  %v587_v5 = vadd.f32 %v571_v41, %v539_v51 }
 0x182   :  { %v525_v52 = vadd.f32 %v1878_v59, %v464_v45  ;;  %616 = vmax.xlane.f32.xlu0 %v1912_v44  ;;  %v585_v53 = vadd.f32 %v569_v42, %v537_v36  ;;  %v558_v0 = vmin.f32 %v526_v43, 0.0  ;;  %v542_v36 = vmax.f32 %v526_v43, 0.0 }
 0x183   :  { %v459_v58 = vpop.permute.xlu0 %458  ;;  %v1941_v25 = vadd.f32 %v587_v5, %v88_v34  ;;  %v93_v45 = vmul.f32 1e+30, %v1328_v19  ;;  %v1954_v62 = vcvt.s32.f32 %v1390_v33 }
 0x184   :  { %v557_v3 = vmin.f32 %v525_v52, 0.0  ;;  %v524_v4 = vadd.f32 %v1878_v59, %v459_v58  ;;  %v1929_v8 = vadd.f32 %v585_v53, %v86_v16  ;;  %v541_v6 = vmax.f32 %v525_v52, 0.0 }
 0x185   :  { %v474_v7 = vpop.permute.xlu1 %473  ;;  %v1939_v16 = vcvt.s32.f32 %v1386_v63  ;;  %v574_v21 = vmul.f32 0.2, %v558_v0  ;;  %v1333_v33 = vadd.f32 -1.0, %v1954_v62 }
 0x186   :  { %v573_v14 = vmul.f32 0.2, %v557_v3  ;;  %v556_v11 = vmin.f32 %v524_v4, 0.0  ;;  %v527_v15 = vadd.f32 %v1878_v59, %v474_v7  ;;  %620 = vmax.xlane.f32.xlu0 %v1922_v60  ;;  %618 = vmax.xlane.f32.xlu1 %v1929_v8  ;;  %v540_v27 = vmax.f32 %v524_v4, 0.0 }
 0x187   :  { %v489_v18 = vpop.permute.xlu0 %488  ;;  %v590_v52 = vadd.f32 %v574_v21, %v542_v36  ;;  %v1958_v4 = vcvt.s32.f32 %v1389_v39 }
 0x188   :  { %v572_v23 = vmul.f32 0.2, %v556_v11  ;;  %v559_v24 = vmin.f32 %v527_v15, 0.0  ;;  %v530_v28 = vadd.f32 %v1878_v59, %v489_v18  ;;  %v589_v32 = vadd.f32 %v573_v14, %v541_v6 }
 0x189   :  { %v484_v29 = vpop.permute.xlu1 %483  ;;  %v543_v41 = vmax.f32 %v527_v15, 0.0  ;;  %v1962_v14 = vcvt.s32.f32 %v1393_v46  ;;  %v1965_v6 = vadd.f32 %v590_v52, %v1916_v49 }
 0x18a   :  { %v575_v37 = vmul.f32 0.2, %v559_v24  ;;  %v529_v38 = vadd.f32 %v1878_v59, %v484_v29  ;;  %622 = vmax.xlane.f32.xlu0 %v1941_v25  ;;  %v588_v42 = vadd.f32 %v572_v23, %v540_v27  ;;  %v1950_v51 = vadd.f32 %v589_v32, %v90_v12 }
 0x18b   :  { %v479_v34 = vpop.permute.xlu0 %478  ;;  %v562_v53 = vmin.f32 %v530_v28, 0.0  ;;  %v1331_v12 = vadd.f32 -1.0, %v1939_v16  ;;  %v546_v36 = vmax.f32 %v530_v28, 0.0 }
 0x18c   :  { %v561_v48 = vmin.f32 %v529_v38, 0.0  ;;  %v528_v50 = vadd.f32 %v1878_v59, %v479_v34  ;;  %v1952_v43 = vadd.f32 %v588_v42, %v89_v10  ;;  %v591_v58 = vadd.f32 %v575_v37, %v543_v41 }
 0x18d   :  { %v494_v56 = vpop.permute.xlu1 %493  ;;  %v545_v5 = vmax.f32 %v529_v38, 0.0  ;;  %v1394_v10 = vunpack.c.3.s8 %v1525_v26  ;;  %v578_v19 = vmul.f32 0.2, %v562_v53  ;;  %v1332_v26 = vadd.f32 -1.0, %v1958_v4 }
 0x18e   :  { %v577_v63 = vmul.f32 0.2, %v561_v48  ;;  %v560_v0 = vmin.f32 %v528_v50, 0.0  ;;  %v531_v3 = vadd.f32 %v1878_v59, %v494_v56  ;;  %626 = vmax.xlane.f32.xlu0 %v1950_v51  ;;  %624 = vmax.xlane.f32.xlu1 %v1952_v43  ;;  %v1967_v18 = vadd.f32 %v591_v58, %v92_v13 }
 0x18f   :  { %v509_v7 = vpop.permute.xlu0 %508  ;;  %v544_v21 = vmax.f32 %v528_v50, 0.0  ;;  %v1975_v38 = vcvt.s32.f32 %v1394_v10  ;;  %v96_v42 = vmul.f32 1e+30, %v1331_v12  ;;  %v594_v52 = vadd.f32 %v578_v19, %v546_v36 }
 0x190   :  { %v576_v11 = vmul.f32 0.2, %v560_v0  ;;  %v563_v15 = vmin.f32 %v531_v3, 0.0  ;;  %v534_v23 = vadd.f32 %v1878_v59, %v509_v7  ;;  %v593_v27 = vadd.f32 %v577_v63, %v545_v5 }
 0x191   :  { %v504_v24 = vpop.permute.xlu1 %503  ;;  %v547_v49 = vmax.f32 %v531_v3, 0.0  ;;  %v97_v3 = vmul.f32 1e+30, %v1332_v26  ;;  %v1335_v5 = vadd.f32 -1.0, %v1975_v38 }
 0x192   :  { %v579_v29 = vmul.f32 0.2, %v563_v15  ;;  %v533_v32 = vadd.f32 %v1878_v59, %v504_v24  ;;  %630 = vmax.xlane.f32.xlu0 %v1967_v18  ;;  %628 = vmax.xlane.f32.xlu1 %v1965_v6  ;;  %v592_v37 = vadd.f32 %v576_v11, %v544_v21  ;;  %v1979_v34 = vadd.f32 %v593_v27, %v1937_v20 }
 0x193   :  { %v499_v13 = vpop.permute.xlu0 %498  ;;  %v566_v46 = vmin.f32 %v534_v23, 0.0  ;;  %v98_v20 = vmul.f32 1e+30, %v1333_v33  ;;  %v1990_v15 = vadd.f32 %v594_v52, %v1933_v17  ;;  %v550_v27 = vmax.f32 %v534_v23, 0.0 }
 0x194   :  { %v565_v39 = vmin.f32 %v533_v32, 0.0  ;;  %v532_v41 = vadd.f32 %v1878_v59, %v499_v13  ;;  %v1981_v50 = vadd.f32 %v592_v37, %v93_v45  ;;  %v595_v28 = vadd.f32 %v579_v29, %v547_v49 }
 0x195   :  { %v514_v48 = vpop.permute.xlu1 %513  ;;  %v549_v53 = vmax.f32 %v533_v32, 0.0  ;;  %v582_v11 = vmul.f32 0.2, %v566_v46  ;;  %v100_v26 = vmul.f32 1e+30, %v1335_v5 }
 0x196   :  { %v581_v56 = vmul.f32 0.2, %v565_v39  ;;  %v564_v58 = vmin.f32 %v532_v41, 0.0  ;;  %v535_v63 = vadd.f32 %v1878_v59, %v514_v48  ;;  %634 = vmax.xlane.f32.xlu0 %v1979_v34  ;;  %v548_v0 = vmax.f32 %v532_v41, 0.0  ;;  %632 = vmax.xlane.f32.xlu1 %v1981_v50 }
 0x197   :  { %v1987_v45 = vadd.f32 %v595_v28, %v96_v42  ;;  %v1334_v59 = vadd.f32 -1.0, %v1962_v14  ;;  %v598_v49 = vadd.f32 %v582_v11, %v550_v27 }
 0x198   :  { %v580_v7 = vmul.f32 0.2, %v564_v58  ;;  %v567_v12 = vmin.f32 %v535_v63, 0.0  ;;  %v597_v10 = vadd.f32 %v581_v56, %v549_v53  ;;  %v551_v19 = vmax.f32 %v535_v63, 0.0 }
 0x199   :  { %v99_v36 = vmul.f32 1e+30, %v1334_v59 }
 0x19a   :  { %v583_v21 = vmul.f32 0.2, %v567_v12  ;;  %638 = vmax.xlane.f32.xlu0 %v1987_v45  ;;  %v596_v24 = vadd.f32 %v580_v7, %v548_v0  ;;  %636 = vmax.xlane.f32.xlu1 %v1990_v15  ;;  %v1997_v32 = vadd.f32 %v597_v10, %v98_v20 }
 0x19b   :  { %v2003_v13 = vadd.f32 %v598_v49, %v99_v36 }
 0x19c   :  { %v1995_v29 = vadd.f32 %v596_v24, %v97_v3  ;;  %v599_v33 = vadd.f32 %v583_v21, %v551_v19 }
 0x19e   :  { %642 = vmax.xlane.f32.xlu0 %v1997_v32  ;;  %640 = vmax.xlane.f32.xlu1 %v1995_v29  ;;  %v2001_v17 = vadd.f32 %v599_v33, %v100_v26 }
 0x1a2   :  { %646 = vmax.xlane.f32.xlu0 %v2001_v17  ;;  %644 = vmax.xlane.f32.xlu1 %v2003_v13 }
 0x20f   :  { %v617_v23 = vpop.xlane.xlu0 %616 }
 0x210   :  { %v648_v37 = vsub.f32 %v1912_v44, %v617_v23 }
 0x212   :  { %v664_v39 = vmul.f32 1.442695, %v648_v37 }
 0x213   :  { %v621_v41 = vpop.xlane.xlu0 %620  ;;  %v619_v42 = vpop.xlane.xlu1 %618 }
 0x214   :  { %1556 = vpow2.f32 %v664_v39  ;;  %v650_v46 = vsub.f32 %v1922_v60, %v621_v41  ;;  %v649_v48 = vsub.f32 %v1929_v8, %v619_v42 }
 0x216   :  { %v668_v52 = vmul.f32 1.442695, %v650_v46  ;;  %v666_v28 = vmul.f32 1.442695, %v649_v48 }
 0x217   :  { %v623_v53 = vpop.xlane.xlu0 %622 }
 0x218   :  { %1558 = vpow2.f32 %v668_v52  ;;  %v651_v56 = vsub.f32 %v1941_v25, %v623_v53 }
 0x219   :  { %1560 = vpow2.f32 %v666_v28 }
 0x21a   :  { %v670_v58 = vmul.f32 1.442695, %v651_v56 }
 0x21b   :  { %v627_v63 = vpop.xlane.xlu0 %626  ;;  %v625_v0 = vpop.xlane.xlu1 %624 }
 0x21c   :  { %1562 = vpow2.f32 %v670_v58  ;;  %v653_v44 = vsub.f32 %v1950_v51, %v627_v63  ;;  %v652_v3 = vsub.f32 %v1952_v43, %v625_v0 }
 0x21e   :  { %v1557_v20 = vpop.eup %1556  ;;  %v674_v5 = vmul.f32 1.442695, %v653_v44  ;;  %v672_v60 = vmul.f32 1.442695, %v652_v3 }
 0x21f   :  { %v631_v7 = vpop.xlane.xlu0 %630  ;;  %v2014_v8 = vmul.f32 %v1557_v20, %v1869_v54  ;;  %v629_v12 = vpop.xlane.xlu1 %628 }
 0x220   :  { %1564 = vpow2.f32 %v674_v5  ;;  %v655_v25 = vsub.f32 %v1967_v18, %v631_v7  ;;  %v654_v10 = vsub.f32 %v1965_v6, %v629_v12 }
 0x221   :  { %1566 = vpow2.f32 %v672_v60  ;;  %712 = vadd.xlane.f32.xlu1 %v2014_v8 }
 0x222   :  { %v1559_v11 = vpop.eup %1558  ;;  %v678_v51 = vmul.f32 1.442695, %v655_v25  ;;  %v676_v43 = vmul.f32 1.442695, %v654_v10 }
 0x223   :  { %v1561_v59 = vpop.eup %1560  ;;  %v635_v19 = vpop.xlane.xlu0 %634  ;;  %v2020_v21 = vmul.f32 %v1559_v11, %v1871_v55 }
 0x224   :  { %1568 = vpow2.f32 %v678_v51  ;;  %v633_v54 = vpop.xlane.xlu1 %632  ;;  %v657_v24 = vsub.f32 %v1979_v34, %v635_v19  ;;  %v2024_v27 = vmul.f32 %v1561_v59, %v1876_v57 }
 0x225   :  { %1570 = vpow2.f32 %v676_v43  ;;  %v656_v6 = vsub.f32 %v1981_v50, %v633_v54  ;;  %716 = vadd.xlane.f32.xlu1 %v2020_v21 }
 0x226   :  { %v1563_v18 = vpop.eup %1562  ;;  %v682_v26 = vmul.f32 1.442695, %v657_v24  ;;  %714 = vadd.xlane.f32.xlu0 %v2024_v27 }
 0x227   :  { %v680_v33 = vmul.f32 1.442695, %v656_v6  ;;  %v639_v36 = vpop.xlane.xlu0 %638  ;;  %v2030_v55 = vmul.f32 %v1563_v18, %v1883_v2 }
 0x228   :  { %1572 = vpow2.f32 %v682_v26  ;;  %v637_v49 = vpop.xlane.xlu1 %636  ;;  %v659_v34 = vsub.f32 %v1987_v45, %v639_v36 }
 0x229   :  { %1574 = vpow2.f32 %v680_v33  ;;  %v658_v57 = vsub.f32 %v1990_v15, %v637_v49 }
 0x22a   :  { %v1565_v23 = vpop.eup %1564  ;;  %v686_v50 = vmul.f32 1.442695, %v659_v34  ;;  %718 = vadd.xlane.f32.xlu0 %v2030_v55 }
 0x22b   :  { %v1567_v37 = vpop.eup %1566  ;;  %v684_v39 = vmul.f32 1.442695, %v658_v57  ;;  %v643_v41 = vpop.xlane.xlu0 %642  ;;  %v2036_v42 = vmul.f32 %v1565_v23, %v1897_v22 }
 0x22c   :  { %1576 = vpow2.f32 %v686_v50  ;;  %v641_v2 = vpop.xlane.xlu1 %640  ;;  %v661_v46 = vsub.f32 %v1997_v32, %v643_v41  ;;  %v2040_v48 = vmul.f32 %v1567_v37, %v1902_v30 }
 0x22d   :  { %1578 = vpow2.f32 %v684_v39  ;;  %v660_v45 = vsub.f32 %v1995_v29, %v641_v2 }
 0x22e   :  { %v1569_v15 = vpop.eup %1568  ;;  %v690_v52 = vmul.f32 1.442695, %v661_v46  ;;  %720 = vadd.xlane.f32.xlu1 %v2040_v48  ;;  %722 = vadd.xlane.f32.xlu0 %v2036_v42 }
 0x22f   :  { %v1571_v28 = vpop.eup %1570  ;;  %v688_v53 = vmul.f32 1.442695, %v660_v45  ;;  %v647_v22 = vpop.xlane.xlu0 %646  ;;  %v2046_v56 = vmul.f32 %v1569_v15, %v1904_v31 }
 0x230   :  { %1580 = vpow2.f32 %v690_v52  ;;  %v645_v32 = vpop.xlane.xlu1 %644  ;;  %v663_v30 = vsub.f32 %v2001_v17, %v647_v22  ;;  %v2050_v58 = vmul.f32 %v1571_v28, %v1892_v9 }
 0x231   :  { %1582 = vpow2.f32 %v688_v53  ;;  %v662_v29 = vsub.f32 %v2003_v13, %v645_v32 }
 0x232   :  { %v1573_v63 = vpop.eup %1572  ;;  %v694_v0 = vmul.f32 1.442695, %v663_v30  ;;  %724 = vadd.xlane.f32.xlu1 %v2050_v58  ;;  %726 = vadd.xlane.f32.xlu0 %v2046_v56 }
 0x233   :  { %v1575_v44 = vpop.eup %1574  ;;  %v692_v3 = vmul.f32 1.442695, %v662_v29  ;;  %v2056_v31 = vmul.f32 %v1573_v63, %v1909_v40 }
 0x234   :  { %1584 = vpow2.f32 %v694_v0  ;;  %v2059_v17 = vmul.f32 %v1575_v44, %v1924_v61 }
 0x235   :  { %1586 = vpow2.f32 %v692_v3 }
 0x236   :  { %v1577_v9 = vpop.eup %1576  ;;  %728 = vadd.xlane.f32.xlu1 %v2059_v17  ;;  %730 = vadd.xlane.f32.xlu0 %v2056_v31 }
 0x237   :  { %v1579_v13 = vpop.eup %1578  ;;  %v2064_v20 = vmul.f32 %v1577_v9, %v1939_v16 }
 0x238   :  { %v2067_v5 = vmul.f32 %v1579_v13, %v1906_v35 }
 0x23a   :  { %v1581_v60 = vpop.eup %1580  ;;  %732 = vadd.xlane.f32.xlu1 %v2067_v5  ;;  %734 = vadd.xlane.f32.xlu0 %v2064_v20 }
 0x23b   :  { %v1583_v40 = vpop.eup %1582  ;;  %v2072_v61 = vmul.f32 %v1581_v60, %v1954_v62 }
 0x23c   :  { %v2075_v7 = vmul.f32 %v1583_v40, %v1958_v4 }
 0x23e   :  { %v1585_v12 = vpop.eup %1584  ;;  %736 = vadd.xlane.f32.xlu1 %v2075_v7  ;;  %738 = vadd.xlane.f32.xlu0 %v2072_v61 }
 0x23f   :  { %v1587_v16 = vpop.eup %1586  ;;  %v2080_v35 = vmul.f32 %v1585_v12, %v1975_v38 }
 0x240   :  { %v2083_v25 = vmul.f32 %v1587_v16, %v1962_v14 }
 0x242   :  { %740 = vadd.xlane.f32.xlu1 %v2083_v25  ;;  %742 = vadd.xlane.f32.xlu0 %v2080_v35 }
 0x2ae   :  { %v713_v62 = vpop.xlane.xlu1 %712 }
 0x2af   :  { %1588 = vrcp.f32 %v713_v62 }
 0x2b2   :  { %v717_v4 = vpop.xlane.xlu1 %716 }
 0x2b3   :  { %v715_v10 = vpop.xlane.xlu0 %714 }
 0x2b4   :  { %1590 = vrcp.f32 %v715_v10 }
 0x2b5   :  { %1592 = vrcp.f32 %v717_v4 }
 0x2b7   :  { %v719_v11 = vpop.xlane.xlu0 %718 }
 0x2b8   :  { %1594 = vrcp.f32 %v719_v11 }
 0x2b9   :  { %v1589_v43 = vpop.eup %1588 }
 0x2ba   :  { %v760_v54 = vmul.f32 %v1589_v43, %v2014_v8 }
 0x2bb   :  { %v721_v51 = vpop.xlane.xlu1 %720  ;;  %v723_v59 = vpop.xlane.xlu0 %722 }
 0x2bc   :  { %1596 = vrcp.f32 %v721_v51 }
 0x2bd   :  { %1598 = vrcp.f32 %v723_v59 }
 0x2be   :  { %v1591_v38 = vpop.eup %1590 }
 0x2bf   :  { %v725_v14 = vpop.xlane.xlu1 %724  ;;  %v727_v19 = vpop.xlane.xlu0 %726  ;;  %v761_v24 = vmul.f32 %v1591_v38, %v2024_v27 }
 0x2c0   :  { %v1593_v6 = vpop.eup %1592  ;;  %1600 = vrcp.f32 %v725_v14 }
 0x2c1   :  { %1602 = vrcp.f32 %v727_v19  ;;  %v776_v18 = vpack.c.bf16 %v761_v24, %v760_v54  ;;  %v762_v33 = vmul.f32 %v1593_v6, %v2020_v21 }
 0x2c2   :  { %v1595_v26 = vpop.eup %1594 }
 0x2c3   :  { %v763_v36 = vmul.f32 %v1595_v26, %v2030_v55  ;;  %v729_v49 = vpop.xlane.xlu1 %728  ;;  %1504 = vmatprep.mubr.bf16.mxu0 %v776_v18  ;;  %v731_v34 = vpop.xlane.xlu0 %730 }
 0x2c4   :  { %1604 = vrcp.f32 %v729_v49 }
 0x2c5   :  { %1606 = vrcp.f32 %v731_v34  ;;  %v777_v57 = vpack.c.bf16 %v763_v36, %v762_v33 }
 0x2c6   :  { %v1597_v23 = vpop.eup %1596 }
 0x2c7   :  { %v1599_v50 = vpop.eup %1598  ;;  %v733_v8 = vpop.xlane.xlu1 %732  ;;  %1505 = vmatmul.mubr.bf16.vlgmr.msra.gmra.mrb[16].mxu0 %v777_v57  ;;  %v764_v37 = vmul.f32 %v1597_v23, %v2040_v48 }
 0x2c8   :  { %v735_v27 = vpop.xlane.xlu0 %734  ;;  %1608 = vrcp.f32 %v733_v8  ;;  %v765_v39 = vmul.f32 %v1599_v50, %v2036_v42 }
 0x2c9   :  { %1610 = vrcp.f32 %v735_v27 }
 0x2ca   :  { %v1601_v21 = vpop.eup %1600  ;;  %v778_v41 = vpack.c.bf16 %v765_v39, %v764_v37 }
 0x2cb   :  { %v1603_v55 = vpop.eup %1602  ;;  %v737_v2 = vpop.xlane.xlu1 %736  ;;  %v766_v45 = vmul.f32 %v1601_v21, %v2050_v58 }
 0x2cc   :  { %v739_v46 = vpop.xlane.xlu0 %738  ;;  %1612 = vrcp.f32 %v737_v2  ;;  %1508 = vmatprep.mubr.bf16.mxu0 %v778_v41  ;;  %v767_v15 = vmul.f32 %v1603_v55, %v2046_v56 }
 0x2cd   :  { %1614 = vrcp.f32 %v739_v46 }
 0x2ce   :  { %v1605_v52 = vpop.eup %1604  ;;  %v779_v28 = vpack.c.bf16 %v767_v15, %v766_v45 }
 0x2cf   :  { %v1607_v53 = vpop.eup %1606  ;;  %v741_v48 = vpop.xlane.xlu1 %740  ;;  %v768_v42 = vmul.f32 %v1605_v52, %v2059_v17 }
 0x2d0   :  { %v743_v22 = vpop.xlane.xlu0 %742  ;;  %1616 = vrcp.f32 %v741_v48  ;;  %1509 = vmatmul.mubr.bf16.gmra.mrb[20].mxu0 %v779_v28  ;;  %v769_v32 = vmul.f32 %v1607_v53, %v2056_v31 }
 0x2d1   :  { %1618 = vrcp.f32 %v743_v22 }
 0x2d2   :  { %v1609_v30 = vpop.eup %1608  ;;  %v780_v29 = vpack.c.bf16 %v769_v32, %v768_v42 }
 0x2d3   :  { %v1611_v58 = vpop.eup %1610  ;;  %v770_v63 = vmul.f32 %v1609_v30, %v2067_v5 }
 0x2d4   :  { %1512 = vmatprep.mubr.bf16.mxu0 %v780_v29  ;;  %v771_v56 = vmul.f32 %v1611_v58, %v2064_v20  ;;  %v2104_v20 = vand.u32 127, %v516_v47 }
 0x2d6   :  { %v1613_v0 = vpop.eup %1612  ;;  %v781_v44 = vpack.c.bf16 %v771_v56, %v770_v63  ;;  %vm1085_vm1 = vcmp.ge.s32.totalorder %v2104_v20, 3  ;;  %vm1086_vm2 = vcmp.lt.s32.totalorder %v2104_v20, 6  ;;  %vm890_vm3 = vcmp.lt.s32.totalorder %v2104_v20, 3 }
 0x2d7   :  { %v1615_v3 = vpop.eup %1614  ;;  %v772_v9 = vmul.f32 %v1613_v0, %v2075_v7  ;;  %vm2114_vm4 = vmand %vm1085_vm1, %vm1086_vm2 }
 0x2d8   :  { %1513 = vmatmul.mubr.bf16.gmra.mrb[24].mxu0 %v781_v44  ;;  %v773_v17 = vmul.f32 %v1615_v3, %v2072_v61  ;;  %v2111_v61 = vld [vmem:[%s2548_s4] ss:$0 sm:$0xff]  ;;  %v2314_v20 = vsel %vm2114_vm4, 1.0, %v1748_v1 }
 0x2da   :  { %v1617_v13 = vpop.eup %1616  ;;  %v782_v60 = vpack.c.bf16 %v773_v17, %v772_v9 }
 0x2db   :  { %v1619_v31 = vpop.eup %1618  ;;  %v774_v40 = vmul.f32 %v1617_v13, %v2083_v25 }
 0x2dc   :  { %1516 = vmatprep.mubr.bf16.mxu0 %v782_v60  ;;  %v775_v12 = vmul.f32 %v1619_v31, %v2080_v35 }
 0x2de   :  { %v783_v5 = vpack.c.bf16 %v775_v12, %v774_v40 }
 0x2e0   :  { %1517 = vmatmul.mubr.bf16.gmra.mrb[28].mxu0 %v783_v5 }
 0x39a   :  { %v1506_v16 = vpop.f32.mrb[16].mxu0 }
 0x39b   :  { %v834_v35 = vadd.f32 %v1506_v16, %v2111_v61  ;;  %v825_v47 = vpop.f32.mrb[17].mxu0 }
 0x39c   :  { %v826_v25 = vadd.f32 %v2111_v61, %v825_v47  ;;  %v1507_v62 = vpop.f32.mrb[18].mxu0 }
 0x39d   :  { %v837_v4 = vadd.f32 %v1507_v62, %v2111_v61  ;;  %v828_v10 = vpop.f32.mrb[19].mxu0  ;;  %v2123_v11 = vsel %vm890_vm3, %v834_v35, -1e+30  ;;  %v2127_v51 = vsel %vm2114_vm4, %v834_v35, -1e+30 }
 0x39e   :  { %v829_v59 = vadd.f32 %v2111_v61, %v828_v10  ;;  %911 = vmax.xlane.f32.xlu1 %v2123_v11  ;;  %v2133_v43 = vsel %vm890_vm3, %v826_v25, -1e+30  ;;  %v2137_v38 = vsel %vm2114_vm4, %v826_v25, -1e+30 }
 0x39f   :  { %v2141_v14 = vsel %vm890_vm3, %v837_v4, -1e+30  ;;  %v2145_v19 = vsel %vm2114_vm4, %v837_v4, -1e+30 }
 0x3a0   :  { %913 = vmax.xlane.f32.xlu0 %v2141_v14  ;;  %v2150_v54 = vsel %vm890_vm3, %v829_v59, -1e+30  ;;  %v2154_v24 = vsel %vm2114_vm4, %v829_v59, -1e+30 }
 0x3a2   :  { %1108 = vmax.xlane.f32.xlu1 %v2127_v51 }
 0x3a3   :  { %v1510_v6 = vpop.f32.mrb[20].mxu0 }
 0x3a4   :  { %v850_v18 = vadd.f32 %v1510_v6, %v2111_v61  ;;  %v841_v26 = vpop.f32.mrb[21].mxu0  ;;  %1110 = vmax.xlane.f32.xlu0 %v2145_v19 }
 0x3a5   :  { %v842_v33 = vadd.f32 %v2111_v61, %v841_v26  ;;  %v1511_v36 = vpop.f32.mrb[22].mxu0 }
 0x3a6   :  { %v853_v49 = vadd.f32 %v1511_v36, %v2111_v61  ;;  %v844_v34 = vpop.f32.mrb[23].mxu0  ;;  %907 = vmax.xlane.f32.xlu1 %v2133_v43  ;;  %v2164_v57 = vsel %vm890_vm3, %v850_v18, -1e+30  ;;  %v2168_v23 = vsel %vm2114_vm4, %v850_v18, -1e+30 }
 0x3a7   :  { %v845_v50 = vadd.f32 %v2111_v61, %v844_v34  ;;  %v2173_v8 = vsel %vm890_vm3, %v842_v33, -1e+30  ;;  %v2177_v27 = vsel %vm2114_vm4, %v842_v33, -1e+30 }
 0x3a8   :  { %909 = vmax.xlane.f32.xlu0 %v2150_v54  ;;  %v2182_v37 = vsel %vm890_vm3, %v853_v49, -1e+30  ;;  %v2186_v39 = vsel %vm2114_vm4, %v853_v49, -1e+30 }
 0x3a9   :  { %v2190_v21 = vsel %vm890_vm3, %v845_v50, -1e+30  ;;  %v2194_v41 = vsel %vm2114_vm4, %v845_v50, -1e+30 }
 0x3aa   :  { %1104 = vmax.xlane.f32.xlu1 %v2137_v38 }
 0x3ab   :  { %v1514_v55 = vpop.f32.mrb[24].mxu0 }
 0x3ac   :  { %v866_v2 = vadd.f32 %v1514_v55, %v2111_v61  ;;  %v857_v46 = vpop.f32.mrb[25].mxu0  ;;  %1106 = vmax.xlane.f32.xlu0 %v2154_v24 }
 0x3ad   :  { %v858_v45 = vadd.f32 %v2111_v61, %v857_v46  ;;  %v1515_v15 = vpop.f32.mrb[26].mxu0 }
 0x3ae   :  { %v869_v52 = vadd.f32 %v1515_v15, %v2111_v61  ;;  %v860_v28 = vpop.f32.mrb[27].mxu0  ;;  %919 = vmax.xlane.f32.xlu1 %v2164_v57  ;;  %v2204_v53 = vsel %vm890_vm3, %v866_v2, -1e+30  ;;  %v2208_v48 = vsel %vm2114_vm4, %v866_v2, -1e+30  ;;  %v2304_v15 = vsel %vm890_vm3, 1.0, %v1748_v1 }
 0x3af   :  { %v861_v22 = vadd.f32 %v2111_v61, %v860_v28  ;;  %v2213_v42 = vsel %vm890_vm3, %v858_v45, -1e+30  ;;  %v2217_v32 = vsel %vm2114_vm4, %v858_v45, -1e+30 }
 0x3b0   :  { %921 = vmax.xlane.f32.xlu0 %v2182_v37  ;;  %v2222_v30 = vsel %vm890_vm3, %v869_v52, -1e+30  ;;  %v2226_v29 = vsel %vm2114_vm4, %v869_v52, -1e+30 }
 0x3b1   :  { %v2230_v58 = vsel %vm890_vm3, %v861_v22, -1e+30  ;;  %v2234_v63 = vsel %vm2114_vm4, %v861_v22, -1e+30 }
 0x3b2   :  { %1116 = vmax.xlane.f32.xlu1 %v2168_v23 }
 0x3b3   :  { %v1518_v56 = vpop.f32.mrb[28].mxu0 }
 0x3b4   :  { %v882_v0 = vadd.f32 %v1518_v56, %v2111_v61  ;;  %v873_v44 = vpop.f32.mrb[29].mxu0  ;;  %1118 = vmax.xlane.f32.xlu0 %v2186_v39 }
 0x3b5   :  { %v874_v3 = vadd.f32 %v2111_v61, %v873_v44  ;;  %v1519_v9 = vpop.f32.mrb[30].mxu0 }
 0x3b6   :  { %v885_v17 = vadd.f32 %v1519_v9, %v2111_v61  ;;  %v876_v13 = vpop.f32.mrb[31].mxu0  ;;  %915 = vmax.xlane.f32.xlu1 %v2173_v8  ;;  %v2244_v60 = vsel %vm890_vm3, %v882_v0, -1e+30  ;;  %v2248_v31 = vsel %vm2114_vm4, %v882_v0, -1e+30 }
 0x3b7   :  { %v877_v40 = vadd.f32 %v2111_v61, %v876_v13  ;;  %v2253_v12 = vsel %vm890_vm3, %v874_v3, -1e+30  ;;  %v2257_v5 = vsel %vm2114_vm4, %v874_v3, -1e+30 }
 0x3b8   :  { %917 = vmax.xlane.f32.xlu0 %v2190_v21  ;;  %v2262_v16 = vsel %vm890_vm3, %v885_v17, -1e+30  ;;  %v2266_v35 = vsel %vm2114_vm4, %v885_v17, -1e+30 }
 0x3b9   :  { %v2270_v61 = vsel %vm890_vm3, %v877_v40, -1e+30  ;;  %v2274_v47 = vsel %vm2114_vm4, %v877_v40, -1e+30 }
 0x3ba   :  { %1112 = vmax.xlane.f32.xlu1 %v2177_v27 }
 0x3bc   :  { %1114 = vmax.xlane.f32.xlu0 %v2194_v41 }
 0x3be   :  { %927 = vmax.xlane.f32.xlu1 %v2204_v53 }
 0x3c0   :  { %929 = vmax.xlane.f32.xlu0 %v2222_v30 }
 0x3c2   :  { %1124 = vmax.xlane.f32.xlu1 %v2208_v48 }
 0x3c4   :  { %1126 = vmax.xlane.f32.xlu0 %v2226_v29 }
 0x3c6   :  { %923 = vmax.xlane.f32.xlu1 %v2213_v42 }
 0x3c8   :  { %925 = vmax.xlane.f32.xlu0 %v2230_v58 }
 0x3ca   :  { %1120 = vmax.xlane.f32.xlu1 %v2217_v32 }
 0x3cc   :  { %1122 = vmax.xlane.f32.xlu0 %v2234_v63 }
 0x3ce   :  { %935 = vmax.xlane.f32.xlu1 %v2244_v60 }
 0x3d0   :  { %937 = vmax.xlane.f32.xlu0 %v2262_v16 }
 0x3d2   :  { %931 = vmax.xlane.f32.xlu1 %v2253_v12 }
 0x3d4   :  { %933 = vmax.xlane.f32.xlu0 %v2270_v61 }
 0x3d6   :  { %1128 = vmax.xlane.f32.xlu1 %v2257_v5 }
 0x3d8   :  { %1130 = vmax.xlane.f32.xlu0 %v2274_v47 }
 0x3da   :  { %1132 = vmax.xlane.f32.xlu1 %v2248_v31 }
 0x3dc   :  { %1134 = vmax.xlane.f32.xlu0 %v2266_v35 }
 0x42b   :  { %v912_v25 = vpop.xlane.xlu1 %911 }
 0x42c   :  { %v941_v62 = vsub.f32 %v2123_v11, %v912_v25 }
 0x42d   :  { %v914_v4 = vpop.xlane.xlu0 %913 }
 0x42e   :  { %v959_v10 = vmul.f32 1.442695, %v941_v62  ;;  %v942_v59 = vsub.f32 %v2141_v14, %v914_v4 }
 0x42f   :  { %v1109_v6 = vpop.xlane.xlu1 %1108 }
 0x430   :  { %1620 = vpow2.f32 %v959_v10  ;;  %v961_v18 = vmul.f32 1.442695, %v942_v59  ;;  %v1138_v26 = vsub.f32 %v2127_v51, %v1109_v6 }
 0x431   :  { %v1111_v33 = vpop.xlane.xlu0 %1110 }
 0x432   :  { %1622 = vpow2.f32 %v961_v18  ;;  %v1156_v36 = vmul.f32 1.442695, %v1138_v26  ;;  %v1139_v49 = vsub.f32 %v2145_v19, %v1111_v33 }
 0x433   :  { %v908_v34 = vpop.xlane.xlu1 %907 }
 0x434   :  { %1624 = vpow2.f32 %v1156_v36  ;;  %v1158_v50 = vmul.f32 1.442695, %v1139_v49  ;;  %v939_v55 = vsub.f32 %v2133_v43, %v908_v34 }
 0x435   :  { %v910_v11 = vpop.xlane.xlu0 %909 }
 0x436   :  { %1626 = vpow2.f32 %v1158_v50  ;;  %v955_v2 = vmul.f32 1.442695, %v939_v55  ;;  %v940_v14 = vsub.f32 %v2150_v54, %v910_v11 }
 0x437   :  { %v1105_v46 = vpop.xlane.xlu1 %1104 }
 0x438   :  { %1628 = vpow2.f32 %v955_v2  ;;  %v957_v45 = vmul.f32 1.442695, %v940_v14  ;;  %v1136_v51 = vsub.f32 %v2137_v38, %v1105_v46 }
 0x439   :  { %v1107_v19 = vpop.xlane.xlu0 %1106 }
 0x43a   :  { %v1621_v52 = vpop.eup %1620  ;;  %1630 = vpow2.f32 %v957_v45  ;;  %v1152_v28 = vmul.f32 1.442695, %v1136_v51  ;;  %v1137_v43 = vsub.f32 %v2154_v24, %v1107_v19 }
 0x43b   :  { %v920_v22 = vpop.xlane.xlu1 %919  ;;  %v2308_v56 = vmul.f32 %v1621_v52, %v2304_v15 }
 0x43c   :  { %v1623_v54 = vpop.eup %1622  ;;  %1632 = vpow2.f32 %v1152_v28  ;;  %v1154_v0 = vmul.f32 1.442695, %v1137_v43  ;;  %v945_v38 = vsub.f32 %v2164_v57, %v920_v22 }
 0x43d   :  { %1009 = vadd.xlane.f32.xlu1 %v2308_v56  ;;  %v922_v44 = vpop.xlane.xlu0 %921  ;;  %v2318_v3 = vmul.f32 %v1623_v54, %v2304_v15 }
 0x43e   :  { %v1625_v24 = vpop.eup %1624  ;;  %1634 = vpow2.f32 %v1154_v0  ;;  %v967_v9 = vmul.f32 1.442695, %v945_v38  ;;  %v946_v17 = vsub.f32 %v2182_v37, %v922_v44 }
 0x43f   :  { %v1117_v13 = vpop.xlane.xlu1 %1116  ;;  %1011 = vadd.xlane.f32.xlu0 %v2318_v3  ;;  %v2323_v57 = vmul.f32 %v1625_v24, %v2314_v20 }
 0x440   :  { %v1627_v7 = vpop.eup %1626  ;;  %1636 = vpow2.f32 %v967_v9  ;;  %v969_v1 = vmul.f32 1.442695, %v946_v17  ;;  %v1142_v40 = vsub.f32 %v2168_v23, %v1117_v13 }
 0x441   :  { %1206 = vadd.xlane.f32.xlu1 %v2323_v57  ;;  %v1119_v25 = vpop.xlane.xlu0 %1118  ;;  %v2328_v62 = vmul.f32 %v1627_v7, %v2314_v20 }
 0x442   :  { %v1629_v4 = vpop.eup %1628  ;;  %1638 = vpow2.f32 %v969_v1  ;;  %v1164_v37 = vmul.f32 1.442695, %v1142_v40  ;;  %v1143_v10 = vsub.f32 %v2186_v39, %v1119_v25 }
 0x443   :  { %v916_v59 = vpop.xlane.xlu1 %915  ;;  %1208 = vadd.xlane.f32.xlu0 %v2328_v62  ;;  %v2333_v6 = vmul.f32 %v1629_v4, %v2304_v15 }
 0x444   :  { %v1631_v18 = vpop.eup %1630  ;;  %1640 = vpow2.f32 %v1164_v37  ;;  %v1166_v23 = vmul.f32 1.442695, %v1143_v10  ;;  %v943_v26 = vsub.f32 %v2173_v8, %v916_v59 }
 0x445   :  { %1005 = vadd.xlane.f32.xlu1 %v2333_v6  ;;  %v918_v33 = vpop.xlane.xlu0 %917  ;;  %v2338_v36 = vmul.f32 %v1631_v18, %v2304_v15 }
 0x446   :  { %v1633_v49 = vpop.eup %1632  ;;  %1642 = vpow2.f32 %v1166_v23  ;;  %v963_v39 = vmul.f32 1.442695, %v943_v26  ;;  %v944_v34 = vsub.f32 %v2190_v21, %v918_v33 }
 0x447   :  { %v1113_v50 = vpop.xlane.xlu1 %1112  ;;  %1007 = vadd.xlane.f32.xlu0 %v2338_v36  ;;  %v2343_v55 = vmul.f32 %v1633_v49, %v2314_v20 }
 0x448   :  { %v1635_v11 = vpop.eup %1634  ;;  %1644 = vpow2.f32 %v963_v39  ;;  %v965_v8 = vmul.f32 1.442695, %v944_v34  ;;  %v1140_v2 = vsub.f32 %v2177_v27, %v1113_v50 }
 0x449   :  { %1202 = vadd.xlane.f32.xlu1 %v2343_v55  ;;  %v1115_v14 = vpop.xlane.xlu0 %1114  ;;  %v2348_v46 = vmul.f32 %v1635_v11, %v2314_v20 }
 0x44a   :  { %v1637_v45 = vpop.eup %1636  ;;  %1646 = vpow2.f32 %v965_v8  ;;  %v1160_v21 = vmul.f32 1.442695, %v1140_v2  ;;  %v1141_v51 = vsub.f32 %v2194_v41, %v1115_v14 }
 0x44b   :  { %v928_v19 = vpop.xlane.xlu1 %927  ;;  %1204 = vadd.xlane.f32.xlu0 %v2348_v46  ;;  %v2353_v52 = vmul.f32 %v1637_v45, %v2304_v15 }
 0x44c   :  { %v1639_v28 = vpop.eup %1638  ;;  %1648 = vpow2.f32 %v1160_v21  ;;  %v1162_v27 = vmul.f32 1.442695, %v1141_v51  ;;  %v949_v43 = vsub.f32 %v2204_v53, %v928_v19 }
 0x44d   :  { %1017 = vadd.xlane.f32.xlu1 %v2353_v52  ;;  %v930_v22 = vpop.xlane.xlu0 %929  ;;  %v2358_v54 = vmul.f32 %v1639_v28, %v2304_v15 }
 0x44e   :  { %v1641_v0 = vpop.eup %1640  ;;  %1650 = vpow2.f32 %v1162_v27  ;;  %v975_v41 = vmul.f32 1.442695, %v949_v43  ;;  %v950_v38 = vsub.f32 %v2222_v30, %v930_v22 }
 0x44f   :  { %v1125_v44 = vpop.xlane.xlu1 %1124  ;;  %1019 = vadd.xlane.f32.xlu0 %v2358_v54  ;;  %v2363_v24 = vmul.f32 %v1641_v0, %v2314_v20 }
 0x450   :  { %v1643_v9 = vpop.eup %1642  ;;  %1652 = vpow2.f32 %v975_v41  ;;  %v977_v53 = vmul.f32 1.442695, %v950_v38  ;;  %v1146_v17 = vsub.f32 %v2208_v48, %v1125_v44 }
 0x451   :  { %1214 = vadd.xlane.f32.xlu1 %v2363_v24  ;;  %v1127_v13 = vpop.xlane.xlu0 %1126  ;;  %v2368_v7 = vmul.f32 %v1643_v9, %v2314_v20 }
 0x452   :  { %v1645_v1 = vpop.eup %1644  ;;  %1654 = vpow2.f32 %v977_v53  ;;  %v1172_v30 = vmul.f32 1.442695, %v1146_v17  ;;  %v1147_v40 = vsub.f32 %v2226_v29, %v1127_v13 }
 0x453   :  { %v924_v25 = vpop.xlane.xlu1 %923  ;;  %1216 = vadd.xlane.f32.xlu0 %v2368_v7  ;;  %v2373_v4 = vmul.f32 %v1645_v1, %v2304_v15 }
 0x454   :  { %v1647_v37 = vpop.eup %1646  ;;  %1656 = vpow2.f32 %v1172_v30  ;;  %v1174_v48 = vmul.f32 1.442695, %v1147_v40  ;;  %v947_v10 = vsub.f32 %v2213_v42, %v924_v25 }
 0x455   :  { %1013 = vadd.xlane.f32.xlu1 %v2373_v4  ;;  %v926_v59 = vpop.xlane.xlu0 %925  ;;  %v2378_v18 = vmul.f32 %v1647_v37, %v2304_v15 }
 0x456   :  { %v1649_v23 = vpop.eup %1648  ;;  %1658 = vpow2.f32 %v1174_v48  ;;  %v971_v29 = vmul.f32 1.442695, %v947_v10  ;;  %v948_v26 = vsub.f32 %v2230_v58, %v926_v59 }
 0x457   :  { %v1121_v33 = vpop.xlane.xlu1 %1120  ;;  %1015 = vadd.xlane.f32.xlu0 %v2378_v18  ;;  %v2383_v49 = vmul.f32 %v1649_v23, %v2314_v20 }
 0x458   :  { %v1651_v39 = vpop.eup %1650  ;;  %1660 = vpow2.f32 %v971_v29  ;;  %v973_v42 = vmul.f32 1.442695, %v948_v26  ;;  %v1144_v34 = vsub.f32 %v2217_v32, %v1121_v33 }
 0x459   :  { %1210 = vadd.xlane.f32.xlu1 %v2383_v49  ;;  %v1123_v50 = vpop.xlane.xlu0 %1122  ;;  %v2388_v11 = vmul.f32 %v1651_v39, %v2314_v20 }
 0x45a   :  { %v1653_v8 = vpop.eup %1652  ;;  %1662 = vpow2.f32 %v973_v42  ;;  %v1168_v58 = vmul.f32 1.442695, %v1144_v34  ;;  %v1145_v2 = vsub.f32 %v2234_v63, %v1123_v50 }
 0x45b   :  { %v936_v14 = vpop.xlane.xlu1 %935  ;;  %1212 = vadd.xlane.f32.xlu0 %v2388_v11  ;;  %v2393_v45 = vmul.f32 %v1653_v8, %v2304_v15 }
 0x45c   :  { %v1655_v21 = vpop.eup %1654  ;;  %1664 = vpow2.f32 %v1168_v58  ;;  %v1170_v32 = vmul.f32 1.442695, %v1145_v2  ;;  %v953_v51 = vsub.f32 %v2244_v60, %v936_v14 }
 0x45d   :  { %1025 = vadd.xlane.f32.xlu1 %v2393_v45  ;;  %v938_v19 = vpop.xlane.xlu0 %937  ;;  %v2398_v28 = vmul.f32 %v1655_v21, %v2304_v15 }
 0x45e   :  { %v1657_v27 = vpop.eup %1656  ;;  %1666 = vpow2.f32 %v1170_v32  ;;  %v983_v63 = vmul.f32 1.442695, %v953_v51  ;;  %v954_v43 = vsub.f32 %v2262_v16, %v938_v19 }
 0x45f   :  { %v932_v22 = vpop.xlane.xlu1 %931  ;;  %1027 = vadd.xlane.f32.xlu0 %v2398_v28  ;;  %v2403_v0 = vmul.f32 %v1657_v27, %v2314_v20 }
 0x460   :  { %v1659_v41 = vpop.eup %1658  ;;  %1668 = vpow2.f32 %v983_v63  ;;  %v985_v60 = vmul.f32 1.442695, %v954_v43  ;;  %v951_v38 = vsub.f32 %v2253_v12, %v932_v22 }
 0x461   :  { %1222 = vadd.xlane.f32.xlu1 %v2403_v0  ;;  %v934_v44 = vpop.xlane.xlu0 %933  ;;  %v2408_v9 = vmul.f32 %v1659_v41, %v2314_v20 }
 0x462   :  { %v1661_v53 = vpop.eup %1660  ;;  %1670 = vpow2.f32 %v985_v60  ;;  %v979_v16 = vmul.f32 1.442695, %v951_v38  ;;  %v952_v17 = vsub.f32 %v2270_v61, %v934_v44 }
 0x463   :  { %v1129_v13 = vpop.xlane.xlu1 %1128  ;;  %1224 = vadd.xlane.f32.xlu0 %v2408_v9  ;;  %v2413_v1 = vmul.f32 %v1661_v53, %v2304_v15 }
 0x464   :  { %v1663_v30 = vpop.eup %1662  ;;  %1672 = vpow2.f32 %v979_v16  ;;  %v981_v12 = vmul.f32 1.442695, %v952_v17  ;;  %v1148_v40 = vsub.f32 %v2257_v5, %v1129_v13 }
 0x465   :  { %1021 = vadd.xlane.f32.xlu1 %v2413_v1  ;;  %v1131_v25 = vpop.xlane.xlu0 %1130  ;;  %v2418_v37 = vmul.f32 %v1663_v30, %v2304_v15 }
 0x466   :  { %v1665_v48 = vpop.eup %1664  ;;  %1674 = vpow2.f32 %v981_v12  ;;  %v1176_v61 = vmul.f32 1.442695, %v1148_v40  ;;  %v1149_v10 = vsub.f32 %v2274_v47, %v1131_v25 }
 0x467   :  { %v1133_v59 = vpop.xlane.xlu1 %1132  ;;  %1023 = vadd.xlane.f32.xlu0 %v2418_v37  ;;  %v2423_v23 = vmul.f32 %v1665_v48, %v2314_v20 }
 0x468   :  { %v1667_v29 = vpop.eup %1666  ;;  %1676 = vpow2.f32 %v1176_v61  ;;  %v1178_v5 = vmul.f32 1.442695, %v1149_v10  ;;  %v1150_v26 = vsub.f32 %v2248_v31, %v1133_v59 }
 0x469   :  { %1218 = vadd.xlane.f32.xlu1 %v2423_v23  ;;  %v1135_v33 = vpop.xlane.xlu0 %1134  ;;  %v2428_v39 = vmul.f32 %v1667_v29, %v2314_v20 }
 0x46a   :  { %v1669_v42 = vpop.eup %1668  ;;  %1678 = vpow2.f32 %v1178_v5  ;;  %v1180_v47 = vmul.f32 1.442695, %v1150_v26  ;;  %v1151_v34 = vsub.f32 %v2266_v35, %v1135_v33 }
 0x46b   :  { %1220 = vadd.xlane.f32.xlu0 %v2428_v39  ;;  %v2433_v50 = vmul.f32 %v1669_v42, %v2304_v15 }
 0x46c   :  { %v1671_v8 = vpop.eup %1670  ;;  %1680 = vpow2.f32 %v1180_v47  ;;  %v1182_v58 = vmul.f32 1.442695, %v1151_v34 }
 0x46d   :  { %1033 = vadd.xlane.f32.xlu1 %v2433_v50  ;;  %v2437_v31 = vmul.f32 %v1671_v8, %v2304_v15 }
 0x46e   :  { %v1673_v2 = vpop.eup %1672  ;;  %1682 = vpow2.f32 %v1182_v58 }
 0x46f   :  { %1035 = vadd.xlane.f32.xlu0 %v2437_v31  ;;  %v2441_v14 = vmul.f32 %v1673_v2, %v2304_v15 }
 0x470   :  { %v1675_v35 = vpop.eup %1674 }
 0x471   :  { %1029 = vadd.xlane.f32.xlu1 %v2441_v14  ;;  %v2445_v21 = vmul.f32 %v1675_v35, %v2304_v15 }
 0x472   :  { %v1677_v32 = vpop.eup %1676 }
 0x473   :  { %1031 = vadd.xlane.f32.xlu0 %v2445_v21  ;;  %v2449_v51 = vmul.f32 %v1677_v32, %v2314_v20 }
 0x474   :  { %v1679_v19 = vpop.eup %1678 }
 0x475   :  { %1226 = vadd.xlane.f32.xlu1 %v2449_v51  ;;  %v2453_v27 = vmul.f32 %v1679_v19, %v2314_v20 }
 0x476   :  { %v1681_v63 = vpop.eup %1680 }
 0x477   :  { %1228 = vadd.xlane.f32.xlu0 %v2453_v27  ;;  %v2457_v43 = vmul.f32 %v1681_v63, %v2314_v20 }
 0x478   :  { %v1683_v15 = vpop.eup %1682 }
 0x479   :  { %1230 = vadd.xlane.f32.xlu1 %v2457_v43  ;;  %v2461_v22 = vmul.f32 %v1683_v15, %v2314_v20 }
 0x47b   :  { %1232 = vadd.xlane.f32.xlu0 %v2461_v22 }
 0x4ca   :  { %v1010_v41 = vpop.xlane.xlu1 %1009 }
 0x4cb   :  { %v1039_v60 = vmax.f32 %v1010_v41, 1e-30 }
 0x4cc   :  { %v1012_v38 = vpop.xlane.xlu0 %1011 }
 0x4cd   :  { %v1040_v44 = vmax.f32 %v1012_v38, 1e-30  ;;  %1684 = vrcp.f32 %v1039_v60 }
 0x4ce   :  { %v1207_v53 = vpop.xlane.xlu1 %1206 }
 0x4cf   :  { %v1236_v16 = vmax.f32 %v1207_v53, 1e-30  ;;  %1686 = vrcp.f32 %v1040_v44 }
 0x4d0   :  { %v1209_v17 = vpop.xlane.xlu0 %1208 }
 0x4d1   :  { %1688 = vrcp.f32 %v1236_v16  ;;  %v1237_v13 = vmax.f32 %v1209_v17, 1e-30 }
 0x4d2   :  { %v1006_v30 = vpop.xlane.xlu1 %1005 }
 0x4d3   :  { %1690 = vrcp.f32 %v1237_v13  ;;  %v1037_v12 = vmax.f32 %v1006_v30, 1e-30 }
 0x4d4   :  { %v1008_v40 = vpop.xlane.xlu0 %1007 }
 0x4d5   :  { %v1038_v25 = vmax.f32 %v1008_v40, 1e-30  ;;  %1692 = vrcp.f32 %v1037_v12 }
 0x4d6   :  { %v1203_v20 = vpop.xlane.xlu1 %1202 }
 0x4d7   :  { %v1234_v48 = vmax.f32 %v1203_v20, 1e-30  ;;  %1694 = vrcp.f32 %v1038_v25  ;;  %v1685_v10 = vpop.eup %1684 }
 0x4d8   :  { %v1205_v61 = vpop.xlane.xlu0 %1204  ;;  %v1071_v42 = vmul.f32 %v1685_v10, %v2308_v56 }
 0x4d9   :  { %1696 = vrcp.f32 %v1234_v48  ;;  %v1235_v59 = vmax.f32 %v1205_v61, 1e-30  ;;  %v1687_v29 = vpop.eup %1686 }
 0x4da   :  { %v1018_v5 = vpop.xlane.xlu1 %1017  ;;  %v1072_v2 = vmul.f32 %v1687_v29, %v2318_v3 }
 0x4db   :  { %v1689_v26 = vpop.eup %1688  ;;  %1698 = vrcp.f32 %v1235_v59  ;;  %v1043_v33 = vmax.f32 %v1018_v5, 1e-30 }
 0x4dc   :  { %v1268_v47 = vmul.f32 %v1689_v26, %v2323_v57  ;;  %v1020_v34 = vpop.xlane.xlu0 %1019 }
 0x4dd   :  { %v1691_v8 = vpop.eup %1690  ;;  %v1044_v58 = vmax.f32 %v1020_v34, 1e-30  ;;  %1700 = vrcp.f32 %v1043_v33 }
 0x4de   :  { %v1284_v35 = vadd.f32 %v1268_v47, %v1071_v42  ;;  %v1269_v32 = vmul.f32 %v1691_v8, %v2328_v62  ;;  %v1215_v19 = vpop.xlane.xlu1 %1214 }
 0x4df   :  { %v1240_v63 = vmax.f32 %v1215_v19, 1e-30  ;;  %1702 = vrcp.f32 %v1044_v58  ;;  %v1693_v41 = vpop.eup %1692 }
 0x4e0   :  { %1300 = vst [vmem:[%s2549_s5 + $0x10] sm:$0xff] %v1284_v35  ;;  %v1285_v15 = vadd.f32 %v1269_v32, %v1072_v2  ;;  %v1217_v56 = vpop.xlane.xlu0 %1216  ;;  %v1069_v44 = vmul.f32 %v1693_v41, %v2333_v6 }
 0x4e1   :  { %1704 = vrcp.f32 %v1240_v63  ;;  %v1241_v57 = vmax.f32 %v1217_v56, 1e-30  ;;  %v1695_v60 = vpop.eup %1694 }
 0x4e2   :  { %1301 = vst [vmem:[%s2549_s5 + $0x18] sm:$0xff] %v1285_v15  ;;  %v1014_v3 = vpop.xlane.xlu1 %1013  ;;  %v1070_v30 = vmul.f32 %v1695_v60, %v2338_v36 }
 0x4e3   :  { %v1697_v62 = vpop.eup %1696  ;;  %1706 = vrcp.f32 %v1241_v57  ;;  %v1041_v38 = vmax.f32 %v1014_v3, 1e-30 }
 0x4e4   :  { %v1266_v53 = vmul.f32 %v1697_v62, %v2343_v55  ;;  %v1016_v16 = vpop.xlane.xlu0 %1015 }
 0x4e5   :  { %v1699_v17 = vpop.eup %1698  ;;  %v1042_v13 = vmax.f32 %v1016_v16, 1e-30  ;;  %1708 = vrcp.f32 %v1041_v38 }
 0x4e6   :  { %v1282_v12 = vadd.f32 %v1266_v53, %v1069_v44  ;;  %v1267_v40 = vmul.f32 %v1699_v17, %v2348_v46  ;;  %v1211_v25 = vpop.xlane.xlu1 %1210 }
 0x4e7   :  { %v1238_v20 = vmax.f32 %v1211_v25, 1e-30  ;;  %1710 = vrcp.f32 %v1042_v13  ;;  %v1701_v61 = vpop.eup %1700 }
 0x4e8   :  { %1298 = vst [vmem:[%s2549_s5] sm:$0xff] %v1282_v12  ;;  %v1283_v48 = vadd.f32 %v1267_v40, %v1070_v30  ;;  %v1213_v6 = vpop.xlane.xlu0 %1212  ;;  %v1075_v29 = vmul.f32 %v1701_v61, %v2353_v52 }
 0x4e9   :  { %1712 = vrcp.f32 %v1238_v20  ;;  %v1239_v55 = vmax.f32 %v1213_v6, 1e-30  ;;  %v1703_v10 = vpop.eup %1702 }
 0x4ea   :  { %1299 = vst [vmem:[%s2549_s5 + $0x8] sm:$0xff] %v1283_v48  ;;  %v1026_v36 = vpop.xlane.xlu1 %1025  ;;  %v1076_v47 = vmul.f32 %v1703_v10, %v2358_v54 }
 0x4eb   :  { %v1705_v46 = vpop.eup %1704  ;;  %1714 = vrcp.f32 %v1239_v55  ;;  %v1047_v59 = vmax.f32 %v1026_v36, 1e-30 }
 0x4ec   :  { %v1272_v5 = vmul.f32 %v1705_v46, %v2363_v24  ;;  %v1028_v26 = vpop.xlane.xlu0 %1027 }
 0x4ed   :  { %v1707_v33 = vpop.eup %1706  ;;  %v1048_v42 = vmax.f32 %v1028_v26, 1e-30  ;;  %1716 = vrcp.f32 %v1047_v59 }
 0x4ee   :  { %v1288_v34 = vadd.f32 %v1272_v5, %v1075_v29  ;;  %v1273_v8 = vmul.f32 %v1707_v33, %v2368_v7  ;;  %v1223_v58 = vpop.xlane.xlu1 %1222 }
 0x4ef   :  { %v1244_v2 = vmax.f32 %v1223_v58, 1e-30  ;;  %1718 = vrcp.f32 %v1048_v42  ;;  %v1709_v32 = vpop.eup %1708 }
 0x4f0   :  { %1304 = vst [vmem:[%s2549_s5 + $0x30] sm:$0xff] %v1288_v34  ;;  %v1289_v35 = vadd.f32 %v1273_v8, %v1076_v47  ;;  %v1225_v52 = vpop.xlane.xlu0 %1224  ;;  %v1073_v15 = vmul.f32 %v1709_v32, %v2373_v4 }
 0x4f1   :  { %1720 = vrcp.f32 %v1244_v2  ;;  %v1245_v24 = vmax.f32 %v1225_v52, 1e-30  ;;  %v1711_v19 = vpop.eup %1710 }
 0x4f2   :  { %1305 = vst [vmem:[%s2549_s5 + $0x38] sm:$0xff] %v1289_v35  ;;  %v1022_v54 = vpop.xlane.xlu1 %1021  ;;  %v1074_v3 = vmul.f32 %v1711_v19, %v2378_v18 }
 0x4f3   :  { %v1713_v7 = vpop.eup %1712  ;;  %1722 = vrcp.f32 %v1245_v24  ;;  %v1045_v63 = vmax.f32 %v1022_v54, 1e-30 }
 0x4f4   :  { %v1270_v56 = vmul.f32 %v1713_v7, %v2383_v49  ;;  %v1024_v41 = vpop.xlane.xlu0 %1023 }
 0x4f5   :  { %v1715_v57 = vpop.eup %1714  ;;  %v1046_v60 = vmax.f32 %v1024_v41, 1e-30  ;;  %1724 = vrcp.f32 %v1045_v63 }
 0x4f6   :  { %v1286_v62 = vadd.f32 %v1270_v56, %v1073_v15  ;;  %v1271_v38 = vmul.f32 %v1715_v57, %v2388_v11  ;;  %v1219_v44 = vpop.xlane.xlu1 %1218 }
 0x4f7   :  { %v1242_v53 = vmax.f32 %v1219_v44, 1e-30  ;;  %1726 = vrcp.f32 %v1046_v60  ;;  %v1717_v17 = vpop.eup %1716 }
 0x4f8   :  { %1302 = vst [vmem:[%s2549_s5 + $0x20] sm:$0xff] %v1286_v62  ;;  %v1287_v16 = vadd.f32 %v1271_v38, %v1074_v3  ;;  %v1221_v4 = vpop.xlane.xlu0 %1220  ;;  %v1079_v30 = vmul.f32 %v1717_v17, %v2393_v45 }
 0x4f9   :  { %1728 = vrcp.f32 %v1242_v53  ;;  %v1243_v49 = vmax.f32 %v1221_v4, 1e-30  ;;  %v1719_v13 = vpop.eup %1718 }
 0x4fa   :  { %1303 = vst [vmem:[%s2549_s5 + $0x28] sm:$0xff] %v1287_v16  ;;  %v1034_v18 = vpop.xlane.xlu1 %1033  ;;  %v1080_v20 = vmul.f32 %v1719_v13, %v2398_v28 }
 0x4fb   :  { %v1721_v11 = vpop.eup %1720  ;;  %1730 = vrcp.f32 %v1243_v49 }
 0x4fc   :  { %v1276_v12 = vmul.f32 %v1721_v11, %v2403_v0  ;;  %v1036_v40 = vpop.xlane.xlu0 %1035  ;;  %v1051_v0 = vmax.f32 %v1034_v18, 1e-30 }
 0x4fd   :  { %v1723_v25 = vpop.eup %1722  ;;  %v1052_v33 = vmax.f32 %v1036_v40, 1e-30 }
 0x4fe   :  { %v1292_v48 = vadd.f32 %v1276_v12, %v1079_v30  ;;  %v1277_v6 = vmul.f32 %v1723_v25, %v2408_v9  ;;  %v1030_v61 = vpop.xlane.xlu1 %1029 }
 0x4ff   :  { %v1049_v55 = vmax.f32 %v1030_v61, 1e-30  ;;  %v1725_v46 = vpop.eup %1724 }
 0x500   :  { %1308 = vst [vmem:[%s2549_s5 + $0x50] sm:$0xff] %v1292_v48  ;;  %v1293_v10 = vadd.f32 %v1277_v6, %v1080_v20  ;;  %v1032_v36 = vpop.xlane.xlu0 %1031  ;;  %v1077_v5 = vmul.f32 %v1725_v46, %v2413_v1 }
 0x501   :  { %v1050_v59 = vmax.f32 %v1032_v36, 1e-30  ;;  %v1727_v45 = vpop.eup %1726  ;;  %1732 = vrcp.f32 %v1049_v55 }
 0x502   :  { %1309 = vst [vmem:[%s2549_s5 + $0x58] sm:$0xff] %v1293_v10  ;;  %v1227_v28 = vpop.xlane.xlu1 %1226  ;;  %v1078_v8 = vmul.f32 %v1727_v45, %v2418_v37 }
 0x503   :  { %v1729_v29 = vpop.eup %1728  ;;  %v1246_v9 = vmax.f32 %v1227_v28, 1e-30  ;;  %1734 = vrcp.f32 %v1050_v59 }
 0x504   :  { %v1274_v26 = vmul.f32 %v1729_v29, %v2423_v23  ;;  %v1229_v42 = vpop.xlane.xlu0 %1228 }
 0x505   :  { %v1731_v47 = vpop.eup %1730  ;;  %1736 = vrcp.f32 %v1246_v9  ;;  %v1247_v34 = vmax.f32 %v1229_v42, 1e-30 }
 0x506   :  { %v1290_v58 = vadd.f32 %v1274_v26, %v1077_v5  ;;  %v1275_v2 = vmul.f32 %v1731_v47, %v2428_v39  ;;  %1738 = vrcp.f32 %v1051_v0  ;;  %v1231_v35 = vpop.xlane.xlu1 %1230 }
 0x507   :  { %1740 = vrcp.f32 %v1247_v34  ;;  %v1248_v52 = vmax.f32 %v1231_v35, 1e-30 }
 0x508   :  { %1306 = vst [vmem:[%s2549_s5 + $0x40] sm:$0xff] %v1290_v58  ;;  %v1291_v1 = vadd.f32 %v1275_v2, %v1078_v8  ;;  %1742 = vrcp.f32 %v1052_v33  ;;  %v1233_v23 = vpop.xlane.xlu0 %1232 }
 0x509   :  { %1744 = vrcp.f32 %v1248_v52  ;;  %v1249_v32 = vmax.f32 %v1233_v23, 1e-30 }
 0x50a   :  { %1307 = vst [vmem:[%s2549_s5 + $0x48] sm:$0xff] %v1291_v1 }
 0x50b   :  { %1746 = vrcp.f32 %v1249_v32  ;;  %v1733_v37 = vpop.eup %1732 }
 0x50c   :  { %v1081_v54 = vmul.f32 %v1733_v37, %v2441_v14 }
 0x50d   :  { %v1735_v39 = vpop.eup %1734 }
 0x50e   :  { %v1082_v56 = vmul.f32 %v1735_v39, %v2445_v21 }
 0x50f   :  { %v1737_v24 = vpop.eup %1736 }
 0x510   :  { %v1739_v19 = vpop.eup %1738  ;;  %v1278_v7 = vmul.f32 %v1737_v24, %v2449_v51 }
 0x511   :  { %v1741_v63 = vpop.eup %1740  ;;  %v1083_v3 = vmul.f32 %v1739_v19, %v2433_v50 }
 0x512   :  { %v1743_v15 = vpop.eup %1742  ;;  %v1294_v41 = vadd.f32 %v1278_v7, %v1081_v54  ;;  %v1279_v57 = vmul.f32 %v1741_v63, %v2453_v27 }
 0x513   :  { %v1745_v60 = vpop.eup %1744  ;;  %v1084_v51 = vmul.f32 %v1743_v15, %v2437_v31 }
 0x514   :  { %1310 = vst [vmem:[%s2549_s5 + $0x60] sm:$0xff] %v1294_v41  ;;  %v1295_v62 = vadd.f32 %v1279_v57, %v1082_v56  ;;  %v1280_v38 = vmul.f32 %v1745_v60, %v2457_v43 }
 0x515   :  { %v1747_v14 = vpop.eup %1746 }
 0x516   :  { %1311 = vst [vmem:[%s2549_s5 + $0x68] sm:$0xff] %v1295_v62  ;;  %v1296_v21 = vadd.f32 %v1280_v38, %v1083_v3  ;;  %v1281_v27 = vmul.f32 %v1747_v14, %v2461_v22 }
 0x518   :  { %1312 = vst [vmem:[%s2549_s5 + $0x70] sm:$0xff] %v1296_v21  ;;  %v1297_v50 = vadd.f32 %v1281_v27, %v1084_v51 }
 0x51a   :  { %1313 = vst [vmem:[%s2549_s5 + $0x78] sm:$0xff] %v1297_v50 }

</bundles_post_ra>
